<compile_context>
chip_gen: v5e
topology: v5e:2x2
jax: 0.10.0
libtpu: 0.0.40
codegen_flags: <defaults>
</compile_context>

<pallas_src>
import jax
import jax.numpy as jnp
from jax.experimental import pallas as pl
from jax.experimental.pallas import tpu as pltpu

NUM_UNITS = 400      # D
N_PAD = 512          # each dense output padded to 512 lanes (4 * 128)


def feature_gate_kernel(s_ref, l_ref, ws_ref, wl_ref, b_ref, o_ref):
    # s_ref, l_ref : (TM, D)      short / long tiles
    # ws_ref, wl_ref: (D, 2*N_PAD) fused [f|g] weights for the short / long K-halves
    # b_ref        : (1, 2*N_PAD) fused [f|g] bias
    # o_ref        : (TM, D)
    s = s_ref[...]
    l = l_ref[...]

    # One fused MXU pass: columns [0:512) -> f_dense, [512:1024) -> g_dense.
    pre = (
        jnp.dot(s, ws_ref[...], preferred_element_type=jnp.float32)
        + jnp.dot(l, wl_ref[...], preferred_element_type=jnp.float32)
        + b_ref[...]
    )

    f = jnp.tanh(pre[:, :NUM_UNITS])                       # lane offset 0 (aligned)
    g = jax.nn.sigmoid(pre[:, N_PAD:N_PAD + NUM_UNITS])    # lane offset 512 (aligned)

    out = g * s.astype(jnp.float32) + (1.0 - g) * f
    o_ref[...] = out.astype(o_ref.dtype)


def prepare_params(wf, bf, wg, bg):
    """One-time weight prep (hoisted out of the per-call path).

    wf, wg: torch-style Linear weights (D, 2*D); bf, bg: (D,).
    Returns (W_s, W_l, b) with W_* of shape (D, 2*N_PAD), b of shape (1, 2*N_PAD).
    """
    D, NP = NUM_UNITS, N_PAD
    wf_t = wf.T            # (2D, D)
    wg_t = wg.T

    def pad_n(w):          # pad output dim D -> NP
        return jnp.pad(w, ((0, 0), (0, NP - D)))

    # Split along K into the short / long halves, fuse f|g along N (padded).
    w_s = jnp.concatenate([pad_n(wf_t[:D]), pad_n(wg_t[:D])], axis=1)   # (D, 2*NP)
    w_l = jnp.concatenate([pad_n(wf_t[D:]), pad_n(wg_t[D:])], axis=1)   # (D, 2*NP)
    b = jnp.concatenate([jnp.pad(bf, (0, NP - D)),
                         jnp.pad(bg, (0, NP - D))]).reshape(1, 2 * NP)
    return w_s, w_l, b


def feature_gate(short_rep, long_rep, params, *, tm=256):
    """short_rep, long_rep: (..., D). params from prepare_params()."""
    D = NUM_UNITS
    w_s, w_l, b = params
    orig_shape = short_rep.shape
    assert orig_shape[-1] == D and long_rep.shape == orig_shape

    s2 = short_rep.reshape(-1, D)
    l2 = long_rep.reshape(-1, D)
    M = s2.shape[0]

    # Tail handling: shrink the tile for tiny M, otherwise cdiv grid with a
    # padded/masked last block (no M % tm requirement).
    tm_eff = tm if M >= tm else M
    grid = (pl.cdiv(M, tm_eff),)

    out = pl.pallas_call(
        feature_gate_kernel,
        out_shape=jax.ShapeDtypeStruct((M, D), short_rep.dtype),
        grid_spec=pltpu.PrefetchScalarGridSpec(
            num_scalar_prefetch=0,
            grid=grid,
            in_specs=[
                pl.BlockSpec((tm_eff, D), lambda i: (i, 0)),          # short tile
                pl.BlockSpec((tm_eff, D), lambda i: (i, 0)),          # long tile
                pl.BlockSpec((D, 2 * N_PAD), lambda i: (0, 0)),       # W_s (resident)
                pl.BlockSpec((D, 2 * N_PAD), lambda i: (0, 0)),       # W_l (resident)
                pl.BlockSpec((1, 2 * N_PAD), lambda i: (0, 0)),       # bias
            ],
            out_specs=pl.BlockSpec((tm_eff, D), lambda i: (i, 0)),
        ),
        compiler_params=pltpu.CompilerParams(
            dimension_semantics=("parallel",)
        ),
    )(s2, l2, w_s, w_l, b)

    return out.reshape(orig_shape)


def feature_gate_ref(short_rep, long_rep, wf, bf, wg, bg):
    x = jnp.concatenate([short_rep, long_rep], axis=-1)
    f = jnp.tanh(x @ wf.T + bf)
    g = jax.nn.sigmoid(x @ wg.T + bg)
    return g * short_rep + (1.0 - g) * f


if __name__ == "__main__":
    D = NUM_UNITS
    batch, seq = 2, 8

    key = jax.random.PRNGKey(0)
    k_s, k_l, k_wf, k_bf, k_wg, k_bg = jax.random.split(key, 6)

    short_rep = jax.random.normal(k_s, (batch, seq, D), dtype=jnp.float32)
    long_rep = jax.random.normal(k_l, (batch, seq, D), dtype=jnp.float32)

    # Deterministic params (torch Linear shapes: weight (out, in), bias (out,))
    scale = 1.0 / jnp.sqrt(2.0 * D)
    wf = jax.random.uniform(k_wf, (D, 2 * D), minval=-scale, maxval=scale, dtype=jnp.float32)
    bf = jax.random.uniform(k_bf, (D,), minval=-scale, maxval=scale, dtype=jnp.float32)
    wg = jax.random.uniform(k_wg, (D, 2 * D), minval=-scale, maxval=scale, dtype=jnp.float32)
    bg = jax.random.uniform(k_bg, (D,), minval=-scale, maxval=scale, dtype=jnp.float32)

    # One-time weight prep (transpose/split/pad/fuse hoisted out of the call path).
    params = prepare_params(wf, bf, wg, bg)

    out = feature_gate(short_rep, long_rep, params)
    out = jax.block_until_ready(out)

    ref = feature_gate_ref(short_rep, long_rep, wf, bf, wg, bg)
    assert out.shape == (batch, seq, D)
    assert jnp.allclose(out, ref, atol=1e-4, rtol=1e-4)

    print("KERNEL_OK")
</pallas_src>

<mosaic_0001>
module attributes {stable_mosaic.version = 11 : i64} {
  func.func @feature_gate_kernel(%arg0: i32, %arg1: memref<16x400xf32, #tpu.memory_space<vmem>>, %arg2: memref<16x400xf32, #tpu.memory_space<vmem>>, %arg3: memref<400x1024xf32, #tpu.memory_space<vmem>>, %arg4: memref<400x1024xf32, #tpu.memory_space<vmem>>, %arg5: memref<1x1024xf32, #tpu.memory_space<vmem>>, %arg6: memref<16x400xf32, #tpu.memory_space<vmem>>) attributes {dimension_semantics = [#tpu.dimension_semantics<parallel>], iteration_bounds = array<i64: 1>, scalar_prefetch = 0 : i64, scratch_operands = 0 : i64, tpu.core_type = #tpu.core_type<tc>, window_params = [{transform_indices = @transform_0, window_bounds = array<i64: 16, 400>}, {transform_indices = @transform_1, window_bounds = array<i64: 16, 400>}, {pipeline_mode = #tpu.pipeline_mode<synchronous>, transform_indices = @transform_2, window_bounds = array<i64: 400, 1024>}, {pipeline_mode = #tpu.pipeline_mode<synchronous>, transform_indices = @transform_3, window_bounds = array<i64: 400, 1024>}, {pipeline_mode = #tpu.pipeline_mode<synchronous>, transform_indices = @transform_4, window_bounds = array<i64: 1, 1024>}, {transform_indices = @transform_5, window_bounds = array<i64: 16, 400>}]} {
    %c0 = arith.constant 0 : index
    %c0_0 = arith.constant 0 : index
    %0 = vector.load %arg1[%c0, %c0_0] : memref<16x400xf32, #tpu.memory_space<vmem>>, vector<16x400xf32>
    %c0_1 = arith.constant 0 : index
    %c0_2 = arith.constant 0 : index
    %1 = vector.load %arg2[%c0_1, %c0_2] : memref<16x400xf32, #tpu.memory_space<vmem>>, vector<16x400xf32>
    %c0_3 = arith.constant 0 : index
    %c0_4 = arith.constant 0 : index
    %2 = vector.load %arg3[%c0_3, %c0_4] : memref<400x1024xf32, #tpu.memory_space<vmem>>, vector<400x1024xf32>
    %cst = arith.constant dense<0.000000e+00> : vector<16x1024xf32>
    %3 = tpu.matmul %0, %2, %cst {dimension_numbers = #tpu.dot_dimension_numbers<[1], [0], [0], [1], [0, 0, 1, 1], [], []>} : vector<16x400xf32>, vector<400x1024xf32>, vector<16x1024xf32> -> vector<16x1024xf32>
    %c0_5 = arith.constant 0 : index
    %c0_6 = arith.constant 0 : index
    %4 = vector.load %arg4[%c0_5, %c0_6] : memref<400x1024xf32, #tpu.memory_space<vmem>>, vector<400x1024xf32>
    %cst_7 = arith.constant dense<0.000000e+00> : vector<16x1024xf32>
    %5 = tpu.matmul %1, %4, %cst_7 {dimension_numbers = #tpu.dot_dimension_numbers<[1], [0], [0], [1], [0, 0, 1, 1], [], []>} : vector<16x400xf32>, vector<400x1024xf32>, vector<16x1024xf32> -> vector<16x1024xf32>
    %6 = arith.addf %3, %5 : vector<16x1024xf32>
    %c0_8 = arith.constant 0 : index
    %c0_9 = arith.constant 0 : index
    %7 = vector.load %arg5[%c0_8, %c0_9] : memref<1x1024xf32, #tpu.memory_space<vmem>>, vector<1x1024xf32>
    %8 = vector.broadcast %7 : vector<1x1024xf32> to vector<16x1024xf32>
    %9 = arith.addf %6, %8 : vector<16x1024xf32>
    %10 = vector.extract_strided_slice %9 {offsets = [0, 0], sizes = [16, 400], strides = [1, 1]} : vector<16x1024xf32> to vector<16x400xf32>
    %11 = math.tanh %10 : vector<16x400xf32>
    %12 = vector.extract_strided_slice %9 {offsets = [0, 512], sizes = [16, 400], strides = [1, 1]} : vector<16x1024xf32> to vector<16x400xf32>
    %13 = arith.negf %12 : vector<16x400xf32>
    %14 = math.exp %13 : vector<16x400xf32>
    %cst_10 = arith.constant 1.000000e+00 : f32
    %15 = vector.broadcast %cst_10 : f32 to vector<16x400xf32>
    %16 = arith.addf %15, %14 : vector<16x400xf32>
    %17 = arith.divf %15, %16 : vector<16x400xf32>
    %18 = arith.mulf %17, %0 : vector<16x400xf32>
    %cst_11 = arith.constant 1.000000e+00 : f32
    %19 = vector.broadcast %cst_11 : f32 to vector<16x400xf32>
    %20 = arith.subf %19, %17 : vector<16x400xf32>
    %21 = arith.mulf %20, %11 : vector<16x400xf32>
    %22 = arith.addf %18, %21 : vector<16x400xf32>
    %c0_12 = arith.constant 0 : index
    %c0_13 = arith.constant 0 : index
    %23 = vector.load %arg6[%c0_12, %c0_13] : memref<16x400xf32, #tpu.memory_space<vmem>>, vector<16x400xf32>
    tpu.vector_store %arg6[%c0_12, %c0_13], %22 {strides = array<i32>} : memref<16x400xf32, #tpu.memory_space<vmem>>, vector<16x400xf32>,
    return
  }
  func.func @transform_0(%arg0: i32) -> (i32, i32) {
    %c0_i32 = arith.constant 0 : i32
    %c0_i32_0 = arith.constant 0 : i32
    return %arg0, %c0_i32 : i32, i32
  }
  func.func @transform_1(%arg0: i32) -> (i32, i32) {
    %c0_i32 = arith.constant 0 : i32
    %c0_i32_0 = arith.constant 0 : i32
    return %arg0, %c0_i32 : i32, i32
  }
  func.func @transform_2(%arg0: i32) -> (i32, i32) {
    %c0_i32 = arith.constant 0 : i32
    %c0_i32_0 = arith.constant 0 : i32
    %c0_i32_1 = arith.constant 0 : i32
    return %c0_i32, %c0_i32_0 : i32, i32
  }
  func.func @transform_3(%arg0: i32) -> (i32, i32) {
    %c0_i32 = arith.constant 0 : i32
    %c0_i32_0 = arith.constant 0 : i32
    %c0_i32_1 = arith.constant 0 : i32
    return %c0_i32, %c0_i32_0 : i32, i32
  }
  func.func @transform_4(%arg0: i32) -> (i32, i32) {
    %c0_i32 = arith.constant 0 : i32
    %c0_i32_0 = arith.constant 0 : i32
    %c0_i32_1 = arith.constant 0 : i32
    return %c0_i32, %c0_i32_0 : i32, i32
  }
  func.func @transform_5(%arg0: i32) -> (i32, i32) {
    %c0_i32 = arith.constant 0 : i32
    %c0_i32_0 = arith.constant 0 : i32
    return %arg0, %c0_i32 : i32, i32
  }
}

</mosaic_0001>

<bundles_post_ra>
// kernel: tpu_custom_call.1
= control target key start
LH: loop header
LB: loop body
LE: loop exit
PB: predicated region body
PF: predicated region fallthrough
CT: control target
= control target key end

     0   :  { %10 = vsyncpa [#allocation3], 0  ;;  %s3410_s0 = inlined_call_operand.hbm [shape: f32[16,400], index: 0, kind: input, shape index: {}]   ;;  %s3411_s1 = inlined_call_operand.hbm [shape: f32[16,400], index: 1, kind: input, shape index: {}]   ;;  %s3412_s2 = inlined_call_operand.hbm [shape: f32[400,1024], index: 2, kind: input, shape index: {}]   ;;  %s3413_s3 = inlined_call_operand.hbm [shape: f32[400,1024], index: 3, kind: input, shape index: {}]   ;;  %s3414_s4 = inlined_call_operand.hbm [shape: f32[1,1024], index: 4, kind: input, shape index: {}]   ;;  %s3415_s5 = inlined_call_operand.hbm [shape: f32[16,400], index: 5, kind: output, shape index: {}]  }
   0x1   :  { %11 = vsyncpa [#allocation6], 0 }
   0x2   :  { %12 = vsyncpa [#allocation9], 0 }
   0x3   :  { %13 = vsyncpa [#allocation4], 0  ;;  %s31_s20 = sshll.u32 %s3411_s1, 4  ;;  %s2921_s21 = smov [#allocation5]   ;;  %s32_s20 = int_to_ptr.hbm [resolvable:$true] %s31_s20 }
   0x4   :  { %s33_s22 = sshll.u32 %s2921_s21, 4  ;;  %s2922_s23 = smov 512   ;;  %s34_s22 = int_to_ptr.vmem [resolvable:$true] %s33_s22 }
   0x5   :  { %s2923_s24 = smov 32   ;;  %s57_s27 = sshll.u32 %s3413_s3, 4  ;;  %s58_s27 = int_to_ptr.hbm [resolvable:$true] %s57_s27 }
   0x6   :  { %39 = dma.hbm_to_vmem [thread:$0]  %s32_s20, 1024, %s34_s22, [#allocation6], %s2922_s23, %s2922_s23, %s2923_s24  }
   0x7   :  { %s2924_s28 = smov [#allocation8]   ;;  %s18_s1 = sshll.u32 %s3410_s0, 4  ;;  %s19_s1 = int_to_ptr.hbm [resolvable:$true] %s18_s1 }
   0x8   :  { %s59_s29 = sshll.u32 %s2924_s28, 4  ;;  %s2925_s7 = smov 1024   ;;  %s60_s29 = int_to_ptr.vmem [resolvable:$true] %s59_s29 }
   0x9   :  { %s2926_s8 = smov 64   ;;  %s44_s11 = sshll.u32 %s3412_s2, 4  ;;  %s45_s11 = int_to_ptr.hbm [resolvable:$true] %s44_s11 }
   0xa   :  { %65 = dma.hbm_to_vmem [thread:$0]  %s58_s27, 51200, %s60_s29, [#allocation9], %s2925_s7, %s2925_s7, %s2926_s8  }
   0xb   :  { %s2927_s12 = smov [#allocation2]   ;;  %s2928_s3 = smov [#allocation7]  }
   0xc   :  { %s20_s13 = sshll.u32 %s2927_s12, 4  ;;  %s46_s14 = sshll.u32 %s2928_s3, 4  ;;  %s21_s13 = int_to_ptr.vmem [resolvable:$true] %s20_s13  ;;  %s47_s14 = int_to_ptr.vmem [resolvable:$true] %s46_s14 }
   0xd   :  { %26 = dma.hbm_to_vmem [thread:$0]  %s19_s1, 1024, %s21_s13, [#allocation3], %s2922_s23, %s2922_s23, %s2923_s24  }
   0xe   :  { %s71_s16 = sshll.u32 %s3414_s4, 4  ;;  %s2929_s17 = smov [#allocation10]   ;;  %s72_s16 = int_to_ptr.hbm [resolvable:$true] %s71_s16 }
   0xf   :  { %52 = dma.hbm_to_vmem [thread:$0]  %s45_s11, 51200, %s47_s14, [#allocation6], %s2925_s7, %s2925_s7, %s2926_s8  }
  0x10   :  { %s73_s18 = sshll.u32 %s2929_s17, 4  ;;  %s74_s18 = int_to_ptr.vmem [resolvable:$true] %s73_s18 }
  0x11   :  { %76 = dma.hbm_to_vmem [thread:$0]  %s72_s16, 128, %s74_s18, [#allocation9]  }
  0x12   :  { %2913 = dma.done.wait [#allocation3], 1024  }
  0x13   :  { %2914 = vsyncadd [#allocation3], 4294966272 }
  0x14   :  { %2915 = dma.done.wait [#allocation6], 52224  }
  0x15   :  { %2916 = vsyncadd [#allocation6], 4294915072 }
  0x16   :  { %2917 = dma.done.wait [#allocation9], 51328  }
  0x17   :  { %2918 = vsyncadd [#allocation9], 4294915968  ;;  %v633_v0 = vld [vmem:[#allocation8 + $0x3c0] sm:$0xff]  ;;  %v634_v8 = vld [vmem:[#allocation8 + $0x3c8] sm:$0xff]  ;;  %vm913_vm0 = vcmask 130048   ;;  %s2930_s2 = smov [#allocation11]  }
  0x18   :  { %v761_v1 = vld [vmem:[#allocation8 + $0x7c0] sm:$0xff]  ;;  %920 = vmatpush.msra.mxu0 %v633_v0  ;;  %v626_v12 = vld [vmem:[#allocation8 + $0x388] sm:$0xff]  ;;  %s2636_s4 = sshll.u32 %s2930_s2, 4  ;;  %s2638_s21 = sshll.u32 %s3415_s5, 4  ;;  %s2637_s4 = int_to_ptr.vmem [resolvable:$true] %s2636_s4  ;;  %s2639_s21 = int_to_ptr.hbm [resolvable:$true] %s2638_s21 }
  0x19   :  { %v889_v2 = vld [vmem:[#allocation8 + $0xbc0] sm:$0xff]  ;;  %943 = vmatpush.msra.mxu1 %v761_v1  ;;  %v618_v16 = vld [vmem:[#allocation8 + $0x348] sm:$0xff] }
  0x1a   :  { %v905_v3 = vld [vmem:[#allocation8 + $0xc40] sm:$0xff]  ;;  %966 = vmatpush.msra.mxu2 %v889_v2  ;;  %v610_v20 = vld [vmem:[#allocation8 + $0x308] sm:$0xff] }
  0x1b   :  { %v625_v4 = vld [vmem:[#allocation8 + $0x380] sm:$0xff]  ;;  %1003 = vmatpush.msra.mxu3 %v905_v3  ;;  %v602_v24 = vld [vmem:[#allocation8 + $0x2c8] sm:$0xff] }
  0x1c   :  { %v753_v5 = vld [vmem:[#allocation8 + $0x780] sm:$0xff]  ;;  %921 = vmatpush.msra.mxu0 %v625_v4  ;;  %v594_v28 = vld [vmem:[#allocation8 + $0x288] sm:$0xff]  ;;  %v2982_v4 = vld [vmem:[#allocation5 + $0x10] sm:$0xff] }
  0x1d   :  { %v881_v6 = vld [vmem:[#allocation8 + $0xb80] sm:$0xff]  ;;  %944 = vmatpush.msra.mxu1 %v753_v5  ;;  %v586_v32 = vld [vmem:[#allocation8 + $0x248] sm:$0xff] }
  0x1e   :  { %v897_v7 = vld [vmem:[#allocation8 + $0xc00] sm:$0xff]  ;;  %967 = vmatpush.msra.mxu2 %v881_v6  ;;  %v578_v36 = vld [vmem:[#allocation8 + $0x208] sm:$0xff] }
  0x1f   :  { %v617_v9 = vld [vmem:[#allocation8 + $0x340] sm:$0xff]  ;;  %1004 = vmatpush.msra.mxu3 %v897_v7  ;;  %v570_v40 = vld [vmem:[#allocation8 + $0x1c8] sm:$0xff] }
  0x20   :  { %v745_v10 = vld [vmem:[#allocation8 + $0x740] sm:$0xff]  ;;  %922 = vmatpush.msra.mxu0 %v617_v9  ;;  %v562_v44 = vld [vmem:[#allocation8 + $0x188] sm:$0xff]  ;;  %v2984_v9 = vld [vmem:[#allocation5 + $0x18] sm:$0xff] }
  0x21   :  { %v873_v11 = vld [vmem:[#allocation8 + $0xb40] sm:$0xff]  ;;  %1012 = vmatpush.msrb.mxu3 %v634_v8  ;;  %945 = vmatpush.msra.mxu1 %v745_v10  ;;  %v554_v48 = vld [vmem:[#allocation8 + $0x148] sm:$0xff]  ;;  %v635_v10 = vld [vmem:[#allocation8 + $0x3d0] sm:$0xff] }
  0x22   :  { %v609_v13 = vld [vmem:[#allocation8 + $0x300] sm:$0xff]  ;;  %968 = vmatpush.msra.mxu2 %v873_v11  ;;  %v546_v52 = vld [vmem:[#allocation8 + $0x108] sm:$0xff]  ;;  %v763_v11 = vld [vmem:[#allocation8 + $0x7d0] sm:$0xff]  ;;  %2653 = vmatmul.msk.f32.vlgmr.msra.gmra.mxu3 %vm913_vm0, %v2984_v9 }
  0x23   :  { %v737_v14 = vld [vmem:[#allocation8 + $0x700] sm:$0xff]  ;;  %1013 = vmatpush.msrb.mxu3 %v626_v12  ;;  %923 = vmatpush.msra.mxu0 %v609_v13  ;;  %v538_v56 = vld [vmem:[#allocation8 + $0xc8] sm:$0xff] }
  0x24   :  { %v865_v15 = vld [vmem:[#allocation8 + $0xb00] sm:$0xff]  ;;  %946 = vmatpush.msra.mxu1 %v737_v14  ;;  %v530_v60 = vld [vmem:[#allocation8 + $0x88] sm:$0xff] }
  0x25   :  { %v601_v17 = vld [vmem:[#allocation8 + $0x2c0] sm:$0xff]  ;;  %969 = vmatpush.msra.mxu2 %v865_v15  ;;  %1014 = vmatpush.msrb.mxu3 %v618_v16  ;;  %v522_v0 = vld [vmem:[#allocation8 + $0x48] sm:$0xff]  ;;  %v627_v16 = vld [vmem:[#allocation8 + $0x390] sm:$0xff] }
  0x26   :  { %v729_v18 = vld [vmem:[#allocation8 + $0x6c0] sm:$0xff]  ;;  %924 = vmatpush.msra.mxu0 %v601_v17  ;;  %v762_v1 = vld [vmem:[#allocation8 + $0x7c8] sm:$0xff]  ;;  %v755_v17 = vld [vmem:[#allocation8 + $0x790] sm:$0xff] }
  0x27   :  { %v857_v19 = vld [vmem:[#allocation8 + $0xac0] sm:$0xff]  ;;  %947 = vmatpush.msra.mxu1 %v729_v18  ;;  %1015 = vmatpush.msrb.mxu3 %v610_v20  ;;  %v890_v2 = vld [vmem:[#allocation8 + $0xbc8] sm:$0xff]  ;;  %v619_v20 = vld [vmem:[#allocation8 + $0x350] sm:$0xff] }
  0x28   :  { %v593_v21 = vld [vmem:[#allocation8 + $0x280] sm:$0xff]  ;;  %970 = vmatpush.msra.mxu2 %v857_v19  ;;  %v906_v3 = vld [vmem:[#allocation8 + $0xc48] sm:$0xff] }
  0x29   :  { %v721_v22 = vld [vmem:[#allocation8 + $0x680] sm:$0xff]  ;;  %925 = vmatpush.msra.mxu0 %v593_v21  ;;  %1016 = vmatpush.msrb.mxu3 %v602_v24  ;;  %v514_v5 = vld [vmem:[#allocation8 + $0x8] sm:$0xff]  ;;  %v747_v21 = vld [vmem:[#allocation8 + $0x750] sm:$0xff] }
  0x2a   :  { %v849_v23 = vld [vmem:[#allocation8 + $0xa80] sm:$0xff]  ;;  %948 = vmatpush.msra.mxu1 %v721_v22  ;;  %v754_v6 = vld [vmem:[#allocation8 + $0x788] sm:$0xff]  ;;  %v611_v24 = vld [vmem:[#allocation8 + $0x310] sm:$0xff] }
  0x2b   :  { %v585_v25 = vld [vmem:[#allocation8 + $0x240] sm:$0xff]  ;;  %971 = vmatpush.msra.mxu2 %v849_v23  ;;  %1017 = vmatpush.msrb.mxu3 %v594_v28  ;;  %v882_v7 = vld [vmem:[#allocation8 + $0xb88] sm:$0xff]  ;;  %v603_v28 = vld [vmem:[#allocation8 + $0x2d0] sm:$0xff] }
  0x2c   :  { %v713_v26 = vld [vmem:[#allocation8 + $0x640] sm:$0xff]  ;;  %926 = vmatpush.msra.mxu0 %v585_v25  ;;  %v898_v8 = vld [vmem:[#allocation8 + $0xc08] sm:$0xff]  ;;  %v739_v25 = vld [vmem:[#allocation8 + $0x710] sm:$0xff] }
  0x2d   :  { %v841_v27 = vld [vmem:[#allocation8 + $0xa40] sm:$0xff]  ;;  %949 = vmatpush.msra.mxu1 %v713_v26  ;;  %1018 = vmatpush.msrb.mxu3 %v586_v32  ;;  %v746_v12 = vld [vmem:[#allocation8 + $0x748] sm:$0xff]  ;;  %v595_v32 = vld [vmem:[#allocation8 + $0x290] sm:$0xff] }
  0x2e   :  { %v577_v29 = vld [vmem:[#allocation8 + $0x200] sm:$0xff]  ;;  %972 = vmatpush.msra.mxu2 %v841_v27  ;;  %v874_v13 = vld [vmem:[#allocation8 + $0xb48] sm:$0xff] }
  0x2f   :  { %v705_v30 = vld [vmem:[#allocation8 + $0x600] sm:$0xff]  ;;  %927 = vmatpush.msra.mxu0 %v577_v29  ;;  %1019 = vmatpush.msrb.mxu3 %v578_v36  ;;  %v2991_v15 = vld [vmem:[#allocation5 + $0x8] sm:$0xff]  ;;  %v731_v29 = vld [vmem:[#allocation8 + $0x6d0] sm:$0xff] }
  0x30   :  { %v833_v31 = vld [vmem:[#allocation8 + $0xa00] sm:$0xff]  ;;  %950 = vmatpush.msra.mxu1 %v705_v30  ;;  %v738_v18 = vld [vmem:[#allocation8 + $0x708] sm:$0xff]  ;;  %v587_v36 = vld [vmem:[#allocation8 + $0x250] sm:$0xff] }
  0x31   :  { %v569_v33 = vld [vmem:[#allocation8 + $0x1c0] sm:$0xff]  ;;  %973 = vmatpush.msra.mxu2 %v833_v31  ;;  %1020 = vmatpush.msrb.mxu3 %v570_v40  ;;  %v866_v19 = vld [vmem:[#allocation8 + $0xb08] sm:$0xff]  ;;  %v579_v40 = vld [vmem:[#allocation8 + $0x210] sm:$0xff] }
  0x32   :  { %v697_v34 = vld [vmem:[#allocation8 + $0x5c0] sm:$0xff]  ;;  %928 = vmatpush.msra.mxu0 %v569_v33  ;;  %v730_v22 = vld [vmem:[#allocation8 + $0x6c8] sm:$0xff]  ;;  %v723_v33 = vld [vmem:[#allocation8 + $0x690] sm:$0xff] }
  0x33   :  { %v825_v35 = vld [vmem:[#allocation8 + $0x9c0] sm:$0xff]  ;;  %951 = vmatpush.msra.mxu1 %v697_v34  ;;  %1021 = vmatpush.msrb.mxu3 %v562_v44  ;;  %v858_v23 = vld [vmem:[#allocation8 + $0xac8] sm:$0xff]  ;;  %v571_v44 = vld [vmem:[#allocation8 + $0x1d0] sm:$0xff] }
  0x34   :  { %v561_v37 = vld [vmem:[#allocation8 + $0x180] sm:$0xff]  ;;  %974 = vmatpush.msra.mxu2 %v825_v35  ;;  %v722_v26 = vld [vmem:[#allocation8 + $0x688] sm:$0xff] }
  0x35   :  { %v689_v38 = vld [vmem:[#allocation8 + $0x580] sm:$0xff]  ;;  %929 = vmatpush.msra.mxu0 %v561_v37  ;;  %1022 = vmatpush.msrb.mxu3 %v554_v48  ;;  %v850_v27 = vld [vmem:[#allocation8 + $0xa88] sm:$0xff]  ;;  %v715_v37 = vld [vmem:[#allocation8 + $0x650] sm:$0xff] }
  0x36   :  { %v817_v39 = vld [vmem:[#allocation8 + $0x980] sm:$0xff]  ;;  %952 = vmatpush.msra.mxu1 %v689_v38  ;;  %v714_v30 = vld [vmem:[#allocation8 + $0x648] sm:$0xff]  ;;  %v563_v48 = vld [vmem:[#allocation8 + $0x190] sm:$0xff] }
  0x37   :  { %v553_v41 = vld [vmem:[#allocation8 + $0x140] sm:$0xff]  ;;  %975 = vmatpush.msra.mxu2 %v817_v39  ;;  %1023 = vmatpush.msrb.mxu3 %v546_v52  ;;  %v842_v31 = vld [vmem:[#allocation8 + $0xa48] sm:$0xff]  ;;  %v555_v52 = vld [vmem:[#allocation8 + $0x150] sm:$0xff] }
  0x38   :  { %v681_v42 = vld [vmem:[#allocation8 + $0x540] sm:$0xff]  ;;  %930 = vmatpush.msra.mxu0 %v553_v41  ;;  %v706_v34 = vld [vmem:[#allocation8 + $0x608] sm:$0xff]  ;;  %v707_v41 = vld [vmem:[#allocation8 + $0x610] sm:$0xff] }
  0x39   :  { %v809_v43 = vld [vmem:[#allocation8 + $0x940] sm:$0xff]  ;;  %953 = vmatpush.msra.mxu1 %v681_v42  ;;  %1024 = vmatpush.msrb.mxu3 %v538_v56  ;;  %v834_v35 = vld [vmem:[#allocation8 + $0xa08] sm:$0xff] }
  0x3a   :  { %v545_v45 = vld [vmem:[#allocation8 + $0x100] sm:$0xff]  ;;  %976 = vmatpush.msra.mxu2 %v809_v43  ;;  %v698_v38 = vld [vmem:[#allocation8 + $0x5c8] sm:$0xff] }
  0x3b   :  { %v673_v46 = vld [vmem:[#allocation8 + $0x500] sm:$0xff]  ;;  %931 = vmatpush.msra.mxu0 %v545_v45  ;;  %1025 = vmatpush.msrb.mxu3 %v530_v60  ;;  %v826_v39 = vld [vmem:[#allocation8 + $0x9c8] sm:$0xff]  ;;  %v699_v45 = vld [vmem:[#allocation8 + $0x5d0] sm:$0xff] }
  0x3c   :  { %v801_v47 = vld [vmem:[#allocation8 + $0x900] sm:$0xff]  ;;  %954 = vmatpush.msra.mxu1 %v673_v46  ;;  %v690_v42 = vld [vmem:[#allocation8 + $0x588] sm:$0xff]  ;;  %v3000_v60 = vld [vmem:[#allocation5 + $0x38] sm:$0xff] }
  0x3d   :  { %v537_v49 = vld [vmem:[#allocation8 + $0xc0] sm:$0xff]  ;;  %977 = vmatpush.msra.mxu2 %v801_v47  ;;  %1026 = vmatpush.msrb.mxu3 %v522_v0  ;;  %v818_v43 = vld [vmem:[#allocation8 + $0x988] sm:$0xff]  ;;  %v667_v0 = vld [vmem:[#allocation8 + $0x4d0] sm:$0xff] }
  0x3e   :  { %v665_v50 = vld [vmem:[#allocation8 + $0x4c0] sm:$0xff]  ;;  %932 = vmatpush.msra.mxu0 %v537_v49  ;;  %v682_v46 = vld [vmem:[#allocation8 + $0x548] sm:$0xff]  ;;  %v691_v49 = vld [vmem:[#allocation8 + $0x590] sm:$0xff]  ;;  %2654 = vmatmul.msk.f32.gmra.mxu3 %vm913_vm0, %v3000_v60 }
  0x3f   :  { %v793_v51 = vld [vmem:[#allocation8 + $0x8c0] sm:$0xff]  ;;  %955 = vmatpush.msra.mxu1 %v665_v50  ;;  %1027 = vmatpush.msrb.mxu3 %v514_v5  ;;  %v810_v47 = vld [vmem:[#allocation8 + $0x948] sm:$0xff]  ;;  %v531_v5 = vld [vmem:[#allocation8 + $0x90] sm:$0xff] }
  0x40   :  { %v529_v53 = vld [vmem:[#allocation8 + $0x80] sm:$0xff]  ;;  %978 = vmatpush.msra.mxu2 %v793_v51  ;;  %v674_v50 = vld [vmem:[#allocation8 + $0x508] sm:$0xff] }
  0x41   :  { %v657_v54 = vld [vmem:[#allocation8 + $0x480] sm:$0xff]  ;;  %933 = vmatpush.msra.mxu0 %v529_v53  ;;  %1104 = vmatpush.msra.mxu3 %v635_v10  ;;  %v802_v51 = vld [vmem:[#allocation8 + $0x908] sm:$0xff]  ;;  %v683_v53 = vld [vmem:[#allocation8 + $0x550] sm:$0xff] }
  0x42   :  { %v785_v55 = vld [vmem:[#allocation8 + $0x880] sm:$0xff]  ;;  %956 = vmatpush.msra.mxu1 %v657_v54  ;;  %v2995_v54 = vld [vmem:[#allocation5 + $0x30] sm:$0xff]  ;;  %v794_v56 = vld [vmem:[#allocation8 + $0x8c8] sm:$0xff] }
  0x43   :  { %v521_v57 = vld [vmem:[#allocation8 + $0x40] sm:$0xff]  ;;  %979 = vmatpush.msra.mxu2 %v785_v55  ;;  %1105 = vmatpush.msra.mxu3 %v627_v16  ;;  %v666_v55 = vld [vmem:[#allocation8 + $0x4c8] sm:$0xff]  ;;  %v523_v10 = vld [vmem:[#allocation8 + $0x50] sm:$0xff] }
  0x44   :  { %v649_v58 = vld [vmem:[#allocation8 + $0x440] sm:$0xff]  ;;  %934 = vmatpush.msra.mxu0 %v521_v57  ;;  %v547_v57 = vld [vmem:[#allocation8 + $0x110] sm:$0xff] }
  0x45   :  { %v777_v59 = vld [vmem:[#allocation8 + $0x840] sm:$0xff]  ;;  %957 = vmatpush.msra.mxu1 %v649_v58  ;;  %1106 = vmatpush.msra.mxu3 %v619_v20  ;;  %v675_v58 = vld [vmem:[#allocation8 + $0x510] sm:$0xff]  ;;  %v636_v20 = vld [vmem:[#allocation8 + $0x3d8] sm:$0xff] }
  0x46   :  { %v513_v61 = vld [vmem:[#allocation8] sm:$0xff]  ;;  %980 = vmatpush.msra.mxu2 %v777_v59  ;;  %v2997_v59 = vld [vmem:[#allocation5 + $0x28] sm:$0xff]  ;;  %v515_v16 = vld [vmem:[#allocation8 + $0x10] sm:$0xff] }
  0x47   :  { %v641_v62 = vld [vmem:[#allocation8 + $0x400] sm:$0xff]  ;;  %935 = vmatpush.msra.mxu0 %v513_v61  ;;  %1107 = vmatpush.msra.mxu3 %v611_v24  ;;  %v658_v61 = vld [vmem:[#allocation8 + $0x488] sm:$0xff]  ;;  %v628_v24 = vld [vmem:[#allocation8 + $0x398] sm:$0xff] }
  0x48   :  { %v769_v63 = vld [vmem:[#allocation8 + $0x800] sm:$0xff]  ;;  %958 = vmatpush.msra.mxu1 %v641_v62  ;;  %v786_v62 = vld [vmem:[#allocation8 + $0x888] sm:$0xff] }
  0x49   :  { %981 = vmatpush.msra.mxu2 %v769_v63  ;;  %1035 = vmatpush.msrb.mxu0 %v762_v1  ;;  %v2989_v14 = vld [vmem:[#allocation5] sm:$0xff]  ;;  %v539_v63 = vld [vmem:[#allocation8 + $0xd0] sm:$0xff] }
  0x4a   :  { %1058 = vmatpush.msrb.mxu1 %v890_v2  ;;  %982 = vmatmul.f32.vlgmr.msra.gmra.mxu2 %v2982_v4  ;;  %v3003_v1 = vld [vmem:[#allocation5 + $0x20] sm:$0xff]  ;;  %v650_v2 = vld [vmem:[#allocation8 + $0x448] sm:$0xff] }
  0x4b   :  { %1095 = vmatpush.msrb.mxu2 %v906_v3  ;;  %1036 = vmatpush.msrb.mxu0 %v754_v6  ;;  %v778_v3 = vld [vmem:[#allocation8 + $0x848] sm:$0xff]  ;;  %v659_v6 = vld [vmem:[#allocation8 + $0x490] sm:$0xff] }
  0x4c   :  { %1059 = vmatpush.msrb.mxu1 %v882_v7  ;;  %936 = vmatmul.f32.vlgmr.msra.gmra.mxu0 %v2989_v14  ;;  %v642_v7 = vld [vmem:[#allocation8 + $0x408] sm:$0xff] }
  0x4d   :  { %1096 = vmatpush.msrb.mxu2 %v898_v8  ;;  %1037 = vmatpush.msrb.mxu0 %v746_v12  ;;  %v770_v8 = vld [vmem:[#allocation8 + $0x808] sm:$0xff]  ;;  %v891_v12 = vld [vmem:[#allocation8 + $0xbd0] sm:$0xff] }
  0x4e   :  { %1060 = vmatpush.msrb.mxu1 %v874_v13  ;;  %1108 = vmatpush.msra.mxu3 %v603_v28  ;;  %v907_v13 = vld [vmem:[#allocation8 + $0xc50] sm:$0xff]  ;;  %v620_v28 = vld [vmem:[#allocation8 + $0x358] sm:$0xff] }
  0x4f   :  { %1127 = vmatpush.msra.mxu2 %v763_v11  ;;  %959 = vmatmul.f32.vlgmr.msra.gmra.mxu1 %v2991_v15  ;;  %v651_v11 = vld [vmem:[#allocation8 + $0x450] sm:$0xff] }
  0x50   :  { %1038 = vmatpush.msrb.mxu0 %v738_v18  ;;  %1061 = vmatpush.msrb.mxu1 %v866_v19  ;;  %v883_v18 = vld [vmem:[#allocation8 + $0xb90] sm:$0xff] }
  0x51   :  { %1128 = vmatpush.msra.mxu2 %v755_v17  ;;  %1109 = vmatpush.msra.mxu3 %v595_v32  ;;  %v643_v17 = vld [vmem:[#allocation8 + $0x410] sm:$0xff]  ;;  %v612_v32 = vld [vmem:[#allocation8 + $0x318] sm:$0xff] }
  0x52   :  { %1039 = vmatpush.msrb.mxu0 %v730_v22  ;;  %1062 = vmatpush.msrb.mxu1 %v858_v23  ;;  %v899_v19 = vld [vmem:[#allocation8 + $0xc10] sm:$0xff]  ;;  %v892_v22 = vld [vmem:[#allocation8 + $0xbd8] sm:$0xff] }
  0x53   :  { %1129 = vmatpush.msra.mxu2 %v747_v21  ;;  %1110 = vmatpush.msra.mxu3 %v587_v36  ;;  %v764_v21 = vld [vmem:[#allocation8 + $0x7d8] sm:$0xff]  ;;  %v875_v23 = vld [vmem:[#allocation8 + $0xb50] sm:$0xff] }
  0x54   :  { %1040 = vmatpush.msrb.mxu0 %v722_v26  ;;  %1063 = vmatpush.msrb.mxu1 %v850_v27  ;;  %v884_v26 = vld [vmem:[#allocation8 + $0xb98] sm:$0xff]  ;;  %v867_v27 = vld [vmem:[#allocation8 + $0xb10] sm:$0xff] }
  0x55   :  { %1130 = vmatpush.msra.mxu2 %v739_v25  ;;  %1111 = vmatpush.msra.mxu3 %v579_v40  ;;  %v756_v25 = vld [vmem:[#allocation8 + $0x798] sm:$0xff] }
  0x56   :  { %1041 = vmatpush.msrb.mxu0 %v714_v30  ;;  %1064 = vmatpush.msrb.mxu1 %v842_v31  ;;  %v876_v30 = vld [vmem:[#allocation8 + $0xb58] sm:$0xff]  ;;  %v859_v31 = vld [vmem:[#allocation8 + $0xad0] sm:$0xff] }
  0x57   :  { %1131 = vmatpush.msra.mxu2 %v731_v29  ;;  %1112 = vmatpush.msra.mxu3 %v571_v44  ;;  %v748_v29 = vld [vmem:[#allocation8 + $0x758] sm:$0xff] }
  0x58   :  { %1042 = vmatpush.msrb.mxu0 %v706_v34  ;;  %1065 = vmatpush.msrb.mxu1 %v834_v35  ;;  %v868_v34 = vld [vmem:[#allocation8 + $0xb18] sm:$0xff]  ;;  %v851_v35 = vld [vmem:[#allocation8 + $0xa90] sm:$0xff] }
  0x59   :  { %1132 = vmatpush.msra.mxu2 %v723_v33  ;;  %1113 = vmatpush.msra.mxu3 %v563_v48  ;;  %v740_v33 = vld [vmem:[#allocation8 + $0x718] sm:$0xff] }
  0x5a   :  { %1043 = vmatpush.msrb.mxu0 %v698_v38  ;;  %1066 = vmatpush.msrb.mxu1 %v826_v39  ;;  %v604_v36 = vld [vmem:[#allocation8 + $0x2d8] sm:$0xff]  ;;  %v843_v39 = vld [vmem:[#allocation8 + $0xa50] sm:$0xff] }
  0x5b   :  { %1133 = vmatpush.msra.mxu2 %v715_v37  ;;  %1114 = vmatpush.msra.mxu3 %v555_v52  ;;  %v732_v37 = vld [vmem:[#allocation8 + $0x6d8] sm:$0xff] }
  0x5c   :  { %1044 = vmatpush.msrb.mxu0 %v690_v42  ;;  %1067 = vmatpush.msrb.mxu1 %v818_v43  ;;  %v860_v38 = vld [vmem:[#allocation8 + $0xad8] sm:$0xff]  ;;  %v835_v43 = vld [vmem:[#allocation8 + $0xa10] sm:$0xff] }
  0x5d   :  { %1134 = vmatpush.msra.mxu2 %v707_v41  ;;  %1115 = vmatpush.msra.mxu3 %v547_v57  ;;  %v596_v40 = vld [vmem:[#allocation8 + $0x298] sm:$0xff] }
  0x5e   :  { %1045 = vmatpush.msrb.mxu0 %v682_v46  ;;  %1068 = vmatpush.msrb.mxu1 %v810_v47  ;;  %v724_v41 = vld [vmem:[#allocation8 + $0x698] sm:$0xff]  ;;  %v827_v47 = vld [vmem:[#allocation8 + $0x9d0] sm:$0xff] }
  0x5f   :  { %1135 = vmatpush.msra.mxu2 %v699_v45  ;;  %962 = vmatmul.f32.gmra.mxu1 %v2997_v59  ;;  %v852_v42 = vld [vmem:[#allocation8 + $0xa98] sm:$0xff] }
  0x60   :  { %1046 = vmatpush.msrb.mxu0 %v674_v50  ;;  %1069 = vmatpush.msrb.mxu1 %v802_v51  ;;  %v588_v44 = vld [vmem:[#allocation8 + $0x258] sm:$0xff]  ;;  %v819_v51 = vld [vmem:[#allocation8 + $0x990] sm:$0xff] }
  0x61   :  { %1136 = vmatpush.msra.mxu2 %v691_v49  ;;  %1116 = vmatpush.msra.mxu3 %v539_v63  ;;  %v716_v45 = vld [vmem:[#allocation8 + $0x658] sm:$0xff] }
  0x62   :  { %985 = vmatmul.f32.gmra.mxu2 %v2995_v54  ;;  %1047 = vmatpush.msrb.mxu0 %v666_v55  ;;  %v844_v46 = vld [vmem:[#allocation8 + $0xa58] sm:$0xff] }
  0x63   :  { %1137 = vmatpush.msra.mxu2 %v683_v53  ;;  %1070 = vmatpush.msrb.mxu1 %v794_v56  ;;  %v580_v48 = vld [vmem:[#allocation8 + $0x218] sm:$0xff]  ;;  %v811_v56 = vld [vmem:[#allocation8 + $0x950] sm:$0xff] }
  0x64   :  { %1048 = vmatpush.msrb.mxu0 %v658_v61  ;;  %1117 = vmatpush.msra.mxu3 %v531_v5  ;;  %v708_v49 = vld [vmem:[#allocation8 + $0x618] sm:$0xff] }
  0x65   :  { %1138 = vmatpush.msra.mxu2 %v675_v58  ;;  %1071 = vmatpush.msrb.mxu1 %v786_v62  ;;  %v836_v50 = vld [vmem:[#allocation8 + $0xa18] sm:$0xff]  ;;  %v803_v62 = vld [vmem:[#allocation8 + $0x910] sm:$0xff] }
  0x66   :  { %939 = vmatmul.f32.gmra.mxu0 %v3003_v1  ;;  %1118 = vmatpush.msra.mxu3 %v523_v10  ;;  %v572_v52 = vld [vmem:[#allocation8 + $0x1d8] sm:$0xff] }
  0x67   :  { %1139 = vmatpush.msra.mxu2 %v667_v0  ;;  %1049 = vmatpush.msrb.mxu0 %v650_v2  ;;  %v700_v53 = vld [vmem:[#allocation8 + $0x5d8] sm:$0xff] }
  0x68   :  { %1072 = vmatpush.msrb.mxu1 %v778_v3  ;;  %1119 = vmatpush.msra.mxu3 %v515_v16  ;;  %v828_v55 = vld [vmem:[#allocation8 + $0x9d8] sm:$0xff]  ;;  %v795_v3 = vld [vmem:[#allocation8 + $0x8d0] sm:$0xff] }
  0x69   :  { %1140 = vmatpush.msra.mxu2 %v659_v6  ;;  %1050 = vmatpush.msrb.mxu0 %v642_v7  ;;  %v564_v57 = vld [vmem:[#allocation8 + $0x198] sm:$0xff] }
  0x6a   :  { %1073 = vmatpush.msrb.mxu1 %v770_v8  ;;  %1028 = vmatmul.f32.vlgmr.msrb.gmra.mxu3 %v2989_v14  ;;  %v692_v58 = vld [vmem:[#allocation8 + $0x598] sm:$0xff]  ;;  %v787_v8 = vld [vmem:[#allocation8 + $0x890] sm:$0xff] }
  0x6b   :  { %1141 = vmatpush.msra.mxu2 %v651_v11  ;;  %1150 = vmatpush.msra.mxu0 %v891_v12  ;;  %v820_v61 = vld [vmem:[#allocation8 + $0x998] sm:$0xff] }
  0x6c   :  { %1187 = vmatpush.msra.mxu1 %v907_v13  ;;  %2655 = vmatmul.msk.f32.vlgmr.msrb.gmra.mxu2 %vm913_vm0, %v2984_v9  ;;  %v556_v63 = vld [vmem:[#allocation8 + $0x158] sm:$0xff]  ;;  %v779_v13 = vld [vmem:[#allocation8 + $0x850] sm:$0xff] }
  0x6d   :  { %1142 = vmatpush.msra.mxu2 %v643_v17  ;;  %1151 = vmatpush.msra.mxu0 %v883_v18  ;;  %v684_v0 = vld [vmem:[#allocation8 + $0x558] sm:$0xff] }
  0x6e   :  { %1188 = vmatpush.msra.mxu1 %v899_v19  ;;  %1196 = vmatpush.msrb.mxu3 %v636_v20  ;;  %v812_v2 = vld [vmem:[#allocation8 + $0x958] sm:$0xff]  ;;  %v771_v19 = vld [vmem:[#allocation8 + $0x810] sm:$0xff] }
  0x6f   :  { %1074 = vmatmul.f32.vlgmr.msrb.gmra.mxu1 %v2982_v4  ;;  %1242 = vmatpush.msrb.mxu2 %v892_v22  ;;  %v548_v5 = vld [vmem:[#allocation8 + $0x118] sm:$0xff] }
  0x70   :  { %1219 = vmatpush.msrb.mxu1 %v764_v21  ;;  %1152 = vmatpush.msra.mxu0 %v875_v23  ;;  %v676_v6 = vld [vmem:[#allocation8 + $0x518] sm:$0xff] }
  0x71   :  { %1197 = vmatpush.msrb.mxu3 %v628_v24  ;;  %1243 = vmatpush.msrb.mxu2 %v884_v26  ;;  %v804_v7 = vld [vmem:[#allocation8 + $0x918] sm:$0xff] }
  0x72   :  { %1220 = vmatpush.msrb.mxu1 %v756_v25  ;;  %1153 = vmatpush.msra.mxu0 %v867_v27  ;;  %v540_v10 = vld [vmem:[#allocation8 + $0xd8] sm:$0xff] }
  0x73   :  { %1198 = vmatpush.msrb.mxu3 %v620_v28  ;;  %1244 = vmatpush.msrb.mxu2 %v876_v30  ;;  %v668_v11 = vld [vmem:[#allocation8 + $0x4d8] sm:$0xff]  ;;  %v637_v28 = vld [vmem:[#allocation8 + $0x3e0] sm:$0xff] }
  0x74   :  { %1221 = vmatpush.msrb.mxu1 %v748_v29  ;;  %1154 = vmatpush.msra.mxu0 %v859_v31  ;;  %v796_v12 = vld [vmem:[#allocation8 + $0x8d8] sm:$0xff]  ;;  %v765_v29 = vld [vmem:[#allocation8 + $0x7e0] sm:$0xff] }
  0x75   :  { %1199 = vmatpush.msrb.mxu3 %v612_v32  ;;  %1051 = vmatmul.f32.vlgmr.msrb.gmra.mxu0 %v2991_v15  ;;  %v532_v16 = vld [vmem:[#allocation8 + $0x98] sm:$0xff]  ;;  %v893_v30 = vld [vmem:[#allocation8 + $0xbe0] sm:$0xff] }
  0x76   :  { %1222 = vmatpush.msrb.mxu1 %v740_v33  ;;  %1245 = vmatpush.msrb.mxu2 %v868_v34  ;;  %v660_v17 = vld [vmem:[#allocation8 + $0x498] sm:$0xff]  ;;  %v909_v31 = vld [vmem:[#allocation8 + $0xc60] sm:$0xff] }
  0x77   :  { %1155 = vmatpush.msra.mxu0 %v851_v35  ;;  %1200 = vmatpush.msrb.mxu3 %v604_v36  ;;  %v788_v18 = vld [vmem:[#allocation8 + $0x898] sm:$0xff]  ;;  %v629_v32 = vld [vmem:[#allocation8 + $0x3a0] sm:$0xff] }
  0x78   :  { %1223 = vmatpush.msrb.mxu1 %v732_v37  ;;  %1246 = vmatpush.msrb.mxu2 %v860_v38  ;;  %v524_v20 = vld [vmem:[#allocation8 + $0x58] sm:$0xff]  ;;  %v757_v33 = vld [vmem:[#allocation8 + $0x7a0] sm:$0xff]  ;;  %v638_v37 = vld [vmem:[#allocation8 + $0x3e8] sm:$0xff] }
  0x79   :  { %1156 = vmatpush.msra.mxu0 %v843_v39  ;;  %2656 = vmatmul.msk.f32.gmra.mxu2 %vm913_vm0, %v3000_v60  ;;  %v652_v21 = vld [vmem:[#allocation8 + $0x458] sm:$0xff]  ;;  %v885_v34 = vld [vmem:[#allocation8 + $0xba0] sm:$0xff] }
  0x7a   :  { %1201 = vmatpush.msrb.mxu3 %v596_v40  ;;  %1224 = vmatpush.msrb.mxu1 %v724_v41  ;;  %v780_v22 = vld [vmem:[#allocation8 + $0x858] sm:$0xff]  ;;  %v901_v35 = vld [vmem:[#allocation8 + $0xc20] sm:$0xff]  ;;  %v630_v41 = vld [vmem:[#allocation8 + $0x3a8] sm:$0xff] }
  0x7b   :  { %1247 = vmatpush.msrb.mxu2 %v852_v42  ;;  %1157 = vmatpush.msra.mxu0 %v835_v43  ;;  %v908_v23 = vld [vmem:[#allocation8 + $0xc58] sm:$0xff]  ;;  %v621_v36 = vld [vmem:[#allocation8 + $0x360] sm:$0xff] }
  0x7c   :  { %1202 = vmatpush.msrb.mxu3 %v588_v44  ;;  %1225 = vmatpush.msrb.mxu1 %v716_v45  ;;  %v516_v24 = vld [vmem:[#allocation8 + $0x18] sm:$0xff]  ;;  %v749_v38 = vld [vmem:[#allocation8 + $0x760] sm:$0xff]  ;;  %v622_v45 = vld [vmem:[#allocation8 + $0x368] sm:$0xff] }
  0x7d   :  { %1248 = vmatpush.msrb.mxu2 %v844_v46  ;;  %1158 = vmatpush.msra.mxu0 %v827_v47  ;;  %v644_v25 = vld [vmem:[#allocation8 + $0x418] sm:$0xff]  ;;  %v877_v39 = vld [vmem:[#allocation8 + $0xb60] sm:$0xff] }
  0x7e   :  { %1203 = vmatpush.msrb.mxu3 %v580_v48  ;;  %1226 = vmatpush.msrb.mxu1 %v708_v49  ;;  %v772_v26 = vld [vmem:[#allocation8 + $0x818] sm:$0xff]  ;;  %v613_v40 = vld [vmem:[#allocation8 + $0x320] sm:$0xff]  ;;  %v614_v49 = vld [vmem:[#allocation8 + $0x328] sm:$0xff] }
  0x7f   :  { %1249 = vmatpush.msrb.mxu2 %v836_v50  ;;  %1159 = vmatpush.msra.mxu0 %v819_v51  ;;  %v900_v27 = vld [vmem:[#allocation8 + $0xc18] sm:$0xff]  ;;  %v741_v42 = vld [vmem:[#allocation8 + $0x720] sm:$0xff] }
  0x80   :  { %1204 = vmatpush.msrb.mxu3 %v572_v52  ;;  %1227 = vmatpush.msrb.mxu1 %v700_v53  ;;  %v869_v43 = vld [vmem:[#allocation8 + $0xb20] sm:$0xff]  ;;  %v606_v52 = vld [vmem:[#allocation8 + $0x2e8] sm:$0xff] }
  0x81   :  { %1250 = vmatpush.msrb.mxu2 %v828_v55  ;;  %1031 = vmatmul.f32.gmra.mxu3 %v3003_v1  ;;  %v605_v44 = vld [vmem:[#allocation8 + $0x2e0] sm:$0xff] }
  0x82   :  { %1160 = vmatpush.msra.mxu0 %v811_v56  ;;  %1143 = vmatmul.f32.vlgmr.msra.gmra.mxu2 %v2991_v15  ;;  %v733_v46 = vld [vmem:[#allocation8 + $0x6e0] sm:$0xff] }
  0x83   :  { %1205 = vmatpush.msrb.mxu3 %v564_v57  ;;  %1228 = vmatpush.msrb.mxu1 %v692_v58  ;;  %v861_v47 = vld [vmem:[#allocation8 + $0xae0] sm:$0xff]  ;;  %v598_v57 = vld [vmem:[#allocation8 + $0x2a8] sm:$0xff] }
  0x84   :  { %1251 = vmatpush.msrb.mxu2 %v820_v61  ;;  %1161 = vmatpush.msra.mxu0 %v803_v62  ;;  %v597_v48 = vld [vmem:[#allocation8 + $0x2a0] sm:$0xff] }
  0x85   :  { %1206 = vmatpush.msrb.mxu3 %v556_v63  ;;  %1229 = vmatpush.msrb.mxu1 %v684_v0  ;;  %v725_v50 = vld [vmem:[#allocation8 + $0x6a0] sm:$0xff]  ;;  %v590_v63 = vld [vmem:[#allocation8 + $0x268] sm:$0xff] }
  0x86   :  { %1252 = vmatpush.msrb.mxu2 %v812_v2  ;;  %1162 = vmatpush.msra.mxu0 %v795_v3  ;;  %v853_v51 = vld [vmem:[#allocation8 + $0xaa0] sm:$0xff] }
  0x87   :  { %1207 = vmatpush.msrb.mxu3 %v548_v5  ;;  %1230 = vmatpush.msrb.mxu1 %v676_v6  ;;  %v589_v53 = vld [vmem:[#allocation8 + $0x260] sm:$0xff]  ;;  %v582_v5 = vld [vmem:[#allocation8 + $0x228] sm:$0xff] }
  0x88   :  { %1253 = vmatpush.msrb.mxu2 %v804_v7  ;;  %1054 = vmatmul.f32.gmra.mxu0 %v2997_v59  ;;  %v717_v55 = vld [vmem:[#allocation8 + $0x660] sm:$0xff] }
  0x89   :  { %1077 = vmatmul.f32.gmra.mxu1 %v2995_v54  ;;  %1163 = vmatpush.msra.mxu0 %v787_v8  ;;  %v845_v56 = vld [vmem:[#allocation8 + $0xa60] sm:$0xff] }
  0x8a   :  { %1208 = vmatpush.msrb.mxu3 %v540_v10  ;;  %1231 = vmatpush.msrb.mxu1 %v668_v11  ;;  %v581_v58 = vld [vmem:[#allocation8 + $0x220] sm:$0xff]  ;;  %v574_v10 = vld [vmem:[#allocation8 + $0x1e8] sm:$0xff] }
  0x8b   :  { %1254 = vmatpush.msrb.mxu2 %v796_v12  ;;  %1164 = vmatpush.msra.mxu0 %v779_v13  ;;  %v709_v61 = vld [vmem:[#allocation8 + $0x620] sm:$0xff] }
  0x8c   :  { %1146 = vmatmul.f32.gmra.mxu2 %v2997_v59  ;;  %1209 = vmatpush.msrb.mxu3 %v532_v16  ;;  %v837_v62 = vld [vmem:[#allocation8 + $0xa20] sm:$0xff]  ;;  %v566_v16 = vld [vmem:[#allocation8 + $0x1a8] sm:$0xff] }
  0x8d   :  { %1232 = vmatpush.msrb.mxu1 %v660_v17  ;;  %1255 = vmatpush.msrb.mxu2 %v788_v18  ;;  %v573_v0 = vld [vmem:[#allocation8 + $0x1e0] sm:$0xff] }
  0x8e   :  { %1120 = vmatmul.f32.vlgmr.msra.gmra.mxu3 %v2989_v14  ;;  %1165 = vmatpush.msra.mxu0 %v771_v19  ;;  %v701_v2 = vld [vmem:[#allocation8 + $0x5e0] sm:$0xff] }
  0x8f   :  { %1210 = vmatpush.msrb.mxu3 %v524_v20  ;;  %1233 = vmatpush.msrb.mxu1 %v652_v21  ;;  %v829_v3 = vld [vmem:[#allocation8 + $0x9e0] sm:$0xff]  ;;  %v558_v20 = vld [vmem:[#allocation8 + $0x168] sm:$0xff] }
  0x90   :  { %1256 = vmatpush.msrb.mxu2 %v780_v22  ;;  %1279 = vmatpush.msrb.mxu0 %v908_v23  ;;  %v565_v6 = vld [vmem:[#allocation8 + $0x1a0] sm:$0xff] }
  0x91   :  { %1211 = vmatpush.msrb.mxu3 %v516_v24  ;;  %1234 = vmatpush.msrb.mxu1 %v644_v25  ;;  %v693_v7 = vld [vmem:[#allocation8 + $0x5a0] sm:$0xff]  ;;  %v550_v24 = vld [vmem:[#allocation8 + $0x128] sm:$0xff] }
  0x92   :  { %1257 = vmatpush.msrb.mxu2 %v772_v26  ;;  %1280 = vmatpush.msrb.mxu0 %v900_v27  ;;  %v821_v8 = vld [vmem:[#allocation8 + $0x9a0] sm:$0xff] }
  0x93   :  { %2657 = vmatmul.msk.f32.vlgmr.msra.gmra.mxu1 %vm913_vm0, %v2984_v9  ;;  %1166 = vmatmul.f32.vlgmr.msra.gmra.mxu0 %v2982_v4  ;;  %v557_v11 = vld [vmem:[#allocation8 + $0x160] sm:$0xff] }
  0x94   :  { %1288 = vmatpush.msra.mxu3 %v637_v28  ;;  %1311 = vmatpush.msra.mxu0 %v765_v29  ;;  %v685_v12 = vld [vmem:[#allocation8 + $0x560] sm:$0xff]  ;;  %v542_v28 = vld [vmem:[#allocation8 + $0xe8] sm:$0xff] }
  0x95   :  { %1334 = vmatpush.msra.mxu1 %v893_v30  ;;  %1371 = vmatpush.msra.mxu2 %v909_v31  ;;  %v813_v13 = vld [vmem:[#allocation8 + $0x960] sm:$0xff] }
  0x96   :  { %1289 = vmatpush.msra.mxu3 %v629_v32  ;;  %1312 = vmatpush.msra.mxu0 %v757_v33  ;;  %v549_v17 = vld [vmem:[#allocation8 + $0x120] sm:$0xff]  ;;  %v534_v32 = vld [vmem:[#allocation8 + $0xa8] sm:$0xff] }
  0x97   :  { %1335 = vmatpush.msra.mxu1 %v885_v34  ;;  %1372 = vmatpush.msra.mxu2 %v901_v35  ;;  %v677_v18 = vld [vmem:[#allocation8 + $0x520] sm:$0xff] }
  0x98   :  { %1123 = vmatmul.f32.gmra.mxu3 %v3003_v1  ;;  %1258 = vmatmul.f32.vlgmr.msrb.gmra.mxu2 %v2982_v4  ;;  %v805_v19 = vld [vmem:[#allocation8 + $0x920] sm:$0xff] }
  0x99   :  { %1290 = vmatpush.msra.mxu3 %v621_v36  ;;  %1380 = vmatpush.msrb.mxu2 %v638_v37  ;;  %v541_v21 = vld [vmem:[#allocation8 + $0xe0] sm:$0xff]  ;;  %v526_v36 = vld [vmem:[#allocation8 + $0x68] sm:$0xff] }
  0x9a   :  { %1313 = vmatpush.msra.mxu0 %v749_v38  ;;  %1336 = vmatpush.msra.mxu1 %v877_v39  ;;  %v669_v22 = vld [vmem:[#allocation8 + $0x4e0] sm:$0xff]  ;;  %v766_v37 = vld [vmem:[#allocation8 + $0x7e8] sm:$0xff] }
  0x9b   :  { %1291 = vmatpush.msra.mxu3 %v613_v40  ;;  %1381 = vmatpush.msrb.mxu2 %v630_v41  ;;  %v797_v23 = vld [vmem:[#allocation8 + $0x8e0] sm:$0xff]  ;;  %v894_v38 = vld [vmem:[#allocation8 + $0xbe8] sm:$0xff] }
  0x9c   :  { %1314 = vmatpush.msra.mxu0 %v741_v42  ;;  %1337 = vmatpush.msra.mxu1 %v869_v43  ;;  %v533_v25 = vld [vmem:[#allocation8 + $0xa0] sm:$0xff]  ;;  %v910_v39 = vld [vmem:[#allocation8 + $0xc68] sm:$0xff] }
  0x9d   :  { %1292 = vmatpush.msra.mxu3 %v605_v44  ;;  %1382 = vmatpush.msrb.mxu2 %v622_v45  ;;  %v661_v26 = vld [vmem:[#allocation8 + $0x4a0] sm:$0xff]  ;;  %v518_v40 = vld [vmem:[#allocation8 + $0x28] sm:$0xff]  ;;  %v767_v44 = vld [vmem:[#allocation8 + $0x7f0] sm:$0xff] }
  0x9e   :  { %1315 = vmatpush.msra.mxu0 %v733_v46  ;;  %1338 = vmatpush.msra.mxu1 %v861_v47  ;;  %v789_v27 = vld [vmem:[#allocation8 + $0x8a0] sm:$0xff]  ;;  %v758_v41 = vld [vmem:[#allocation8 + $0x7a8] sm:$0xff]  ;;  %v639_v45 = vld [vmem:[#allocation8 + $0x3f0] sm:$0xff] }
  0x9f   :  { %1293 = vmatpush.msra.mxu3 %v597_v48  ;;  %1383 = vmatpush.msrb.mxu2 %v614_v49  ;;  %v525_v29 = vld [vmem:[#allocation8 + $0x60] sm:$0xff]  ;;  %v886_v42 = vld [vmem:[#allocation8 + $0xba8] sm:$0xff]  ;;  %v759_v48 = vld [vmem:[#allocation8 + $0x7b0] sm:$0xff] }
  0xa0   :  { %2658 = vmatmul.msk.f32.gmra.mxu1 %vm913_vm0, %v3000_v60  ;;  %1316 = vmatpush.msra.mxu0 %v725_v50  ;;  %v653_v30 = vld [vmem:[#allocation8 + $0x460] sm:$0xff]  ;;  %v902_v43 = vld [vmem:[#allocation8 + $0xc28] sm:$0xff]  ;;  %v631_v49 = vld [vmem:[#allocation8 + $0x3b0] sm:$0xff] }
  0xa1   :  { %1339 = vmatpush.msra.mxu1 %v853_v51  ;;  %1384 = vmatpush.msrb.mxu2 %v606_v52  ;;  %v781_v31 = vld [vmem:[#allocation8 + $0x860] sm:$0xff]  ;;  %v750_v46 = vld [vmem:[#allocation8 + $0x768] sm:$0xff]  ;;  %v751_v52 = vld [vmem:[#allocation8 + $0x770] sm:$0xff] }
  0xa2   :  { %1212 = vmatmul.f32.vlgmr.msrb.gmra.mxu3 %v2989_v14  ;;  %1317 = vmatpush.msra.mxu0 %v717_v55  ;;  %v517_v33 = vld [vmem:[#allocation8 + $0x20] sm:$0xff]  ;;  %v878_v47 = vld [vmem:[#allocation8 + $0xb68] sm:$0xff] }
  0xa3   :  { %1294 = vmatpush.msra.mxu3 %v589_v53  ;;  %1340 = vmatpush.msra.mxu1 %v845_v56  ;;  %v645_v34 = vld [vmem:[#allocation8 + $0x420] sm:$0xff]  ;;  %v742_v50 = vld [vmem:[#allocation8 + $0x728] sm:$0xff]  ;;  %v623_v53 = vld [vmem:[#allocation8 + $0x370] sm:$0xff] }
  0xa4   :  { %1385 = vmatpush.msrb.mxu2 %v598_v57  ;;  %1169 = vmatmul.f32.gmra.mxu0 %v2995_v54  ;;  %v773_v35 = vld [vmem:[#allocation8 + $0x820] sm:$0xff]  ;;  %v870_v51 = vld [vmem:[#allocation8 + $0xb28] sm:$0xff]  ;;  %v743_v57 = vld [vmem:[#allocation8 + $0x730] sm:$0xff] }
  0xa5   :  { %1295 = vmatpush.msra.mxu3 %v581_v58  ;;  %1318 = vmatpush.msra.mxu0 %v709_v61  ;;  %v734_v55 = vld [vmem:[#allocation8 + $0x6e8] sm:$0xff]  ;;  %v607_v61 = vld [vmem:[#allocation8 + $0x2f0] sm:$0xff] }
  0xa6   :  { %1341 = vmatpush.msra.mxu1 %v837_v62  ;;  %1386 = vmatpush.msrb.mxu2 %v590_v63  ;;  %v862_v56 = vld [vmem:[#allocation8 + $0xae8] sm:$0xff]  ;;  %v735_v62 = vld [vmem:[#allocation8 + $0x6f0] sm:$0xff] }
  0xa7   :  { %1296 = vmatpush.msra.mxu3 %v573_v0  ;;  %1319 = vmatpush.msra.mxu0 %v701_v2  ;;  %v726_v58 = vld [vmem:[#allocation8 + $0x6a8] sm:$0xff]  ;;  %v599_v2 = vld [vmem:[#allocation8 + $0x2b0] sm:$0xff] }
  0xa8   :  { %1342 = vmatpush.msra.mxu1 %v829_v3  ;;  %1387 = vmatpush.msrb.mxu2 %v582_v5  ;;  %v846_v63 = vld [vmem:[#allocation8 + $0xa68] sm:$0xff]  ;;  %v727_v3 = vld [vmem:[#allocation8 + $0x6b0] sm:$0xff] }
  0xa9   :  { %1235 = vmatmul.f32.vlgmr.msrb.gmra.mxu1 %v2991_v15  ;;  %1297 = vmatpush.msra.mxu3 %v565_v6  ;;  %v718_v0 = vld [vmem:[#allocation8 + $0x668] sm:$0xff] }
  0xaa   :  { %1320 = vmatpush.msra.mxu0 %v693_v7  ;;  %1343 = vmatpush.msra.mxu1 %v821_v8  ;;  %v838_v5 = vld [vmem:[#allocation8 + $0xa28] sm:$0xff]  ;;  %v591_v7 = vld [vmem:[#allocation8 + $0x270] sm:$0xff] }
  0xab   :  { %1388 = vmatpush.msrb.mxu2 %v574_v10  ;;  %1298 = vmatpush.msra.mxu3 %v557_v11  ;;  %v710_v6 = vld [vmem:[#allocation8 + $0x628] sm:$0xff]  ;;  %v719_v8 = vld [vmem:[#allocation8 + $0x670] sm:$0xff] }
  0xac   :  { %1321 = vmatpush.msra.mxu0 %v685_v12  ;;  %1344 = vmatpush.msra.mxu1 %v813_v13  ;;  %v702_v10 = vld [vmem:[#allocation8 + $0x5e8] sm:$0xff]  ;;  %v711_v12 = vld [vmem:[#allocation8 + $0x630] sm:$0xff] }
  0xad   :  { %1389 = vmatpush.msrb.mxu2 %v566_v16  ;;  %2659 = vmatmul.msk.f32.vlgmr.msrb.gmra.mxu0 %vm913_vm0, %v2984_v9  ;;  %v830_v11 = vld [vmem:[#allocation8 + $0x9e8] sm:$0xff] }
  0xae   :  { %1299 = vmatpush.msra.mxu3 %v549_v17  ;;  %1322 = vmatpush.msra.mxu0 %v677_v18  ;;  %v694_v13 = vld [vmem:[#allocation8 + $0x5a8] sm:$0xff]  ;;  %v575_v17 = vld [vmem:[#allocation8 + $0x1f0] sm:$0xff] }
  0xaf   :  { %1345 = vmatpush.msra.mxu1 %v805_v19  ;;  %1390 = vmatpush.msrb.mxu2 %v558_v20  ;;  %v822_v16 = vld [vmem:[#allocation8 + $0x9a8] sm:$0xff]  ;;  %v703_v18 = vld [vmem:[#allocation8 + $0x5f0] sm:$0xff] }
  0xb0   :  { %1300 = vmatpush.msra.mxu3 %v541_v21  ;;  %1323 = vmatpush.msra.mxu0 %v669_v22  ;;  %v686_v19 = vld [vmem:[#allocation8 + $0x568] sm:$0xff]  ;;  %v567_v21 = vld [vmem:[#allocation8 + $0x1b0] sm:$0xff] }
  0xb1   :  { %1346 = vmatpush.msra.mxu1 %v797_v23  ;;  %1391 = vmatpush.msrb.mxu2 %v550_v24  ;;  %v814_v20 = vld [vmem:[#allocation8 + $0x968] sm:$0xff]  ;;  %v695_v22 = vld [vmem:[#allocation8 + $0x5b0] sm:$0xff] }
  0xb2   :  { %1238 = vmatmul.f32.gmra.mxu1 %v2997_v59  ;;  %1261 = vmatmul.f32.gmra.mxu2 %v2995_v54  ;;  %v678_v23 = vld [vmem:[#allocation8 + $0x528] sm:$0xff] }
  0xb3   :  { %1301 = vmatpush.msra.mxu3 %v533_v25  ;;  %1324 = vmatpush.msra.mxu0 %v661_v26  ;;  %v806_v24 = vld [vmem:[#allocation8 + $0x928] sm:$0xff]  ;;  %v687_v25 = vld [vmem:[#allocation8 + $0x570] sm:$0xff] }
  0xb4   :  { %1347 = vmatpush.msra.mxu1 %v789_v27  ;;  %1392 = vmatpush.msrb.mxu2 %v542_v28  ;;  %v670_v26 = vld [vmem:[#allocation8 + $0x4e8] sm:$0xff]  ;;  %v551_v28 = vld [vmem:[#allocation8 + $0x130] sm:$0xff] }
  0xb5   :  { %1302 = vmatpush.msra.mxu3 %v525_v29  ;;  %1325 = vmatpush.msra.mxu0 %v653_v30  ;;  %v798_v27 = vld [vmem:[#allocation8 + $0x8e8] sm:$0xff]  ;;  %v679_v29 = vld [vmem:[#allocation8 + $0x530] sm:$0xff] }
  0xb6   :  { %1348 = vmatpush.msra.mxu1 %v781_v31  ;;  %1393 = vmatpush.msrb.mxu2 %v534_v32  ;;  %v662_v30 = vld [vmem:[#allocation8 + $0x4a8] sm:$0xff]  ;;  %v543_v32 = vld [vmem:[#allocation8 + $0xf0] sm:$0xff] }
  0xb7   :  { %1303 = vmatpush.msra.mxu3 %v517_v33  ;;  %1326 = vmatpush.msra.mxu0 %v645_v34  ;;  %v790_v31 = vld [vmem:[#allocation8 + $0x8a8] sm:$0xff]  ;;  %v671_v33 = vld [vmem:[#allocation8 + $0x4f0] sm:$0xff] }
  0xb8   :  { %1349 = vmatpush.msra.mxu1 %v773_v35  ;;  %1394 = vmatpush.msrb.mxu2 %v526_v36  ;;  %v654_v34 = vld [vmem:[#allocation8 + $0x468] sm:$0xff]  ;;  %v535_v36 = vld [vmem:[#allocation8 + $0xb0] sm:$0xff] }
  0xb9   :  { %1403 = vmatpush.msrb.mxu3 %v766_v37  ;;  %1426 = vmatpush.msrb.mxu0 %v894_v38  ;;  %v782_v35 = vld [vmem:[#allocation8 + $0x868] sm:$0xff]  ;;  %v663_v37 = vld [vmem:[#allocation8 + $0x4b0] sm:$0xff] }
  0xba   :  { %1463 = vmatpush.msrb.mxu1 %v910_v39  ;;  %1215 = vmatmul.f32.gmra.mxu3 %v3003_v1  ;;  %v646_v38 = vld [vmem:[#allocation8 + $0x428] sm:$0xff] }
  0xbb   :  { %1395 = vmatpush.msrb.mxu2 %v518_v40  ;;  %1404 = vmatpush.msrb.mxu3 %v758_v41  ;;  %v774_v39 = vld [vmem:[#allocation8 + $0x828] sm:$0xff]  ;;  %v655_v40 = vld [vmem:[#allocation8 + $0x470] sm:$0xff] }
  0xbc   :  { %1427 = vmatpush.msrb.mxu0 %v886_v42  ;;  %1464 = vmatpush.msrb.mxu1 %v902_v43  ;;  %v911_v41 = vld [vmem:[#allocation8 + $0xc70] sm:$0xff] }
  0xbd   :  { %2661 = vmatmul.msk.f32.vlgmr.msra.gmra.mxu2 %vm913_vm0, %v2984_v9  ;;  %1350 = vmatmul.f32.vlgmr.msra.gmra.mxu1 %v2982_v4  ;;  %v615_v9 = vld [vmem:[#allocation8 + $0x330] sm:$0xff]  ;;  %v854_v4 = vld [vmem:[#allocation8 + $0xaa8] sm:$0xff] }
  0xbe   :  { %1495 = vmatpush.msra.mxu2 %v767_v44  ;;  %1472 = vmatpush.msra.mxu1 %v639_v45  ;;  %v647_v42 = vld [vmem:[#allocation8 + $0x430] sm:$0xff]  ;;  %v640_v45 = vld [vmem:[#allocation8 + $0x3f8] sm:$0xff] }
  0xbf   :  { %1405 = vmatpush.msrb.mxu3 %v750_v46  ;;  %1428 = vmatpush.msrb.mxu0 %v878_v47  ;;  %v887_v43 = vld [vmem:[#allocation8 + $0xbb0] sm:$0xff]  ;;  %v768_v46 = vld [vmem:[#allocation8 + $0x7f8] sm:$0xff] }
  0xc0   :  { %1496 = vmatpush.msra.mxu2 %v759_v48  ;;  %1473 = vmatpush.msra.mxu1 %v631_v49  ;;  %v903_v44 = vld [vmem:[#allocation8 + $0xc30] sm:$0xff]  ;;  %v896_v47 = vld [vmem:[#allocation8 + $0xbf8] sm:$0xff]  ;;  %v3048_v48 = vld [vmem:[#allocation5] sm:$0xff] }
  0xc1   :  { %1406 = vmatpush.msrb.mxu3 %v742_v50  ;;  %1429 = vmatpush.msrb.mxu0 %v870_v51  ;;  %v879_v49 = vld [vmem:[#allocation8 + $0xb70] sm:$0xff]  ;;  %v632_v50 = vld [vmem:[#allocation8 + $0x3b8] sm:$0xff] }
  0xc2   :  { %1497 = vmatpush.msra.mxu2 %v751_v52  ;;  %1474 = vmatpush.msra.mxu1 %v623_v53  ;;  %v3054_v51 = vld [vmem:[#allocation5 + $0x18] sm:$0xff] }
  0xc3   :  { %2660 = vmatmul.msk.f32.gmra.mxu0 %vm913_vm0, %v3000_v60  ;;  %1407 = vmatpush.msrb.mxu3 %v734_v55  ;;  %v760_v52 = vld [vmem:[#allocation8 + $0x7b8] sm:$0xff]  ;;  %v871_v55 = vld [vmem:[#allocation8 + $0xb30] sm:$0xff] }
  0xc4   :  { %1430 = vmatpush.msrb.mxu0 %v862_v56  ;;  %1475 = vmatpush.msra.mxu1 %v615_v9  ;;  %v888_v53 = vld [vmem:[#allocation8 + $0xbb8] sm:$0xff] }
  0xc5   :  { %1498 = vmatpush.msra.mxu2 %v743_v57  ;;  %1304 = vmatmul.f32.vlgmr.msra.gmra.mxu3 %v2989_v14  ;;  %v583_v14 = vld [vmem:[#allocation8 + $0x230] sm:$0xff]  ;;  %v624_v56 = vld [vmem:[#allocation8 + $0x378] sm:$0xff] }
  0xc6   :  { %1431 = vmatpush.msrb.mxu0 %v854_v4  ;;  %1408 = vmatpush.msrb.mxu3 %v726_v58  ;;  %v752_v9 = vld [vmem:[#allocation8 + $0x778] sm:$0xff]  ;;  %v863_v58 = vld [vmem:[#allocation8 + $0xaf0] sm:$0xff] }
  0xc7   :  { %1476 = vmatpush.msra.mxu1 %v607_v61  ;;  %1499 = vmatpush.msra.mxu2 %v735_v62  ;;  %v880_v57 = vld [vmem:[#allocation8 + $0xb78] sm:$0xff] }
  0xc8   :  { %1432 = vmatpush.msrb.mxu0 %v846_v63  ;;  %1409 = vmatpush.msrb.mxu3 %v718_v0  ;;  %v616_v4 = vld [vmem:[#allocation8 + $0x338] sm:$0xff]  ;;  %v3058_v0 = vld [vmem:[#allocation5 + $0x8] sm:$0xff] }
  0xc9   :  { %1477 = vmatpush.msra.mxu1 %v599_v2  ;;  %1500 = vmatpush.msra.mxu2 %v727_v3  ;;  %v744_v61 = vld [vmem:[#allocation8 + $0x738] sm:$0xff]  ;;  %v855_v2 = vld [vmem:[#allocation8 + $0xab0] sm:$0xff] }
  0xca   :  { %1433 = vmatpush.msrb.mxu0 %v838_v5  ;;  %1410 = vmatpush.msrb.mxu3 %v710_v6  ;;  %v872_v62 = vld [vmem:[#allocation8 + $0xb38] sm:$0xff] }
  0xcb   :  { %1478 = vmatpush.msra.mxu1 %v591_v7  ;;  %1501 = vmatpush.msra.mxu2 %v719_v8  ;;  %v608_v63 = vld [vmem:[#allocation8 + $0x2f8] sm:$0xff]  ;;  %v847_v7 = vld [vmem:[#allocation8 + $0xa70] sm:$0xff] }
  0xcc   :  { %1327 = vmatmul.f32.vlgmr.msra.gmra.mxu0 %v2991_v15  ;;  %1411 = vmatpush.msrb.mxu3 %v702_v10  ;;  %v559_v15 = vld [vmem:[#allocation8 + $0x170] sm:$0xff]  ;;  %v736_v3 = vld [vmem:[#allocation8 + $0x6f8] sm:$0xff] }
  0xcd   :  { %1434 = vmatpush.msrb.mxu0 %v830_v11  ;;  %1479 = vmatpush.msra.mxu1 %v583_v14  ;;  %v864_v5 = vld [vmem:[#allocation8 + $0xaf8] sm:$0xff]  ;;  %v839_v11 = vld [vmem:[#allocation8 + $0xa30] sm:$0xff] }
  0xce   :  { %1502 = vmatpush.msra.mxu2 %v711_v12  ;;  %1412 = vmatpush.msrb.mxu3 %v694_v13  ;;  %v600_v6 = vld [vmem:[#allocation8 + $0x2b8] sm:$0xff]  ;;  %v3061_v12 = vld [vmem:[#allocation5 + $0x20] sm:$0xff] }
  0xcf   :  { %1435 = vmatpush.msrb.mxu0 %v822_v16  ;;  %1480 = vmatpush.msra.mxu1 %v575_v17  ;;  %v728_v8 = vld [vmem:[#allocation8 + $0x6b8] sm:$0xff]  ;;  %v831_v17 = vld [vmem:[#allocation8 + $0x9f0] sm:$0xff] }
  0xd0   :  { %1503 = vmatpush.msra.mxu2 %v703_v18  ;;  %1413 = vmatpush.msrb.mxu3 %v686_v19  ;;  %v856_v10 = vld [vmem:[#allocation8 + $0xab8] sm:$0xff] }
  0xd1   :  { %1436 = vmatpush.msrb.mxu0 %v814_v20  ;;  %1481 = vmatpush.msra.mxu1 %v567_v21  ;;  %v592_v14 = vld [vmem:[#allocation8 + $0x278] sm:$0xff]  ;;  %v823_v21 = vld [vmem:[#allocation8 + $0x9b0] sm:$0xff] }
  0xd2   :  { %1504 = vmatpush.msra.mxu2 %v695_v22  ;;  %1414 = vmatpush.msrb.mxu3 %v678_v23  ;;  %v720_v13 = vld [vmem:[#allocation8 + $0x678] sm:$0xff] }
  0xd3   :  { %1437 = vmatpush.msrb.mxu0 %v806_v24  ;;  %1482 = vmatpush.msra.mxu1 %v559_v15  ;;  %v848_v16 = vld [vmem:[#allocation8 + $0xa78] sm:$0xff]  ;;  %v815_v15 = vld [vmem:[#allocation8 + $0x970] sm:$0xff] }
  0xd4   :  { %1505 = vmatpush.msra.mxu2 %v687_v25  ;;  %1415 = vmatpush.msrb.mxu3 %v670_v26  ;;  %v584_v18 = vld [vmem:[#allocation8 + $0x238] sm:$0xff] }
  0xd5   :  { %1438 = vmatpush.msrb.mxu0 %v798_v27  ;;  %1483 = vmatpush.msra.mxu1 %v551_v28  ;;  %v712_v19 = vld [vmem:[#allocation8 + $0x638] sm:$0xff]  ;;  %v807_v28 = vld [vmem:[#allocation8 + $0x930] sm:$0xff] }
  0xd6   :  { %1506 = vmatpush.msra.mxu2 %v679_v29  ;;  %1330 = vmatmul.f32.gmra.mxu0 %v2997_v59  ;;  %v527_v59 = vld [vmem:[#allocation8 + $0x70] sm:$0xff]  ;;  %v840_v20 = vld [vmem:[#allocation8 + $0xa38] sm:$0xff] }
  0xd7   :  { %1353 = vmatmul.f32.gmra.mxu1 %v2995_v54  ;;  %2662 = vmatmul.msk.f32.gmra.mxu2 %vm913_vm0, %v3000_v60  ;;  %v895_v54 = vld [vmem:[#allocation8 + $0xbf0] sm:$0xff]  ;;  %v576_v22 = vld [vmem:[#allocation8 + $0x1f8] sm:$0xff] }
  0xd8   :  { %1416 = vmatpush.msrb.mxu3 %v662_v30  ;;  %1439 = vmatpush.msrb.mxu0 %v790_v31  ;;  %v519_v60 = vld [vmem:[#allocation8 + $0x30] sm:$0xff]  ;;  %v704_v23 = vld [vmem:[#allocation8 + $0x5f8] sm:$0xff] }
  0xd9   :  { %1484 = vmatpush.msra.mxu1 %v543_v32  ;;  %1507 = vmatpush.msra.mxu2 %v671_v33  ;;  %v832_v24 = vld [vmem:[#allocation8 + $0x9f8] sm:$0xff]  ;;  %v799_v32 = vld [vmem:[#allocation8 + $0x8f0] sm:$0xff] }
  0xda   :  { %1417 = vmatpush.msrb.mxu3 %v654_v34  ;;  %1440 = vmatpush.msrb.mxu0 %v782_v35  ;;  %v568_v25 = vld [vmem:[#allocation8 + $0x1b8] sm:$0xff] }
  0xdb   :  { %1485 = vmatpush.msra.mxu1 %v535_v36  ;;  %1508 = vmatpush.msra.mxu2 %v663_v37  ;;  %v696_v26 = vld [vmem:[#allocation8 + $0x5b8] sm:$0xff]  ;;  %v3065_v36 = vld [vmem:[#allocation5 + $0x28] sm:$0xff]  ;;  %v791_v37 = vld [vmem:[#allocation8 + $0x8b0] sm:$0xff] }
  0xdc   :  { %1418 = vmatpush.msrb.mxu3 %v646_v38  ;;  %1441 = vmatpush.msrb.mxu0 %v774_v39  ;;  %v824_v27 = vld [vmem:[#allocation8 + $0x9b8] sm:$0xff] }
  0xdd   :  { %1307 = vmatmul.f32.gmra.mxu3 %v3003_v1  ;;  %1486 = vmatpush.msra.mxu1 %v527_v59  ;;  %v3051_v1 = vld [vmem:[#allocation5 + $0x10] sm:$0xff]  ;;  %v560_v29 = vld [vmem:[#allocation8 + $0x178] sm:$0xff] }
  0xde   :  { %1509 = vmatpush.msra.mxu2 %v655_v40  ;;  %1518 = vmatpush.msra.mxu3 %v895_v54  ;;  %v688_v30 = vld [vmem:[#allocation8 + $0x578] sm:$0xff]  ;;  %v3068_v40 = vld [vmem:[#allocation5 + $0x30] sm:$0xff] }
  0xdf   :  { %1555 = vmatpush.msra.mxu0 %v911_v41  ;;  %1487 = vmatpush.msra.mxu1 %v519_v60  ;;  %v816_v31 = vld [vmem:[#allocation8 + $0x978] sm:$0xff]  ;;  %v783_v41 = vld [vmem:[#allocation8 + $0x870] sm:$0xff] }
  0xe0   :  { %1510 = vmatpush.msra.mxu2 %v647_v42  ;;  %1519 = vmatpush.msra.mxu3 %v887_v43  ;;  %v552_v33 = vld [vmem:[#allocation8 + $0x138] sm:$0xff] }
  0xe1   :  { %1556 = vmatpush.msra.mxu0 %v903_v44  ;;  %1396 = vmatmul.f32.vlgmr.msrb.gmra.mxu2 %v3048_v48  ;;  %v680_v34 = vld [vmem:[#allocation8 + $0x538] sm:$0xff]  ;;  %v775_v44 = vld [vmem:[#allocation8 + $0x830] sm:$0xff] }
  0xe2   :  { %1442 = vmatmul.f32.vlgmr.msrb.gmra.mxu0 %v3051_v1  ;;  %2663 = vmatmul.msk.f32.vlgmr.msrb.gmra.mxu1 %vm913_vm0, %v3054_v51  ;;  %v808_v35 = vld [vmem:[#allocation8 + $0x938] sm:$0xff] }
  0xe3   :  { %1564 = vmatpush.msrb.mxu0 %v640_v45  ;;  %1587 = vmatpush.msrb.mxu1 %v768_v46  ;;  %v544_v38 = vld [vmem:[#allocation8 + $0xf8] sm:$0xff] }
  0xe4   :  { %1610 = vmatpush.msrb.mxu2 %v896_v47  ;;  %1520 = vmatpush.msra.mxu3 %v879_v49  ;;  %v672_v39 = vld [vmem:[#allocation8 + $0x4f8] sm:$0xff]  ;;  %v3076_v47 = vpop.f32.mrf.mxu3 }
  0xe5   :  { %1565 = vmatpush.msrb.mxu0 %v632_v50  ;;  %1588 = vmatpush.msrb.mxu1 %v760_v52  ;;  %v800_v59 = vld [vmem:[#allocation8 + $0x8f8] sm:$0xff]  ;;  %v3078_v52 = vpop.f32.mrf.mxu1 }
  0xe6   :  { %1611 = vmatpush.msrb.mxu2 %v888_v53  ;;  %1521 = vmatpush.msra.mxu3 %v871_v55  ;;  %v3071_v54 = vld [vmem:[#allocation5 + $0x38] sm:$0xff]  ;;  %v3080_v55 = vpop.f32.mrf.mxu2 }
  0xe7   :  { %1566 = vmatpush.msrb.mxu0 %v624_v56  ;;  %1589 = vmatpush.msrb.mxu1 %v752_v9  ;;  %v536_v60 = vld [vmem:[#allocation8 + $0xb8] sm:$0xff] }
  0xe8   :  { %1612 = vmatpush.msrb.mxu2 %v880_v57  ;;  %1419 = vmatmul.f32.vlgmr.msrb.gmra.mxu3 %v3058_v0  ;;  %v664_v42 = vld [vmem:[#allocation8 + $0x4b8] sm:$0xff]  ;;  %v3082_v57 = vpop.f32.mrf.mxu0 }
  0xe9   :  { %1567 = vmatpush.msrb.mxu0 %v616_v4  ;;  %1522 = vmatpush.msra.mxu3 %v863_v58  ;;  %v792_v43 = vld [vmem:[#allocation8 + $0x8b8] sm:$0xff]  ;;  %v233_v58 = vld [vmem:[#allocation7 + $0x3c0] sm:$0xff] }
  0xea   :  { %1590 = vmatpush.msrb.mxu1 %v744_v61  ;;  %1613 = vmatpush.msrb.mxu2 %v872_v62  ;;  %v528_v45 = vld [vmem:[#allocation8 + $0x78] sm:$0xff]  ;;  %v361_v61 = vld [vmem:[#allocation7 + $0x7c0] sm:$0xff] }
  0xeb   :  { %1568 = vmatpush.msrb.mxu0 %v608_v63  ;;  %1523 = vmatpush.msra.mxu3 %v855_v2  ;;  %v656_v46 = vld [vmem:[#allocation8 + $0x478] sm:$0xff]  ;;  %v489_v62 = vld [vmem:[#allocation7 + $0xbc0] sm:$0xff] }
  0xec   :  { %1591 = vmatpush.msrb.mxu1 %v736_v3  ;;  %1614 = vmatpush.msrb.mxu2 %v864_v5  ;;  %v784_v49 = vld [vmem:[#allocation8 + $0x878] sm:$0xff]  ;;  %v505_v63 = vld [vmem:[#allocation7 + $0xc40] sm:$0xff]  ;;  %v3088_v5 = vpop.f32.mrf.mxu3 }
  0xed   :  { %1569 = vmatpush.msrb.mxu0 %v600_v6  ;;  %1399 = vmatmul.f32.gmra.mxu2 %v3061_v12  ;;  %v912_v50 = vld [vmem:[#allocation8 + $0xc78] sm:$0xff]  ;;  %v225_v2 = vld [vmem:[#allocation7 + $0x380] sm:$0xff] }
  0xee   :  { %1524 = vmatpush.msra.mxu3 %v847_v7  ;;  %1592 = vmatpush.msrb.mxu1 %v728_v8  ;;  %v520_v53 = vld [vmem:[#allocation8 + $0x38] sm:$0xff]  ;;  %v353_v3 = vld [vmem:[#allocation7 + $0x780] sm:$0xff]  ;;  %v3090_v8 = vpop.f32.mrf.mxu1 }
  0xef   :  { %1615 = vmatpush.msrb.mxu2 %v856_v10  ;;  %1570 = vmatpush.msrb.mxu0 %v592_v14  ;;  %v648_v56 = vld [vmem:[#allocation8 + $0x438] sm:$0xff]  ;;  %v481_v6 = vld [vmem:[#allocation7 + $0xb80] sm:$0xff]  ;;  %v234_v10 = vld [vmem:[#allocation7 + $0x3c8] sm:$0xff]  ;;  %v3092_v14 = vpop.f32.mrf.mxu2 }
  0xf0   :  { %1525 = vmatpush.msra.mxu3 %v839_v11  ;;  %1593 = vmatpush.msrb.mxu1 %v720_v13  ;;  %v776_v9 = vld [vmem:[#allocation8 + $0x838] sm:$0xff]  ;;  %v497_v7 = vld [vmem:[#allocation7 + $0xc00] sm:$0xff] }
  0xf1   :  { %1616 = vmatpush.msrb.mxu2 %v848_v16  ;;  %1571 = vmatpush.msrb.mxu0 %v584_v18  ;;  %v904_v4 = vld [vmem:[#allocation8 + $0xc38] sm:$0xff]  ;;  %v217_v11 = vld [vmem:[#allocation7 + $0x340] sm:$0xff]  ;;  %v226_v18 = vld [vmem:[#allocation7 + $0x388] sm:$0xff] }
  0xf2   :  { %1526 = vmatpush.msra.mxu3 %v831_v17  ;;  %1594 = vmatpush.msrb.mxu1 %v712_v19  ;;  %v345_v13 = vld [vmem:[#allocation7 + $0x740] sm:$0xff]  ;;  %v3095_v17 = vpop.f32.mrf.mxu0 }
  0xf3   :  { %1617 = vmatpush.msrb.mxu2 %v840_v20  ;;  %1572 = vmatpush.msrb.mxu0 %v576_v22  ;;  %v473_v16 = vld [vmem:[#allocation7 + $0xb40] sm:$0xff]  ;;  %v218_v22 = vld [vmem:[#allocation7 + $0x348] sm:$0xff] }
  0xf4   :  { %1527 = vmatpush.msra.mxu3 %v823_v21  ;;  %1595 = vmatpush.msrb.mxu1 %v704_v23  ;;  %v209_v19 = vld [vmem:[#allocation7 + $0x300] sm:$0xff] }
  0xf5   :  { %1618 = vmatpush.msrb.mxu2 %v832_v24  ;;  %1573 = vmatpush.msrb.mxu0 %v568_v25  ;;  %v337_v20 = vld [vmem:[#allocation7 + $0x700] sm:$0xff] }
  0xf6   :  { %1511 = vmatmul.f32.vlgmr.msra.gmra.mxu2 %v3058_v0  ;;  %1528 = vmatpush.msra.mxu3 %v815_v15  ;;  %v465_v21 = vld [vmem:[#allocation7 + $0xb00] sm:$0xff]  ;;  %v210_v15 = vld [vmem:[#allocation7 + $0x308] sm:$0xff]  ;;  %v3098_v25 = vpop.f32.mrf.mxu1 }
  0xf7   :  { %1596 = vmatpush.msrb.mxu1 %v696_v26  ;;  %1619 = vmatpush.msrb.mxu2 %v824_v27  ;;  %v201_v23 = vld [vmem:[#allocation7 + $0x2c0] sm:$0xff]  ;;  %v3100_v27 = vpop.f32.mrf.mxu3 }
  0xf8   :  { %1529 = vmatpush.msra.mxu3 %v807_v28  ;;  %1574 = vmatpush.msrb.mxu0 %v560_v29  ;;  %v457_v24 = vld [vmem:[#allocation7 + $0xac0] sm:$0xff]  ;;  %v3102_v28 = vpop.f32.mrf.mxu2 }
  0xf9   :  { %1597 = vmatpush.msrb.mxu1 %v688_v30  ;;  %1620 = vmatpush.msrb.mxu2 %v816_v31  ;;  %v193_v26 = vld [vmem:[#allocation7 + $0x280] sm:$0xff] }
  0xfa   :  { %1422 = vmatmul.f32.gmra.mxu3 %v3065_v36  ;;  %1575 = vmatpush.msrb.mxu0 %v552_v33  ;;  %v321_v29 = vld [vmem:[#allocation7 + $0x680] sm:$0xff]  ;;  %v3104_v31 = vpop.f32.mrf.mxu0 }
  0xfb   :  { %1530 = vmatpush.msra.mxu3 %v799_v32  ;;  %1598 = vmatpush.msrb.mxu1 %v680_v34  ;;  %v449_v30 = vld [vmem:[#allocation7 + $0xa80] sm:$0xff]  ;;  %v202_v32 = vld [vmem:[#allocation7 + $0x2c8] sm:$0xff] }
  0xfc   :  { %1621 = vmatpush.msrb.mxu2 %v808_v35  ;;  %1445 = vmatmul.f32.gmra.mxu0 %v3068_v40  ;;  %v185_v33 = vld [vmem:[#allocation7 + $0x240] sm:$0xff] }
  0xfd   :  { %2664 = vmatmul.msk.f32.gmra.mxu1 %vm913_vm0, %v3071_v54  ;;  %1531 = vmatpush.msra.mxu3 %v791_v37  ;;  %v313_v34 = vld [vmem:[#allocation7 + $0x640] sm:$0xff]  ;;  %v194_v37 = vld [vmem:[#allocation7 + $0x288] sm:$0xff] }
  0xfe   :  { %1576 = vmatpush.msrb.mxu0 %v544_v38  ;;  %1599 = vmatpush.msrb.mxu1 %v672_v39  ;;  %v441_v35 = vld [vmem:[#allocation7 + $0xa40] sm:$0xff] }
  0xff   :  { %1622 = vmatpush.msrb.mxu2 %v800_v59  ;;  %1532 = vmatpush.msra.mxu3 %v783_v41  ;;  %v177_v38 = vld [vmem:[#allocation7 + $0x200] sm:$0xff]  ;;  %v186_v41 = vld [vmem:[#allocation7 + $0x248] sm:$0xff] }
 0x100   :  { %1514 = vmatmul.f32.gmra.mxu2 %v3065_v36  ;;  %1577 = vmatpush.msrb.mxu0 %v536_v60  ;;  %v305_v39 = vld [vmem:[#allocation7 + $0x600] sm:$0xff] }
 0x101   :  { %1600 = vmatpush.msrb.mxu1 %v664_v42  ;;  %1623 = vmatpush.msrb.mxu2 %v792_v43  ;;  %v433_v59 = vld [vmem:[#allocation7 + $0xa00] sm:$0xff]  ;;  %v178_v43 = vld [vmem:[#allocation7 + $0x208] sm:$0xff] }
 0x102   :  { %1533 = vmatpush.msra.mxu3 %v775_v44  ;;  %1578 = vmatpush.msrb.mxu0 %v528_v45  ;;  %v169_v60 = vld [vmem:[#allocation7 + $0x1c0] sm:$0xff] }
 0x103   :  { %1601 = vmatpush.msrb.mxu1 %v656_v46  ;;  %1624 = vmatpush.msrb.mxu2 %v784_v49  ;;  %v297_v42 = vld [vmem:[#allocation7 + $0x5c0] sm:$0xff]  ;;  %v3116_v46 = vpop.f32.mrf.mxu2 }
 0x104   :  { %1647 = vmatpush.msrb.mxu3 %v912_v50  ;;  %1579 = vmatpush.msrb.mxu0 %v520_v53  ;;  %v3114_v45 = vpop.f32.mrf.mxu3  ;;  %v161_v49 = vld [vmem:[#allocation7 + $0x180] sm:$0xff] }
 0x105   :  { %1534 = vmatmul.f32.vlgmr.msra.gmra.mxu3 %v3051_v1  ;;  %1602 = vmatpush.msrb.mxu1 %v648_v56  ;;  %v289_v50 = vld [vmem:[#allocation7 + $0x580] sm:$0xff]  ;;  %v3118_v53 = vpop.f32.mrf.mxu0 }
 0x106   :  { %1625 = vmatpush.msrb.mxu2 %v776_v9  ;;  %1648 = vmatpush.msrb.mxu3 %v904_v4  ;;  %v3110_v44 = vpop.f32.mrf.mxu1  ;;  %v417_v56 = vld [vmem:[#allocation7 + $0x980] sm:$0xff]  ;;  %v3120_v9 = vld [vmem:[#allocation2 + $0x18] sm:$0xff] }
 0x107   :  { %1488 = vmatmul.f32.vlgmr.msra.gmra.mxu1 %v3048_v48  ;;  %2665 = vmatmul.msk.f32.vlgmr.msra.gmra.mxu0 %vm913_vm0, %v3054_v51  ;;  %v153_v4 = vld [vmem:[#allocation7 + $0x140] sm:$0xff] }
 0x108   :  { %1662 = vmatpush.msra.mxu3 %v233_v58  ;;  %1685 = vmatpush.msra.mxu0 %v361_v61  ;;  %v281_v58 = vld [vmem:[#allocation7 + $0x540] sm:$0xff] }
 0x109   :  { %1708 = vmatpush.msra.mxu1 %v489_v62  ;;  %1745 = vmatpush.msra.mxu2 %v505_v63  ;;  %v409_v61 = vld [vmem:[#allocation7 + $0x940] sm:$0xff]  ;;  %v162_v62 = vld [vmem:[#allocation7 + $0x188] sm:$0xff] }
 0x10a   :  { %1663 = vmatpush.msra.mxu3 %v225_v2  ;;  %1626 = vmatmul.f32.vlgmr.msrb.gmra.mxu2 %v3051_v1  ;;  %v329_v1 = vld [vmem:[#allocation7 + $0x6c0] sm:$0xff] }
 0x10b   :  { %1686 = vmatpush.msra.mxu0 %v353_v3  ;;  %1709 = vmatpush.msra.mxu1 %v481_v6  ;;  %v145_v63 = vld [vmem:[#allocation7 + $0x100] sm:$0xff] }
 0x10c   :  { %1746 = vmatpush.msra.mxu2 %v497_v7  ;;  %1664 = vmatpush.msra.mxu3 %v217_v11  ;;  %v273_v2 = vld [vmem:[#allocation7 + $0x500] sm:$0xff]  ;;  %v146_v11 = vld [vmem:[#allocation7 + $0x108] sm:$0xff] }
 0x10d   :  { %1687 = vmatpush.msra.mxu0 %v345_v13  ;;  %1710 = vmatpush.msra.mxu1 %v473_v16  ;;  %v401_v3 = vld [vmem:[#allocation7 + $0x900] sm:$0xff] }
 0x10e   :  { %1754 = vmatpush.msrb.mxu2 %v234_v10  ;;  %1665 = vmatpush.msra.mxu3 %v209_v19  ;;  %v265_v6 = vld [vmem:[#allocation7 + $0x4c0] sm:$0xff]  ;;  %v3134_v19 = vpop.f32.mrf.mxu2 }
 0x10f   :  { %1688 = vmatpush.msra.mxu0 %v337_v20  ;;  %1711 = vmatpush.msra.mxu1 %v465_v21  ;;  %v393_v10 = vld [vmem:[#allocation7 + $0x8c0] sm:$0xff] }
 0x110   :  { %1755 = vmatpush.msrb.mxu2 %v226_v18  ;;  %1537 = vmatmul.f32.gmra.mxu3 %v3068_v40  ;;  %v3128_v13 = vpop.f32.mrf.mxu1  ;;  %v3130_v16 = vpop.f32.mrf.mxu0  ;;  %v129_v18 = vld [vmem:[#allocation7 + $0x80] sm:$0xff] }
 0x111   :  { %1666 = vmatpush.msra.mxu3 %v201_v23  ;;  %1689 = vmatpush.msra.mxu0 %v329_v1  ;;  %v3126_v7 = vpop.f32.mrf.mxu3  ;;  %v257_v20 = vld [vmem:[#allocation7 + $0x480] sm:$0xff]  ;;  %v138_v1 = vld [vmem:[#allocation7 + $0xc8] sm:$0xff] }
 0x112   :  { %1756 = vmatpush.msrb.mxu2 %v218_v22  ;;  %1712 = vmatpush.msra.mxu1 %v457_v24  ;;  %v385_v21 = vld [vmem:[#allocation7 + $0x880] sm:$0xff]  ;;  %v3136_v22 = vld [vmem:[#allocation2 + $0x38] sm:$0xff] }
 0x113   :  { %1491 = vmatmul.f32.gmra.mxu1 %v3061_v12  ;;  %2666 = vmatmul.msk.f32.gmra.mxu0 %vm913_vm0, %v3071_v54  ;;  %v121_v23 = vld [vmem:[#allocation7 + $0x40] sm:$0xff] }
 0x114   :  { %1757 = vmatpush.msrb.mxu2 %v210_v15  ;;  %1667 = vmatpush.msra.mxu3 %v193_v26  ;;  %v249_v24 = vld [vmem:[#allocation7 + $0x440] sm:$0xff]  ;;  %v130_v26 = vld [vmem:[#allocation7 + $0x88] sm:$0xff] }
 0x115   :  { %1629 = vmatmul.f32.gmra.mxu2 %v3068_v40  ;;  %1690 = vmatpush.msra.mxu0 %v321_v29  ;;  %v425_v40 = vld [vmem:[#allocation7 + $0x9c0] sm:$0xff] }
 0x116   :  { %1713 = vmatpush.msra.mxu1 %v449_v30  ;;  %1758 = vmatpush.msrb.mxu2 %v202_v32  ;;  %v113_v15 = vld [vmem:[#allocation7] sm:$0xff] }
 0x117   :  { %1668 = vmatpush.msra.mxu3 %v185_v33  ;;  %1691 = vmatpush.msra.mxu0 %v313_v34  ;;  %v241_v29 = vld [vmem:[#allocation7 + $0x400] sm:$0xff]  ;;  %v362_v33 = vld [vmem:[#allocation7 + $0x7c8] sm:$0xff] }
 0x118   :  { %1714 = vmatpush.msra.mxu1 %v441_v35  ;;  %1759 = vmatpush.msrb.mxu2 %v194_v37  ;;  %v369_v30 = vld [vmem:[#allocation7 + $0x800] sm:$0xff]  ;;  %v490_v34 = vld [vmem:[#allocation7 + $0xbc8] sm:$0xff] }
 0x119   :  { %1669 = vmatpush.msra.mxu3 %v177_v38  ;;  %1692 = vmatpush.msra.mxu0 %v305_v39  ;;  %v3141_v32 = vld [vmem:[#allocation2] sm:$0xff]  ;;  %v506_v37 = vld [vmem:[#allocation7 + $0xc48] sm:$0xff] }
 0x11a   :  { %1715 = vmatpush.msra.mxu1 %v433_v59  ;;  %2667 = vmatmul.msk.f32.vlgmr.msrb.gmra.mxu3 %vm913_vm0, %v3054_v51  ;;  %v170_v51 = vld [vmem:[#allocation7 + $0x1c8] sm:$0xff] }
 0x11b   :  { %1760 = vmatpush.msrb.mxu2 %v186_v41  ;;  %1670 = vmatpush.msra.mxu3 %v169_v60  ;;  %v3143_v35 = vpop.f32.mrf.mxu3  ;;  %v114_v38 = vld [vmem:[#allocation7 + $0x8] sm:$0xff]  ;;  %v3151_v41 = vld [vmem:[#allocation2 + $0x10] sm:$0xff] }
 0x11c   :  { %1693 = vmatpush.msra.mxu0 %v297_v42  ;;  %1716 = vmatpush.msra.mxu1 %v425_v40  ;;  %v354_v60 = vld [vmem:[#allocation7 + $0x788] sm:$0xff]  ;;  %v3153_v42 = vpop.f32.mrf.mxu2 }
 0x11d   :  { %1761 = vmatpush.msrb.mxu2 %v178_v43  ;;  %1603 = vmatmul.f32.vlgmr.msrb.gmra.mxu1 %v3058_v0  ;;  %v154_v0 = vld [vmem:[#allocation7 + $0x148] sm:$0xff]  ;;  %v3146_v39 = vpop.f32.mrf.mxu1 }
 0x11e   :  { %1580 = vmatmul.f32.vlgmr.msrb.gmra.mxu0 %v3048_v48  ;;  %1671 = vmatpush.msra.mxu3 %v161_v49  ;;  %v137_v48 = vld [vmem:[#allocation7 + $0xc0] sm:$0xff]  ;;  %v482_v40 = vld [vmem:[#allocation7 + $0xb88] sm:$0xff]  ;;  %v363_v49 = vld [vmem:[#allocation7 + $0x7d0] sm:$0xff] }
 0x11f   :  { %1694 = vmatpush.msra.mxu0 %v289_v50  ;;  %1717 = vmatpush.msra.mxu1 %v417_v56  ;;  %v498_v43 = vld [vmem:[#allocation7 + $0xc08] sm:$0xff] }
 0x120   :  { %2669 = vmatmul.msk.f32.vlgmr.msra.gmra.mxu2 %vm913_vm0, %v3120_v9  ;;  %1672 = vmatpush.msra.mxu3 %v153_v4  ;;  %v346_v50 = vld [vmem:[#allocation7 + $0x748] sm:$0xff]  ;;  %v355_v4 = vld [vmem:[#allocation7 + $0x790] sm:$0xff] }
 0x121   :  { %1762 = vmatpush.msrb.mxu2 %v170_v51  ;;  %1695 = vmatpush.msra.mxu0 %v281_v58  ;;  %v3148_v59 = vpop.f32.mrf.mxu0  ;;  %v474_v56 = vld [vmem:[#allocation7 + $0xb48] sm:$0xff]  ;;  %v227_v51 = vld [vmem:[#allocation7 + $0x390] sm:$0xff] }
 0x122   :  { %1718 = vmatpush.msra.mxu1 %v409_v61  ;;  %1673 = vmatpush.msra.mxu3 %v145_v63  ;;  %v338_v58 = vld [vmem:[#allocation7 + $0x708] sm:$0xff]  ;;  %v347_v63 = vld [vmem:[#allocation7 + $0x750] sm:$0xff] }
 0x123   :  { %1763 = vmatpush.msrb.mxu2 %v162_v62  ;;  %1696 = vmatpush.msra.mxu0 %v273_v2  ;;  %v466_v61 = vld [vmem:[#allocation7 + $0xb08] sm:$0xff]  ;;  %v219_v62 = vld [vmem:[#allocation7 + $0x350] sm:$0xff]  ;;  %v3157_v2 = vld [vmem:[#allocation2 + $0x20] sm:$0xff] }
 0x124   :  { %1719 = vmatpush.msra.mxu1 %v401_v3  ;;  %2668 = vmatmul.msk.f32.gmra.mxu3 %vm913_vm0, %v3071_v54  ;;  %v377_v54 = vld [vmem:[#allocation7 + $0x840] sm:$0xff]  ;;  %v3159_v3 = vld [vmem:[#allocation2 + $0x8] sm:$0xff] }
 0x125   :  { %1764 = vmatpush.msrb.mxu2 %v154_v0  ;;  %1674 = vmatpush.msra.mxu3 %v137_v48  ;;  %v330_v0 = vld [vmem:[#allocation7 + $0x6c8] sm:$0xff]  ;;  %v3161_v48 = vpop.f32.mrf.mxu3 }
 0x126   :  { %1697 = vmatpush.msra.mxu0 %v265_v6  ;;  %1720 = vmatpush.msra.mxu1 %v393_v10  ;;  %v458_v6 = vld [vmem:[#allocation7 + $0xac8] sm:$0xff]  ;;  %v211_v10 = vld [vmem:[#allocation7 + $0x310] sm:$0xff] }
 0x127   :  { %1765 = vmatpush.msrb.mxu2 %v146_v11  ;;  %1606 = vmatmul.f32.gmra.mxu1 %v3065_v36  ;;  %v122_v36 = vld [vmem:[#allocation7 + $0x48] sm:$0xff]  ;;  %v3163_v11 = vpop.f32.mrf.mxu1 }
 0x128   :  { %1675 = vmatpush.msra.mxu3 %v129_v18  ;;  %1698 = vmatpush.msra.mxu0 %v257_v20  ;;  %v339_v20 = vld [vmem:[#allocation7 + $0x710] sm:$0xff] }
 0x129   :  { %1721 = vmatpush.msra.mxu1 %v385_v21  ;;  %2670 = vmatmul.msk.f32.gmra.mxu2 %vm913_vm0, %v3136_v22  ;;  %v3168_v21 = vld [vmem:[#allocation2 + $0x30] sm:$0xff] }
 0x12a   :  { %1676 = vmatpush.msra.mxu3 %v121_v23  ;;  %1766 = vmatpush.msrb.mxu2 %v138_v1  ;;  %v3165_v18 = vpop.f32.mrf.mxu0  ;;  %v3170_v23 = vpop.f32.mrf.mxu2  ;;  %v322_v1 = vld [vmem:[#allocation7 + $0x688] sm:$0xff] }
 0x12b   :  { %1699 = vmatpush.msra.mxu0 %v249_v24  ;;  %1722 = vmatpush.msra.mxu1 %v377_v54  ;;  %v450_v24 = vld [vmem:[#allocation7 + $0xa88] sm:$0xff]  ;;  %v203_v54 = vld [vmem:[#allocation7 + $0x2d0] sm:$0xff] }
 0x12c   :  { %1677 = vmatpush.msra.mxu3 %v113_v15  ;;  %1767 = vmatpush.msrb.mxu2 %v130_v26  ;;  %v331_v15 = vld [vmem:[#allocation7 + $0x6d0] sm:$0xff]  ;;  %v314_v26 = vld [vmem:[#allocation7 + $0x648] sm:$0xff] }
 0x12d   :  { %1700 = vmatpush.msra.mxu0 %v241_v29  ;;  %1723 = vmatpush.msra.mxu1 %v369_v30  ;;  %v442_v29 = vld [vmem:[#allocation7 + $0xa48] sm:$0xff]  ;;  %v195_v30 = vld [vmem:[#allocation7 + $0x290] sm:$0xff] }
 0x12e   :  { %1583 = vmatmul.f32.gmra.mxu0 %v3061_v12  ;;  %1678 = vmatmul.f32.vlgmr.msra.gmra.mxu3 %v3141_v32  ;;  %v235_v12 = vld [vmem:[#allocation7 + $0x3d0] sm:$0xff] }
 0x12f   :  { %1768 = vmatpush.msrb.mxu2 %v122_v36  ;;  %1777 = vmatpush.msrb.mxu3 %v362_v33  ;;  %v323_v36 = vld [vmem:[#allocation7 + $0x690] sm:$0xff]  ;;  %v306_v33 = vld [vmem:[#allocation7 + $0x608] sm:$0xff] }
 0x130   :  { %1800 = vmatpush.msrb.mxu0 %v490_v34  ;;  %1837 = vmatpush.msrb.mxu1 %v506_v37  ;;  %v434_v34 = vld [vmem:[#allocation7 + $0xa08] sm:$0xff]  ;;  %v187_v37 = vld [vmem:[#allocation7 + $0x250] sm:$0xff] }
 0x131   :  { %1769 = vmatpush.msrb.mxu2 %v114_v38  ;;  %1724 = vmatmul.f32.vlgmr.msra.gmra.mxu1 %v3151_v41 }
 0x132   :  { %1778 = vmatpush.msrb.mxu3 %v354_v60  ;;  %1801 = vmatpush.msrb.mxu0 %v482_v40  ;;  %v315_v60 = vld [vmem:[#allocation7 + $0x650] sm:$0xff]  ;;  %v3177_v40 = vld [vmem:[#allocation2 + $0x28] sm:$0xff] }
 0x133   :  { %1838 = vmatpush.msrb.mxu1 %v498_v43  ;;  %1770 = vmatmul.f32.vlgmr.msrb.gmra.mxu2 %v3141_v32 }
 0x134   :  { %1869 = vmatpush.msra.mxu2 %v363_v49  ;;  %1779 = vmatpush.msrb.mxu3 %v346_v50  ;;  %v298_v49 = vld [vmem:[#allocation7 + $0x5c8] sm:$0xff] }
 0x135   :  { %1846 = vmatpush.msra.mxu1 %v235_v12  ;;  %1802 = vmatpush.msrb.mxu0 %v474_v56  ;;  %v3181_v12 = vpop.f32.mrf.mxu1  ;;  %v426_v50 = vld [vmem:[#allocation7 + $0x9c8] sm:$0xff]  ;;  %v3183_v56 = vpop.f32.mrf.mxu2 }
 0x136   :  { %1870 = vmatpush.msra.mxu2 %v355_v4  ;;  %1780 = vmatpush.msrb.mxu3 %v338_v58  ;;  %v307_v4 = vld [vmem:[#allocation7 + $0x610] sm:$0xff]  ;;  %v290_v58 = vld [vmem:[#allocation7 + $0x588] sm:$0xff] }
 0x137   :  { %1847 = vmatpush.msra.mxu1 %v227_v51  ;;  %1803 = vmatpush.msrb.mxu0 %v466_v61  ;;  %v179_v51 = vld [vmem:[#allocation7 + $0x210] sm:$0xff]  ;;  %v418_v61 = vld [vmem:[#allocation7 + $0x988] sm:$0xff] }
 0x138   :  { %1871 = vmatpush.msra.mxu2 %v347_v63  ;;  %1681 = vmatmul.f32.gmra.mxu3 %v3157_v2  ;;  %v171_v63 = vld [vmem:[#allocation7 + $0x1d0] sm:$0xff] }
 0x139   :  { %1848 = vmatpush.msra.mxu1 %v219_v62  ;;  %1701 = vmatmul.f32.vlgmr.msra.gmra.mxu0 %v3159_v3  ;;  %v299_v62 = vld [vmem:[#allocation7 + $0x5d0] sm:$0xff] }
 0x13a   :  { %1781 = vmatpush.msrb.mxu3 %v330_v0  ;;  %1804 = vmatpush.msrb.mxu0 %v458_v6  ;;  %v282_v0 = vld [vmem:[#allocation7 + $0x548] sm:$0xff] }
 0x13b   :  { %1849 = vmatpush.msra.mxu1 %v211_v10  ;;  %1872 = vmatpush.msra.mxu2 %v339_v20  ;;  %v410_v6 = vld [vmem:[#allocation7 + $0x948] sm:$0xff]  ;;  %v291_v10 = vld [vmem:[#allocation7 + $0x590] sm:$0xff] }
 0x13c   :  { %1727 = vmatmul.f32.gmra.mxu1 %v3168_v21  ;;  %1782 = vmatpush.msrb.mxu3 %v322_v1  ;;  %v163_v20 = vld [vmem:[#allocation7 + $0x190] sm:$0xff]  ;;  %v274_v1 = vld [vmem:[#allocation7 + $0x508] sm:$0xff] }
 0x13d   :  { %1805 = vmatpush.msrb.mxu0 %v450_v24  ;;  %1773 = vmatmul.f32.gmra.mxu2 %v3157_v2  ;;  %v3175_v38 = vpop.f32.mrf.mxu3  ;;  %v402_v24 = vld [vmem:[#allocation7 + $0x908] sm:$0xff] }
 0x13e   :  { %1850 = vmatpush.msra.mxu1 %v203_v54  ;;  %1873 = vmatpush.msra.mxu2 %v331_v15  ;;  %v283_v54 = vld [vmem:[#allocation7 + $0x550] sm:$0xff] }
 0x13f   :  { %1783 = vmatpush.msrb.mxu3 %v314_v26  ;;  %1806 = vmatpush.msrb.mxu0 %v442_v29  ;;  %v155_v15 = vld [vmem:[#allocation7 + $0x150] sm:$0xff]  ;;  %v266_v26 = vld [vmem:[#allocation7 + $0x4c8] sm:$0xff] }
 0x140   :  { %1851 = vmatpush.msra.mxu1 %v195_v30  ;;  %v3179_v43 = vpop.f32.mrf.mxu0  ;;  %1874 = vmatpush.msra.mxu2 %v323_v36  ;;  %v394_v36 = vld [vmem:[#allocation7 + $0x8c8] sm:$0xff] }
 0x141   :  { %1784 = vmatpush.msrb.mxu3 %v306_v33  ;;  %1807 = vmatpush.msrb.mxu0 %v434_v34  ;;  %v275_v33 = vld [vmem:[#allocation7 + $0x510] sm:$0xff] }
 0x142   :  { %1852 = vmatpush.msra.mxu1 %v187_v37  ;;  %1875 = vmatpush.msra.mxu2 %v315_v60  ;;  %v1351_v37 = vpop.f32.mrf.mxu1  ;;  %v147_v60 = vld [vmem:[#allocation7 + $0x110] sm:$0xff] }
 0x143   :  { %1704 = vmatmul.f32.gmra.mxu0 %v3177_v40  ;;  %1785 = vmatpush.msrb.mxu3 %v298_v49  ;;  %v258_v49 = vld [vmem:[#allocation7 + $0x488] sm:$0xff] }
 0x144   :  { %1808 = vmatpush.msrb.mxu0 %v426_v50  ;;  %1853 = vmatpush.msra.mxu1 %v179_v51  ;;  %v1374_v50 = vpop.f32.mrf.mxu2  ;;  %v386_v51 = vld [vmem:[#allocation7 + $0x888] sm:$0xff] }
 0x145   :  { %1876 = vmatpush.msra.mxu2 %v307_v4  ;;  %1786 = vmatpush.msrb.mxu3 %v290_v58  ;;  %v139_v58 = vld [vmem:[#allocation7 + $0xd0] sm:$0xff] }
 0x146   :  { %1809 = vmatpush.msrb.mxu0 %v418_v61  ;;  %2671 = vmatmul.msk.f32.vlgmr.msrb.gmra.mxu1 %vm913_vm0, %v3120_v9  ;;  %v267_v61 = vld [vmem:[#allocation7 + $0x4d0] sm:$0xff] }
 0x147   :  { %1877 = vmatpush.msra.mxu2 %v299_v62  ;;  %1854 = vmatpush.msra.mxu1 %v171_v63  ;;  %v250_v62 = vld [vmem:[#allocation7 + $0x448] sm:$0xff] }
 0x148   :  { %1787 = vmatpush.msrb.mxu3 %v282_v0  ;;  %1810 = vmatpush.msrb.mxu0 %v410_v6  ;;  %v1305_v29 = vpop.f32.mrf.mxu3  ;;  %v378_v63 = vld [vmem:[#allocation7 + $0x848] sm:$0xff]  ;;  %v131_v6 = vld [vmem:[#allocation7 + $0x90] sm:$0xff] }
 0x149   :  { %1878 = vmatpush.msra.mxu2 %v291_v10  ;;  %v1328_v30 = vpop.f32.mrf.mxu0  ;;  %1855 = vmatpush.msra.mxu1 %v163_v20  ;;  %v259_v10 = vld [vmem:[#allocation7 + $0x490] sm:$0xff]  ;;  %v242_v20 = vld [vmem:[#allocation7 + $0x408] sm:$0xff] }
 0x14a   :  { %1788 = vmatpush.msrb.mxu3 %v274_v1  ;;  %v1329_v34 = vadd.f32 %v1328_v30, %v1305_v29  ;;  %1811 = vmatpush.msrb.mxu0 %v402_v24  ;;  %v370_v1 = vld [vmem:[#allocation7 + $0x808] sm:$0xff]  ;;  %v123_v24 = vld [vmem:[#allocation7 + $0x50] sm:$0xff] }
 0x14b   :  { %1879 = vmatpush.msra.mxu2 %v283_v54  ;;  %1856 = vmatpush.msra.mxu1 %v155_v15  ;;  %v251_v54 = vld [vmem:[#allocation7 + $0x450] sm:$0xff] }
 0x14c   :  { %1789 = vmatpush.msrb.mxu3 %v266_v26  ;;  %v1352_v4 = vadd.f32 %v1351_v37, %v1329_v34  ;;  %1812 = vmatpush.msrb.mxu0 %v394_v36  ;;  %v491_v15 = vld [vmem:[#allocation7 + $0xbd0] sm:$0xff]  ;;  %v236_v34 = vld [vmem:[#allocation7 + $0x3d8] sm:$0xff] }
 0x14d   :  { %1880 = vmatpush.msra.mxu2 %v275_v33  ;;  %1857 = vmatpush.msra.mxu1 %v147_v60  ;;  %v507_v26 = vld [vmem:[#allocation7 + $0xc50] sm:$0xff]  ;;  %v364_v37 = vld [vmem:[#allocation7 + $0x7d8] sm:$0xff] }
 0x14e   :  { %1790 = vmatpush.msrb.mxu3 %v258_v49  ;;  %v3188_v0 = vadd.f32 %v1374_v50, %v1352_v4  ;;  %1813 = vmatpush.msrb.mxu0 %v386_v51  ;;  %v115_v29 = vld [vmem:[#allocation7 + $0x10] sm:$0xff]  ;;  %v492_v60 = vld [vmem:[#allocation7 + $0xbd8] sm:$0xff] }
 0x14f   :  { %2672 = vmatmul.msk.f32.gmra.mxu1 %vm913_vm0, %v3136_v22  ;;  %1881 = vmatpush.msra.mxu2 %v267_v61  ;;  %v243_v30 = vld [vmem:[#allocation7 + $0x410] sm:$0xff]  ;;  %v228_v50 = vld [vmem:[#allocation7 + $0x398] sm:$0xff] }
 0x150   :  { %1858 = vmatpush.msra.mxu1 %v139_v58  ;;  %1791 = vmatpush.msrb.mxu3 %v250_v62  ;;  %v483_v36 = vld [vmem:[#allocation7 + $0xb90] sm:$0xff]  ;;  %v356_v51 = vld [vmem:[#allocation7 + $0x798] sm:$0xff] }
 0x151   :  { %1814 = vmatpush.msrb.mxu0 %v378_v63  ;;  %1882 = vmatpush.msra.mxu2 %v259_v10  ;;  %v499_v33 = vld [vmem:[#allocation7 + $0xc10] sm:$0xff]  ;;  %v484_v4 = vld [vmem:[#allocation7 + $0xb98] sm:$0xff] }
 0x152   :  { %1859 = vmatpush.msra.mxu1 %v131_v6  ;;  %1792 = vmatpush.msrb.mxu3 %v242_v20  ;;  %v475_v49 = vld [vmem:[#allocation7 + $0xb50] sm:$0xff]  ;;  %v220_v61 = vld [vmem:[#allocation7 + $0x358] sm:$0xff] }
 0x153   :  { %1815 = vmatpush.msrb.mxu0 %v370_v1  ;;  %1793 = vmatmul.f32.vlgmr.msrb.gmra.mxu3 %v3159_v3  ;;  %v467_v58 = vld [vmem:[#allocation7 + $0xb10] sm:$0xff]  ;;  %v348_v62 = vld [vmem:[#allocation7 + $0x758] sm:$0xff] }
 0x154   :  { %1860 = vmatpush.msra.mxu1 %v123_v24  ;;  %1883 = vmatpush.msra.mxu2 %v251_v54  ;;  %v476_v63 = vld [vmem:[#allocation7 + $0xb58] sm:$0xff]  ;;  %v459_v6 = vld [vmem:[#allocation7 + $0xad0] sm:$0xff] }
 0x155   :  { %1892 = vmatpush.msra.mxu3 %v491_v15  ;;  %1929 = vmatpush.msra.mxu0 %v507_v26  ;;  %v212_v10 = vld [vmem:[#allocation7 + $0x318] sm:$0xff]  ;;  %v451_v24 = vld [vmem:[#allocation7 + $0xa90] sm:$0xff] }
 0x156   :  { %1861 = vmatpush.msra.mxu1 %v115_v29  ;;  %1816 = vmatmul.f32.vlgmr.msrb.gmra.mxu0 %v3151_v41  ;;  %v340_v20 = vld [vmem:[#allocation7 + $0x718] sm:$0xff] }
 0x157   :  { %1884 = vmatpush.msra.mxu2 %v243_v30  ;;  %1893 = vmatpush.msra.mxu3 %v483_v36  ;;  %v468_v1 = vld [vmem:[#allocation7 + $0xb18] sm:$0xff]  ;;  %v443_v30 = vld [vmem:[#allocation7 + $0xa50] sm:$0xff] }
 0x158   :  { %1930 = vmatpush.msra.mxu0 %v499_v33  ;;  %1862 = vmatmul.f32.vlgmr.msra.gmra.mxu1 %v3141_v32  ;;  %v204_v54 = vld [vmem:[#allocation7 + $0x2d8] sm:$0xff]  ;;  %v1331_v33 = vpop.f32.mrf.mxu0 }
 0x159   :  { %1885 = vmatmul.f32.vlgmr.msra.gmra.mxu2 %v3159_v3  ;;  %1961 = vmatpush.msrb.mxu1 %v364_v37  ;;  %v332_v15 = vld [vmem:[#allocation7 + $0x6d8] sm:$0xff] }
 0x15a   :  { %1938 = vmatpush.msrb.mxu0 %v236_v34  ;;  %1984 = vmatpush.msrb.mxu2 %v492_v60  ;;  %v3197_v26 = vpop.f32.mrf.mxu2  ;;  %v460_v29 = vld [vmem:[#allocation7 + $0xad8] sm:$0xff] }
 0x15b   :  { %1894 = vmatpush.msra.mxu3 %v475_v49  ;;  %1962 = vmatpush.msrb.mxu1 %v356_v51  ;;  %v196_v34 = vld [vmem:[#allocation7 + $0x298] sm:$0xff]  ;;  %v1354_v51 = vpop.f32.mrf.mxu1 }
 0x15c   :  { %1939 = vmatpush.msrb.mxu0 %v228_v50  ;;  %1985 = vmatpush.msrb.mxu2 %v484_v4  ;;  %v324_v37 = vld [vmem:[#allocation7 + $0x698] sm:$0xff]  ;;  %v435_v50 = vld [vmem:[#allocation7 + $0xa10] sm:$0xff] }
 0x15d   :  { %1895 = vmatpush.msra.mxu3 %v467_v58  ;;  %1963 = vmatpush.msrb.mxu1 %v348_v62  ;;  %v452_v49 = vld [vmem:[#allocation7 + $0xa98] sm:$0xff] }
 0x15e   :  { %1940 = vmatpush.msrb.mxu0 %v220_v61  ;;  %1986 = vmatpush.msrb.mxu2 %v476_v63  ;;  %v188_v4 = vld [vmem:[#allocation7 + $0x258] sm:$0xff]  ;;  %v427_v63 = vld [vmem:[#allocation7 + $0x9d0] sm:$0xff] }
 0x15f   :  { %1796 = vmatmul.f32.gmra.mxu3 %v3177_v40  ;;  %1964 = vmatpush.msrb.mxu1 %v340_v20  ;;  %v316_v58 = vld [vmem:[#allocation7 + $0x658] sm:$0xff] }
 0x160   :  { %1896 = vmatpush.msra.mxu3 %v459_v6  ;;  %1941 = vmatpush.msrb.mxu0 %v212_v10  ;;  %v1308_v36 = vpop.f32.mrf.mxu3  ;;  %v444_v62 = vld [vmem:[#allocation7 + $0xa58] sm:$0xff] }
 0x161   :  { %1987 = vmatpush.msrb.mxu2 %v468_v1  ;;  %1819 = vmatmul.f32.gmra.mxu0 %v3168_v21  ;;  %v1332_v60 = vadd.f32 %v1331_v33, %v1308_v36  ;;  %v180_v6 = vld [vmem:[#allocation7 + $0x218] sm:$0xff]  ;;  %v419_v1 = vld [vmem:[#allocation7 + $0x990] sm:$0xff] }
 0x162   :  { %1897 = vmatpush.msra.mxu3 %v451_v24  ;;  %1865 = vmatmul.f32.gmra.mxu1 %v3157_v2  ;;  %v308_v10 = vld [vmem:[#allocation7 + $0x618] sm:$0xff] }
 0x163   :  { %1888 = vmatmul.f32.gmra.mxu2 %v3177_v40  ;;  %1942 = vmatpush.msrb.mxu0 %v204_v54  ;;  %v3202_v61 = vadd.f32 %v1354_v51, %v1332_v60  ;;  %v436_v20 = vld [vmem:[#allocation7 + $0xa18] sm:$0xff]  ;;  %v1443_v60 = vpop.f32.mrf.mxu0 }
 0x164   :  { %1965 = vmatpush.msrb.mxu1 %v332_v15  ;;  %1988 = vmatpush.msrb.mxu2 %v460_v29  ;;  %v300_v24 = vld [vmem:[#allocation7 + $0x5d8] sm:$0xff]  ;;  %v411_v29 = vld [vmem:[#allocation7 + $0x950] sm:$0xff]  ;;  %v1397_v36 = vpop.f32.mrf.mxu2 }
 0x165   :  { %1898 = vmatpush.msra.mxu3 %v443_v30  ;;  %1943 = vmatpush.msrb.mxu0 %v196_v34  ;;  %v172_v54 = vld [vmem:[#allocation7 + $0x1d8] sm:$0xff] }
 0x166   :  { %1966 = vmatpush.msrb.mxu1 %v324_v37  ;;  %1989 = vmatpush.msrb.mxu2 %v452_v49  ;;  %v428_v15 = vld [vmem:[#allocation7 + $0x9d8] sm:$0xff]  ;;  %v403_v49 = vld [vmem:[#allocation7 + $0x910] sm:$0xff] }
 0x167   :  { %1899 = vmatpush.msra.mxu3 %v435_v50  ;;  %1944 = vmatpush.msrb.mxu0 %v188_v4  ;;  %v292_v30 = vld [vmem:[#allocation7 + $0x598] sm:$0xff] }
 0x168   :  { %1967 = vmatpush.msrb.mxu1 %v316_v58  ;;  %1990 = vmatpush.msrb.mxu2 %v444_v62  ;;  %v164_v33 = vld [vmem:[#allocation7 + $0x198] sm:$0xff]  ;;  %v1466_v62 = vpop.f32.mrf.mxu1 }
 0x169   :  { %1900 = vmatpush.msra.mxu3 %v427_v63  ;;  %1945 = vmatpush.msrb.mxu0 %v180_v6  ;;  %v420_v34 = vld [vmem:[#allocation7 + $0x998] sm:$0xff]  ;;  %v395_v63 = vld [vmem:[#allocation7 + $0x8d0] sm:$0xff] }
 0x16a   :  { %1968 = vmatpush.msrb.mxu1 %v308_v10  ;;  %1991 = vmatpush.msrb.mxu2 %v436_v20  ;;  %v284_v50 = vld [vmem:[#allocation7 + $0x558] sm:$0xff] }
 0x16b   :  { %1901 = vmatpush.msra.mxu3 %v419_v1  ;;  %2673 = vmatmul.msk.f32.vlgmr.msra.gmra.mxu0 %vm913_vm0, %v3120_v9  ;;  %v1420_v37 = vpop.f32.mrf.mxu3  ;;  %v156_v4 = vld [vmem:[#allocation7 + $0x158] sm:$0xff] }
 0x16c   :  { %1969 = vmatpush.msrb.mxu1 %v300_v24  ;;  %1946 = vmatpush.msrb.mxu0 %v172_v54  ;;  %v1421_v51 = vadd.f32 %v1420_v37, %v1397_v36  ;;  %v412_v58 = vld [vmem:[#allocation7 + $0x958] sm:$0xff]  ;;  %v387_v24 = vld [vmem:[#allocation7 + $0x890] sm:$0xff] }
 0x16d   :  { %1992 = vmatpush.msrb.mxu2 %v428_v15  ;;  %1902 = vmatpush.msra.mxu3 %v411_v29  ;;  %v276_v6 = vld [vmem:[#allocation7 + $0x518] sm:$0xff]  ;;  %v379_v36 = vld [vmem:[#allocation7 + $0x850] sm:$0xff] }
 0x16e   :  { %1970 = vmatpush.msrb.mxu1 %v292_v30  ;;  %1947 = vmatpush.msrb.mxu0 %v164_v33  ;;  %v1444_v10 = vadd.f32 %v1443_v60, %v1421_v51  ;;  %v148_v20 = vld [vmem:[#allocation7 + $0x118] sm:$0xff]  ;;  %v371_v60 = vld [vmem:[#allocation7 + $0x810] sm:$0xff] }
 0x16f   :  { %1993 = vmatpush.msrb.mxu2 %v420_v34  ;;  %1903 = vmatpush.msra.mxu3 %v403_v49  ;;  %v404_v1 = vld [vmem:[#allocation7 + $0x918] sm:$0xff] }
 0x170   :  { %1971 = vmatpush.msrb.mxu1 %v284_v50  ;;  %1948 = vmatpush.msrb.mxu0 %v156_v4  ;;  %v3206_v54 = vadd.f32 %v1466_v62, %v1444_v10  ;;  %v140_v15 = vld [vmem:[#allocation7 + $0xd8] sm:$0xff] }
 0x171   :  { %1994 = vmatpush.msrb.mxu2 %v412_v58  ;;  %1904 = vmatpush.msra.mxu3 %v395_v63  ;;  %v268_v29 = vld [vmem:[#allocation7 + $0x4d8] sm:$0xff] }
 0x172   :  { %1972 = vmatpush.msrb.mxu1 %v276_v6  ;;  %1949 = vmatpush.msrb.mxu0 %v148_v20  ;;  %v396_v30 = vld [vmem:[#allocation7 + $0x8d8] sm:$0xff]  ;;  %v3213_v6 = vadd.f32 %v3197_v26, %v3202_v61  ;;  %v1400_v20 = vpop.f32.mrf.mxu2  ;;  %v229_v61 = vld [vmem:[#allocation7 + $0x3a0] sm:$0xff] }
 0x173   :  { %1995 = vmatpush.msrb.mxu2 %v404_v1  ;;  %1905 = vmatpush.msra.mxu3 %v387_v24  ;;  %v132_v33 = vld [vmem:[#allocation7 + $0x98] sm:$0xff]  ;;  %v237_v24 = vld [vmem:[#allocation7 + $0x3e0] sm:$0xff] }
 0x174   :  { %2674 = vmatmul.msk.f32.gmra.mxu0 %vm913_vm0, %v3136_v22  ;;  %v260_v34 = vld [vmem:[#allocation7 + $0x498] sm:$0xff]  ;;  %1973 = vmatpush.msrb.mxu1 %v268_v29  ;;  %v493_v29 = vld [vmem:[#allocation7 + $0xbe0] sm:$0xff] }
 0x175   :  { %1950 = vmatpush.msrb.mxu0 %v140_v15  ;;  %v388_v37 = vld [vmem:[#allocation7 + $0x898] sm:$0xff]  ;;  %1996 = vmatpush.msrb.mxu2 %v396_v30  ;;  %v365_v15 = vld [vmem:[#allocation7 + $0x7e0] sm:$0xff] }
 0x176   :  { %1906 = vmatpush.msra.mxu3 %v379_v36  ;;  %v124_v49 = vld [vmem:[#allocation7 + $0x58] sm:$0xff]  ;;  %1974 = vmatpush.msrb.mxu1 %v260_v34  ;;  %v509_v30 = vld [vmem:[#allocation7 + $0xc60] sm:$0xff] }
 0x177   :  { %1951 = vmatpush.msrb.mxu0 %v132_v33  ;;  %v252_v50 = vld [vmem:[#allocation7 + $0x458] sm:$0xff]  ;;  %1997 = vmatpush.msrb.mxu2 %v388_v37  ;;  %v357_v33 = vld [vmem:[#allocation7 + $0x7a0] sm:$0xff] }
 0x178   :  { %v380_v51 = vld [vmem:[#allocation7 + $0x858] sm:$0xff]  ;;  %1907 = vmatpush.msra.mxu3 %v371_v60  ;;  %1975 = vmatpush.msrb.mxu1 %v252_v50  ;;  %v485_v37 = vld [vmem:[#allocation7 + $0xba0] sm:$0xff] }
 0x179   :  { %v508_v4 = vld [vmem:[#allocation7 + $0xc58] sm:$0xff]  ;;  %1908 = vmatmul.f32.vlgmr.msra.gmra.mxu3 %v3151_v41  ;;  %1952 = vmatpush.msrb.mxu0 %v124_v49  ;;  %v1446_v36 = vpop.f32.mrf.mxu0  ;;  %v501_v60 = vld [vmem:[#allocation7 + $0xc20] sm:$0xff]  ;;  %v238_v49 = vld [vmem:[#allocation7 + $0x3e8] sm:$0xff] }
 0x17a   :  { %v116_v58 = vld [vmem:[#allocation7 + $0x18] sm:$0xff]  ;;  %1998 = vmatpush.msrb.mxu2 %v380_v51  ;;  %v3215_v1 = vpop.f32.mrf.mxu1  ;;  %2021 = vmatpush.msrb.mxu3 %v508_v4  ;;  %v221_v50 = vld [vmem:[#allocation7 + $0x360] sm:$0xff] }
 0x17b   :  { %v244_v62 = vld [vmem:[#allocation7 + $0x418] sm:$0xff]  ;;  %1953 = vmatpush.msrb.mxu0 %v116_v58  ;;  %v349_v4 = vld [vmem:[#allocation7 + $0x760] sm:$0xff] }
 0x17c   :  { %v372_v63 = vld [vmem:[#allocation7 + $0x818] sm:$0xff]  ;;  %1976 = vmatpush.msrb.mxu1 %v244_v62  ;;  %1954 = vmatmul.f32.vlgmr.msrb.gmra.mxu0 %v3141_v32  ;;  %v477_v58 = vld [vmem:[#allocation7 + $0xb60] sm:$0xff]  ;;  %v230_v62 = vld [vmem:[#allocation7 + $0x3a8] sm:$0xff] }
 0x17d   :  { %v500_v10 = vld [vmem:[#allocation7 + $0xc18] sm:$0xff]  ;;  %1999 = vmatpush.msrb.mxu2 %v372_v63  ;;  %v1423_v26 = vpop.f32.mrf.mxu3  ;;  %2053 = vmatpush.msra.mxu0 %v365_v15  ;;  %v213_v63 = vld [vmem:[#allocation7 + $0x320] sm:$0xff]  ;;  %v1512_v15 = vpop.f32.mrf.mxu2 }
 0x17e   :  { %2022 = vmatpush.msrb.mxu3 %v500_v10  ;;  %2000 = vmatmul.f32.vlgmr.msrb.gmra.mxu2 %v3151_v41  ;;  %v1424_v34 = vadd.f32 %v1423_v26, %v1400_v20  ;;  %v341_v10 = vld [vmem:[#allocation7 + $0x720] sm:$0xff] }
 0x17f   :  { %2076 = vmatpush.msra.mxu1 %v493_v29  ;;  %2113 = vmatpush.msra.mxu2 %v509_v30  ;;  %v469_v20 = vld [vmem:[#allocation7 + $0xb20] sm:$0xff] }
 0x180   :  { %2030 = vmatpush.msra.mxu3 %v237_v24  ;;  %1977 = vmatmul.f32.vlgmr.msrb.gmra.mxu1 %v3159_v3  ;;  %v1447_v51 = vadd.f32 %v1446_v36, %v1424_v34  ;;  %v222_v24 = vld [vmem:[#allocation7 + $0x368] sm:$0xff]  ;;  %v205_v36 = vld [vmem:[#allocation7 + $0x2e0] sm:$0xff] }
 0x181   :  { %2054 = vmatpush.msra.mxu0 %v357_v33  ;;  %2077 = vmatpush.msra.mxu1 %v485_v37  ;;  %v333_v26 = vld [vmem:[#allocation7 + $0x6e0] sm:$0xff]  ;;  %v214_v33 = vld [vmem:[#allocation7 + $0x328] sm:$0xff] }
 0x182   :  { %2031 = vmatpush.msra.mxu3 %v229_v61  ;;  %2114 = vmatpush.msra.mxu2 %v501_v60  ;;  %v461_v61 = vld [vmem:[#allocation7 + $0xae0] sm:$0xff] }
 0x183   :  { %2055 = vmatpush.msra.mxu0 %v349_v4  ;;  %2078 = vmatpush.msra.mxu1 %v477_v58  ;;  %v197_v37 = vld [vmem:[#allocation7 + $0x2a0] sm:$0xff]  ;;  %v206_v58 = vld [vmem:[#allocation7 + $0x2e8] sm:$0xff] }
 0x184   :  { %2122 = vmatpush.msrb.mxu2 %v238_v49  ;;  %2032 = vmatpush.msra.mxu3 %v221_v50  ;;  %v1489_v29 = vpop.f32.mrf.mxu1  ;;  %v3221_v34 = vpop.f32.mrf.mxu0  ;;  %v325_v49 = vld [vmem:[#allocation7 + $0x6a0] sm:$0xff] }
 0x185   :  { %1911 = vmatmul.f32.gmra.mxu3 %v3168_v21  ;;  %v1513_v30 = vadd.f32 %v1512_v15, %v1489_v29  ;;  %2056 = vmatpush.msra.mxu0 %v341_v10  ;;  %v453_v50 = vld [vmem:[#allocation7 + $0xaa0] sm:$0xff] }
 0x186   :  { %2123 = vmatpush.msrb.mxu2 %v230_v62  ;;  %2033 = vmatpush.msra.mxu3 %v213_v63  ;;  %v189_v62 = vld [vmem:[#allocation7 + $0x260] sm:$0xff] }
 0x187   :  { %2079 = vmatpush.msra.mxu1 %v469_v20  ;;  %1957 = vmatmul.f32.gmra.mxu0 %v3157_v2  ;;  %v317_v63 = vld [vmem:[#allocation7 + $0x660] sm:$0xff]  ;;  %v198_v20 = vld [vmem:[#allocation7 + $0x2a8] sm:$0xff] }
 0x188   :  { %2124 = vmatpush.msrb.mxu2 %v222_v24  ;;  %v1535_v60 = vpop.f32.mrf.mxu3  ;;  %2034 = vmatpush.msra.mxu3 %v205_v36  ;;  %v445_v10 = vld [vmem:[#allocation7 + $0xa60] sm:$0xff] }
 0x189   :  { %2003 = vmatmul.f32.gmra.mxu2 %v3168_v21  ;;  %2057 = vmatpush.msra.mxu0 %v333_v26  ;;  %v1536_v4 = vadd.f32 %v1535_v60, %v1513_v30  ;;  %v181_v24 = vld [vmem:[#allocation7 + $0x220] sm:$0xff]  ;;  %v190_v30 = vld [vmem:[#allocation7 + $0x268] sm:$0xff]  ;;  %v1515_v60 = vpop.f32.mrf.mxu2 }
 0x18a   :  { %2080 = vmatpush.msra.mxu1 %v461_v61  ;;  %2125 = vmatpush.msrb.mxu2 %v214_v33  ;;  %v309_v15 = vld [vmem:[#allocation7 + $0x620] sm:$0xff]  ;;  %v3229_v61 = vadd.f32 %v3215_v1, %v1447_v51  ;;  %v174_v1 = vld [vmem:[#allocation7 + $0x1e8] sm:$0xff] }
 0x18b   :  { %1980 = vmatmul.f32.gmra.mxu1 %v3177_v40  ;;  %2035 = vmatpush.msra.mxu3 %v197_v37  ;;  %v437_v29 = vld [vmem:[#allocation7 + $0xa20] sm:$0xff]  ;;  %v182_v37 = vld [vmem:[#allocation7 + $0x228] sm:$0xff] }
 0x18c   :  { %2058 = vmatpush.msra.mxu0 %v325_v49  ;;  %2081 = vmatpush.msra.mxu1 %v453_v50  ;;  %v173_v36 = vld [vmem:[#allocation7 + $0x1e0] sm:$0xff] }
 0x18d   :  { %2126 = vmatpush.msrb.mxu2 %v206_v58  ;;  %2036 = vmatpush.msra.mxu3 %v189_v62  ;;  %v301_v26 = vld [vmem:[#allocation7 + $0x5e0] sm:$0xff] }
 0x18e   :  { %2059 = vmatpush.msra.mxu0 %v317_v63  ;;  %2082 = vmatpush.msra.mxu1 %v445_v10  ;;  %v429_v33 = vld [vmem:[#allocation7 + $0x9e0] sm:$0xff] }
 0x18f   :  { %2675 = vmatmul.msk.f32.vlgmr.msrb.gmra.mxu3 %vm913_vm0, %v3120_v9  ;;  %2127 = vmatpush.msrb.mxu2 %v198_v20  ;;  %v165_v49 = vld [vmem:[#allocation7 + $0x1a0] sm:$0xff] }
 0x190   :  { %2037 = vmatpush.msra.mxu3 %v181_v24  ;;  %2060 = vmatpush.msra.mxu0 %v309_v15  ;;  %v293_v50 = vld [vmem:[#allocation7 + $0x5a0] sm:$0xff]  ;;  %v1492_v58 = vpop.f32.mrf.mxu1  ;;  %v3231_v62 = vpop.f32.mrf.mxu0 }
 0x191   :  { %2083 = vmatpush.msra.mxu1 %v437_v29  ;;  %2128 = vmatpush.msrb.mxu2 %v190_v30  ;;  %v421_v63 = vld [vmem:[#allocation7 + $0x9a0] sm:$0xff]  ;;  %v1516_v10 = vadd.f32 %v1515_v60, %v1492_v58  ;;  %v166_v29 = vld [vmem:[#allocation7 + $0x1a8] sm:$0xff]  ;;  %v3236_v60 = vadd.f32 %v3221_v34, %v1536_v4 }
 0x192   :  { %2038 = vmatpush.msra.mxu3 %v173_v36  ;;  %2061 = vmatpush.msra.mxu0 %v301_v26  ;;  %v157_v51 = vld [vmem:[#allocation7 + $0x160] sm:$0xff]  ;;  %v150_v58 = vld [vmem:[#allocation7 + $0x128] sm:$0xff] }
 0x193   :  { %2084 = vmatpush.msra.mxu1 %v429_v33  ;;  %2129 = vmatpush.msrb.mxu2 %v182_v37  ;;  %v285_v20 = vld [vmem:[#allocation7 + $0x560] sm:$0xff]  ;;  %v1538_v15 = vpop.f32.mrf.mxu3  ;;  %v158_v37 = vld [vmem:[#allocation7 + $0x168] sm:$0xff] }
 0x194   :  { %2039 = vmatpush.msra.mxu3 %v165_v49  ;;  %2062 = vmatpush.msra.mxu0 %v293_v50  ;;  %v413_v24 = vld [vmem:[#allocation7 + $0x960] sm:$0xff]  ;;  %v1539_v30 = vadd.f32 %v1538_v15, %v1516_v10  ;;  %v142_v4 = vld [vmem:[#allocation7 + $0xe8] sm:$0xff] }
 0x195   :  { %2085 = vmatpush.msra.mxu1 %v421_v63  ;;  %2677 = vmatmul.msk.f32.vlgmr.msra.gmra.mxu2 %vm913_vm0, %v3120_v9  ;;  %v149_v36 = vld [vmem:[#allocation7 + $0x120] sm:$0xff] }
 0x196   :  { %2130 = vmatpush.msrb.mxu2 %v174_v1  ;;  %2040 = vmatpush.msra.mxu3 %v157_v51  ;;  %v277_v26 = vld [vmem:[#allocation7 + $0x520] sm:$0xff] }
 0x197   :  { %2063 = vmatpush.msra.mxu0 %v285_v20  ;;  %2086 = vmatpush.msra.mxu1 %v413_v24  ;;  %v405_v33 = vld [vmem:[#allocation7 + $0x920] sm:$0xff] }
 0x198   :  { %2676 = vmatmul.msk.f32.gmra.mxu3 %vm913_vm0, %v3136_v22  ;;  %2131 = vmatpush.msrb.mxu2 %v166_v29  ;;  %v141_v49 = vld [vmem:[#allocation7 + $0xe0] sm:$0xff] }
 0x199   :  { %v269_v50 = vld [vmem:[#allocation7 + $0x4e0] sm:$0xff]  ;;  %2041 = vmatpush.msra.mxu3 %v149_v36  ;;  %2064 = vmatpush.msra.mxu0 %v277_v26  ;;  %v1627_v36 = vpop.f32.mrf.mxu2  ;;  %v134_v26 = vld [vmem:[#allocation7 + $0xa8] sm:$0xff] }
 0x19a   :  { %v397_v9 = vld [vmem:[#allocation7 + $0x8e0] sm:$0xff]  ;;  %2087 = vmatpush.msra.mxu1 %v405_v33  ;;  %2132 = vmatpush.msrb.mxu2 %v158_v37  ;;  %v1604_v51 = vpop.f32.mrf.mxu1 }
 0x19b   :  { %v133_v63 = vld [vmem:[#allocation7 + $0xa0] sm:$0xff]  ;;  %2042 = vmatpush.msra.mxu3 %v141_v49  ;;  %2065 = vmatpush.msra.mxu0 %v269_v50  ;;  %v1581_v34 = vpop.f32.mrf.mxu0 }
 0x19c   :  { %v261_v10 = vld [vmem:[#allocation7 + $0x4a0] sm:$0xff]  ;;  %2088 = vmatpush.msra.mxu1 %v397_v9  ;;  %2133 = vmatpush.msrb.mxu2 %v150_v58  ;;  %v1605_v24 = vadd.f32 %v1604_v51, %v1581_v34  ;;  %v3243_v58 = vadd.f32 %v3231_v62, %v1539_v30  ;;  %v510_v51 = vld [vmem:[#allocation7 + $0xc68] sm:$0xff] }
 0x19d   :  { %v389_v1 = vld [vmem:[#allocation7 + $0x8a0] sm:$0xff]  ;;  %2043 = vmatpush.msra.mxu3 %v133_v63  ;;  %2066 = vmatpush.msra.mxu0 %v261_v10  ;;  %v1650_v49 = vpop.f32.mrf.mxu3  ;;  %v126_v63 = vld [vmem:[#allocation7 + $0x68] sm:$0xff] }
 0x19e   :  { %v125_v20 = vld [vmem:[#allocation7 + $0x60] sm:$0xff]  ;;  %2089 = vmatpush.msra.mxu1 %v389_v1  ;;  %2678 = vmatmul.msk.f32.gmra.mxu2 %vm913_vm0, %v3136_v22  ;;  %v1628_v37 = vadd.f32 %v1627_v36, %v1605_v24  ;;  %v366_v1 = vld [vmem:[#allocation7 + $0x7e8] sm:$0xff]  ;;  %v367_v24 = vld [vmem:[#allocation7 + $0x7f0] sm:$0xff] }
 0x19f   :  { %v253_v15 = vld [vmem:[#allocation7 + $0x460] sm:$0xff]  ;;  %2134 = vmatpush.msrb.mxu2 %v142_v4  ;;  %2044 = vmatpush.msra.mxu3 %v125_v20  ;;  %v494_v22 = vld [vmem:[#allocation7 + $0xbe8] sm:$0xff]  ;;  %v239_v20 = vld [vmem:[#allocation7 + $0x3f0] sm:$0xff] }
 0x1a0   :  { %v381_v29 = vld [vmem:[#allocation7 + $0x860] sm:$0xff]  ;;  %2067 = vmatpush.msra.mxu0 %v253_v15  ;;  %v3245_v10 = vadd.f32 %v1650_v49, %v1628_v37  ;;  %v118_v34 = vld [vmem:[#allocation7 + $0x28] sm:$0xff] }
 0x1a1   :  { %v117_v33 = vld [vmem:[#allocation7 + $0x20] sm:$0xff]  ;;  %2090 = vmatpush.msra.mxu1 %v381_v29  ;;  %2135 = vmatpush.msrb.mxu2 %v134_v26  ;;  %v358_v4 = vld [vmem:[#allocation7 + $0x7a8] sm:$0xff]  ;;  %v231_v26 = vld [vmem:[#allocation7 + $0x3b0] sm:$0xff] }
 0x1a2   :  { %v245_v50 = vld [vmem:[#allocation7 + $0x420] sm:$0xff]  ;;  %2045 = vmatpush.msra.mxu3 %v117_v33  ;;  %v486_v62 = vld [vmem:[#allocation7 + $0xba8] sm:$0xff]  ;;  %v359_v33 = vld [vmem:[#allocation7 + $0x7b0] sm:$0xff] }
 0x1a3   :  { %v373_v9 = vld [vmem:[#allocation7 + $0x820] sm:$0xff]  ;;  %2068 = vmatpush.msra.mxu0 %v245_v50  ;;  %2046 = vmatmul.f32.vlgmr.msra.gmra.mxu3 %v3141_v32  ;;  %v502_v30 = vld [vmem:[#allocation7 + $0xc28] sm:$0xff]  ;;  %v223_v50 = vld [vmem:[#allocation7 + $0x370] sm:$0xff] }
 0x1a4   :  { %2091 = vmatpush.msra.mxu1 %v373_v9  ;;  %2136 = vmatpush.msrb.mxu2 %v126_v63  ;;  %v350_v15 = vld [vmem:[#allocation7 + $0x768] sm:$0xff]  ;;  %v1607_v29 = vpop.f32.mrf.mxu1  ;;  %v3249_v32 = vld [vmem:[#allocation2] sm:$0xff]  ;;  %v961_v9 = vadd.f32 %v3078_v52, %v3082_v57  ;;  %v351_v63 = vld [vmem:[#allocation7 + $0x770] sm:$0xff] }
 0x1a5   :  { %2145 = vmatpush.msrb.mxu3 %v366_v1  ;;  %2168 = vmatpush.msrb.mxu0 %v494_v22  ;;  %v478_v36 = vld [vmem:[#allocation7 + $0xb68] sm:$0xff] }
 0x1a6   :  { %2205 = vmatpush.msrb.mxu1 %v510_v51  ;;  %2137 = vmatpush.msrb.mxu2 %v118_v34  ;;  %v342_v37 = vld [vmem:[#allocation7 + $0x728] sm:$0xff]  ;;  %v215_v34 = vld [vmem:[#allocation7 + $0x330] sm:$0xff] }
 0x1a7   :  { %2092 = vmatmul.f32.vlgmr.msra.gmra.mxu1 %v3151_v41  ;;  %2146 = vmatpush.msrb.mxu3 %v358_v4  ;;  %v3252_v49 = vpop.f32.mrf.mxu3  ;;  %v470_v41 = vld [vmem:[#allocation7 + $0xb28] sm:$0xff]  ;;  %v1630_v4 = vpop.f32.mrf.mxu2 }
 0x1a8   :  { %2169 = vmatpush.msrb.mxu0 %v486_v62  ;;  %2206 = vmatpush.msrb.mxu1 %v502_v30  ;;  %v334_v1 = vld [vmem:[#allocation7 + $0x6e8] sm:$0xff]  ;;  %v343_v30 = vld [vmem:[#allocation7 + $0x730] sm:$0xff] }
 0x1a9   :  { %2138 = vmatmul.f32.vlgmr.msrb.gmra.mxu2 %v3249_v32  ;;  %2147 = vmatpush.msrb.mxu3 %v350_v15  ;;  %v462_v51 = vld [vmem:[#allocation7 + $0xae8] sm:$0xff]  ;;  %v207_v15 = vld [vmem:[#allocation7 + $0x2f0] sm:$0xff] }
 0x1aa   :  { %2214 = vmatpush.msra.mxu1 %v239_v20  ;;  %2237 = vmatpush.msra.mxu2 %v367_v24  ;;  %v984_v20 = vadd.f32 %v3080_v55, %v961_v9  ;;  %v326_v52 = vld [vmem:[#allocation7 + $0x6a8] sm:$0xff]  ;;  %v199_v55 = vld [vmem:[#allocation7 + $0x2b0] sm:$0xff] }
 0x1ab   :  { %2170 = vmatpush.msrb.mxu0 %v478_v36  ;;  %2148 = vmatpush.msrb.mxu3 %v342_v37  ;;  %v1584_v22 = vpop.f32.mrf.mxu0  ;;  %v454_v57 = vld [vmem:[#allocation7 + $0xaa8] sm:$0xff]  ;;  %v327_v37 = vld [vmem:[#allocation7 + $0x6b0] sm:$0xff] }
 0x1ac   :  { %2215 = vmatpush.msra.mxu1 %v231_v26  ;;  %2238 = vmatpush.msra.mxu2 %v359_v33  ;;  %v1608_v62 = vadd.f32 %v1607_v29, %v1584_v22  ;;  %v335_v29 = vld [vmem:[#allocation7 + $0x6f0] sm:$0xff]  ;;  %v318_v36 = vld [vmem:[#allocation7 + $0x668] sm:$0xff]  ;;  %v3263_v33 = vld [vmem:[#allocation2 + $0x20] sm:$0xff] }
 0x1ad   :  { %2171 = vmatpush.msrb.mxu0 %v470_v41  ;;  %2049 = vmatmul.f32.gmra.mxu3 %v3157_v2  ;;  %v446_v2 = vld [vmem:[#allocation7 + $0xa68] sm:$0xff] }
 0x1ae   :  { %2216 = vmatpush.msra.mxu1 %v223_v50  ;;  %2239 = vmatpush.msra.mxu2 %v351_v63  ;;  %v3259_v24 = vadd.f32 %v1630_v4, %v1608_v62  ;;  %v1725_v26 = vpop.f32.mrf.mxu1  ;;  %v310_v41 = vld [vmem:[#allocation7 + $0x628] sm:$0xff]  ;;  %v191_v63 = vld [vmem:[#allocation7 + $0x270] sm:$0xff] }
 0x1af   :  { %2069 = vmatmul.f32.vlgmr.msra.gmra.mxu0 %v3159_v3  ;;  %2149 = vmatpush.msrb.mxu3 %v334_v1  ;;  %v1007_v3 = vadd.f32 %v3076_v47, %v984_v20  ;;  %v438_v9 = vld [vmem:[#allocation7 + $0xa28] sm:$0xff]  ;;  %v319_v1 = vld [vmem:[#allocation7 + $0x670] sm:$0xff]  ;;  %v1748_v62 = vpop.f32.mrf.mxu2 }
 0x1b0   :  { %2172 = vmatpush.msrb.mxu0 %v462_v51  ;;  %2217 = vmatpush.msra.mxu1 %v215_v34  ;;  %v302_v47 = vld [vmem:[#allocation7 + $0x5e8] sm:$0xff]  ;;  %v183_v34 = vld [vmem:[#allocation7 + $0x230] sm:$0xff] }
 0x1b1   :  { %2240 = vmatpush.msra.mxu2 %v343_v30  ;;  %2095 = vmatmul.f32.gmra.mxu1 %v3168_v21  ;;  %v1679_v50 = vpop.f32.mrf.mxu3  ;;  %v964_v21 = vadd.f32 %v3090_v8, %v3095_v17  ;;  %v430_v51 = vld [vmem:[#allocation7 + $0x9e8] sm:$0xff]  ;;  %v311_v4 = vld [vmem:[#allocation7 + $0x630] sm:$0xff] }
 0x1b2   :  { %2150 = vmatpush.msrb.mxu3 %v326_v52  ;;  %2173 = vmatpush.msrb.mxu0 %v454_v57  ;;  %v1680_v22 = vadd.f32 %v1679_v50, %v1007_v3  ;;  %v294_v8 = vld [vmem:[#allocation7 + $0x5a8] sm:$0xff]  ;;  %v303_v52 = vld [vmem:[#allocation7 + $0x5f0] sm:$0xff] }
 0x1b3   :  { %2141 = vmatmul.f32.gmra.mxu2 %v3263_v33  ;;  %2218 = vmatpush.msra.mxu1 %v207_v15  ;;  %v987_v30 = vadd.f32 %v3092_v14, %v964_v21  ;;  %v422_v17 = vld [vmem:[#allocation7 + $0x9a8] sm:$0xff]  ;;  %v175_v15 = vld [vmem:[#allocation7 + $0x1f0] sm:$0xff] }
 0x1b4   :  { %2241 = vmatpush.msra.mxu2 %v335_v29  ;;  %2151 = vmatpush.msrb.mxu3 %v318_v36  ;;  %v286_v29 = vld [vmem:[#allocation7 + $0x568] sm:$0xff]  ;;  %v287_v21 = vld [vmem:[#allocation7 + $0x570] sm:$0xff] }
 0x1b5   :  { %2174 = vmatpush.msrb.mxu0 %v446_v2  ;;  %2219 = vmatpush.msra.mxu1 %v199_v55  ;;  %v414_v36 = vld [vmem:[#allocation7 + $0x968] sm:$0xff]  ;;  %v295_v2 = vld [vmem:[#allocation7 + $0x5b0] sm:$0xff]  ;;  %v1010_v3 = vadd.f32 %v3088_v5, %v987_v30 }
 0x1b6   :  { %2242 = vmatpush.msra.mxu2 %v327_v37  ;;  %2152 = vmatpush.msrb.mxu3 %v310_v41  ;;  %v1702_v20 = vpop.f32.mrf.mxu0  ;;  %v167_v37 = vld [vmem:[#allocation7 + $0x1b0] sm:$0xff]  ;;  %v278_v41 = vld [vmem:[#allocation7 + $0x528] sm:$0xff] }
 0x1b7   :  { %2175 = vmatpush.msrb.mxu0 %v438_v9  ;;  %2220 = vmatpush.msra.mxu1 %v191_v63  ;;  %v1703_v57 = vadd.f32 %v1702_v20, %v1680_v22  ;;  %v406_v50 = vld [vmem:[#allocation7 + $0x928] sm:$0xff]  ;;  %v159_v5 = vld [vmem:[#allocation7 + $0x170] sm:$0xff]  ;;  %v1751_v30 = vpop.f32.mrf.mxu2 }
 0x1b8   :  { %2243 = vmatpush.msra.mxu2 %v319_v1  ;;  %2072 = vmatmul.f32.gmra.mxu0 %v3177_v40  ;;  %v3271_v40 = vld [vmem:[#allocation2 + $0x18] sm:$0xff]  ;;  %v270_v1 = vld [vmem:[#allocation7 + $0x4e8] sm:$0xff] }
 0x1b9   :  { %2153 = vmatpush.msrb.mxu3 %v302_v47  ;;  %2176 = vmatpush.msrb.mxu0 %v430_v51  ;;  %v1726_v55 = vadd.f32 %v1725_v26, %v1703_v57  ;;  %v1728_v14 = vpop.f32.mrf.mxu1  ;;  %v3279_v26 = vadd.f32 %v3252_v49, %v3259_v24  ;;  %v398_v47 = vld [vmem:[#allocation7 + $0x8e8] sm:$0xff]  ;;  %v279_v51 = vld [vmem:[#allocation7 + $0x530] sm:$0xff]  ;;  %v3281_v57 = vld [vmem:[#allocation2 + $0x38] sm:$0xff] }
 0x1ba   :  { %2221 = vmatpush.msra.mxu1 %v183_v34  ;;  %2244 = vmatpush.msra.mxu2 %v311_v4  ;;  %v151_v34 = vld [vmem:[#allocation7 + $0x130] sm:$0xff]  ;;  %v262_v4 = vld [vmem:[#allocation7 + $0x4a8] sm:$0xff] }
 0x1bb   :  { %2154 = vmatpush.msrb.mxu3 %v294_v8  ;;  %2177 = vmatpush.msrb.mxu0 %v422_v17  ;;  %v3275_v9 = vadd.f32 %v1748_v62, %v1726_v55  ;;  %v1682_v63 = vpop.f32.mrf.mxu3  ;;  %v390_v62 = vld [vmem:[#allocation7 + $0x8a8] sm:$0xff]  ;;  %v143_v49 = vld [vmem:[#allocation7 + $0xf0] sm:$0xff] }
 0x1bc   :  { %2679 = vmatmul.msk.f32.vlgmr.msrb.gmra.mxu1 %vm913_vm0, %v3271_v40  ;;  %2245 = vmatpush.msra.mxu2 %v303_v52  ;;  %v1683_v22 = vadd.f32 %v1682_v63, %v1010_v3  ;;  %v271_v24 = vld [vmem:[#allocation7 + $0x4f0] sm:$0xff]  ;;  %v254_v20 = vld [vmem:[#allocation7 + $0x468] sm:$0xff] }
 0x1bd   :  { %2222 = vmatpush.msra.mxu1 %v175_v15  ;;  %2155 = vmatpush.msrb.mxu3 %v286_v29  ;;  %v382_v52 = vld [vmem:[#allocation7 + $0x868] sm:$0xff]  ;;  %v135_v15 = vld [vmem:[#allocation7 + $0xb0] sm:$0xff] }
 0x1be   :  { %2178 = vmatpush.msrb.mxu0 %v414_v36  ;;  %2246 = vmatpush.msra.mxu2 %v295_v2  ;;  %v263_v29 = vld [vmem:[#allocation7 + $0x4b0] sm:$0xff]  ;;  %v246_v2 = vld [vmem:[#allocation7 + $0x428] sm:$0xff] }
 0x1bf   :  { %2223 = vmatpush.msra.mxu1 %v167_v37  ;;  %2156 = vmatpush.msrb.mxu3 %v278_v41  ;;  %v374_v55 = vld [vmem:[#allocation7 + $0x828] sm:$0xff]  ;;  %v127_v37 = vld [vmem:[#allocation7 + $0x70] sm:$0xff] }
 0x1c0   :  { %2179 = vmatpush.msrb.mxu0 %v406_v50  ;;  %2247 = vmatpush.msra.mxu2 %v287_v21  ;;  %v1705_v8 = vpop.f32.mrf.mxu0  ;;  %v255_v50 = vld [vmem:[#allocation7 + $0x470] sm:$0xff] }
 0x1c1   :  { %2224 = vmatpush.msra.mxu1 %v159_v5  ;;  %2157 = vmatpush.msrb.mxu3 %v270_v1  ;;  %v1706_v17 = vadd.f32 %v1705_v8, %v1683_v22  ;;  %v495_v21 = vld [vmem:[#allocation7 + $0xbf0] sm:$0xff] }
 0x1c2   :  { %2180 = vmatpush.msrb.mxu0 %v398_v47  ;;  %2248 = vmatpush.msra.mxu2 %v279_v51  ;;  %v511_v63 = vld [vmem:[#allocation7 + $0xc70] sm:$0xff]  ;;  %v1771_v51 = vpop.f32.mrf.mxu2 }
 0x1c3   :  { %2225 = vmatpush.msra.mxu1 %v151_v34  ;;  %2158 = vmatpush.msrb.mxu3 %v262_v4  ;;  %v1729_v36 = vadd.f32 %v1728_v14, %v1706_v17  ;;  %v3285_v3 = vpop.f32.mrf.mxu1  ;;  %v119_v5 = vld [vmem:[#allocation7 + $0x30] sm:$0xff]  ;;  %v3289_v14 = vld [vmem:[#allocation2 + $0x8] sm:$0xff]  ;;  %v240_v4 = vld [vmem:[#allocation7 + $0x3f8] sm:$0xff] }
 0x1c4   :  { %2181 = vmatpush.msrb.mxu0 %v390_v62  ;;  %2680 = vmatmul.msk.f32.gmra.mxu1 %vm913_vm0, %v3281_v57  ;;  %v247_v1 = vld [vmem:[#allocation7 + $0x430] sm:$0xff]  ;;  %v496_v62 = vld [vmem:[#allocation7 + $0xbf8] sm:$0xff] }
 0x1c5   :  { %2226 = vmatpush.msra.mxu1 %v143_v49  ;;  %2249 = vmatpush.msra.mxu2 %v271_v24  ;;  %v3287_v41 = vadd.f32 %v1751_v30, %v1729_v36  ;;  %v487_v22 = vld [vmem:[#allocation7 + $0xbb0] sm:$0xff]  ;;  %v1053_v30 = vadd.f32 %v3104_v31, %v3100_v27  ;;  %v368_v49 = vld [vmem:[#allocation7 + $0x7f8] sm:$0xff] }
 0x1c6   :  { %2159 = vmatpush.msrb.mxu3 %v254_v20  ;;  %2182 = vmatpush.msrb.mxu0 %v382_v52  ;;  %v503_v47 = vld [vmem:[#allocation7 + $0xc30] sm:$0xff]  ;;  %v232_v24 = vld [vmem:[#allocation7 + $0x3b8] sm:$0xff] }
 0x1c7   :  { %2227 = vmatpush.msra.mxu1 %v135_v15  ;;  %2250 = vmatpush.msra.mxu2 %v263_v29  ;;  %v3292_v34 = vld [vmem:[#allocation2 + $0x10] sm:$0xff]  ;;  %v488_v17 = vld [vmem:[#allocation7 + $0xbb8] sm:$0xff]  ;;  %v1076_v31 = vadd.f32 %v3098_v25, %v1053_v30 }
 0x1c8   :  { %2160 = vmatpush.msrb.mxu3 %v246_v2  ;;  %2183 = vmatpush.msrb.mxu0 %v374_v55  ;;  %v479_v8 = vld [vmem:[#allocation7 + $0xb70] sm:$0xff]  ;;  %v360_v52 = vld [vmem:[#allocation7 + $0x7b8] sm:$0xff]  ;;  %v1145_v2 = vadd.f32 %v3134_v19, %v3126_v7 }
 0x1c9   :  { %2161 = vmatmul.f32.vlgmr.msrb.gmra.mxu3 %v3289_v14  ;;  %2228 = vmatpush.msra.mxu1 %v127_v37  ;;  %v471_v20 = vld [vmem:[#allocation7 + $0xb30] sm:$0xff]  ;;  %v224_v29 = vld [vmem:[#allocation7 + $0x378] sm:$0xff]  ;;  %v1099_v25 = vadd.f32 %v3102_v28, %v1076_v31 }
 0x1ca   :  { %2251 = vmatpush.msra.mxu2 %v255_v50  ;;  %2260 = vmatpush.msra.mxu3 %v495_v21  ;;  %v480_v27 = vld [vmem:[#allocation7 + $0xb78] sm:$0xff]  ;;  %v463_v55 = vld [vmem:[#allocation7 + $0xaf0] sm:$0xff]  ;;  %v3304_v21 = vld [vmem:[#allocation2 + $0x28] sm:$0xff]  ;;  %v1168_v7 = vadd.f32 %v3130_v16, %v1145_v2 }
 0x1cb   :  { %2297 = vmatpush.msra.mxu0 %v511_v63  ;;  %2229 = vmatpush.msra.mxu1 %v119_v5  ;;  %v352_v36 = vld [vmem:[#allocation7 + $0x778] sm:$0xff]  ;;  %v455_v63 = vld [vmem:[#allocation7 + $0xab0] sm:$0xff] }
 0x1cc   :  { %2184 = vmatmul.f32.vlgmr.msrb.gmra.mxu0 %v3292_v34  ;;  %2252 = vmatpush.msra.mxu2 %v247_v1  ;;  %v3299_v15 = vpop.f32.mrf.mxu1  ;;  %v216_v37 = vld [vmem:[#allocation7 + $0x338] sm:$0xff]  ;;  %v3308_v1 = vpop.f32.mrf.mxu2  ;;  %v3311_v19 = vld [vmem:[#allocation2 + $0x30] sm:$0xff]  ;;  %v1191_v31 = vadd.f32 %v3128_v13, %v1168_v7 }
 0x1cd   :  { %2261 = vmatpush.msra.mxu3 %v487_v22  ;;  %2298 = vmatpush.msra.mxu0 %v503_v47  ;;  %v472_v50 = vld [vmem:[#allocation7 + $0xb38] sm:$0xff]  ;;  %v447_v28 = vld [vmem:[#allocation7 + $0xa70] sm:$0xff] }
 0x1ce   :  { %2230 = vmatmul.f32.vlgmr.msra.gmra.mxu1 %v3249_v32  ;;  %2253 = vmatmul.f32.vlgmr.msra.gmra.mxu2 %v3289_v14  ;;  %v208_v5 = vld [vmem:[#allocation7 + $0x2f8] sm:$0xff] }
 0x1cf   :  { %2306 = vmatpush.msrb.mxu0 %v240_v4  ;;  %2352 = vmatpush.msrb.mxu2 %v496_v62  ;;  %v344_v22 = vld [vmem:[#allocation7 + $0x738] sm:$0xff]  ;;  %v1772_v62 = vadd.f32 %v1771_v51, %v1099_v25  ;;  %v423_v25 = vld [vmem:[#allocation7 + $0x9b0] sm:$0xff] }
 0x1d0   :  { %2262 = vmatpush.msra.mxu3 %v479_v8  ;;  %2329 = vmatpush.msrb.mxu1 %v368_v49  ;;  %v464_v47 = vld [vmem:[#allocation7 + $0xaf8] sm:$0xff]  ;;  %v1056_v8 = vadd.f32 %v3118_v53, %v3114_v45  ;;  %v431_v45 = vld [vmem:[#allocation7 + $0x9f0] sm:$0xff] }
 0x1d1   :  { %2307 = vmatpush.msrb.mxu0 %v232_v24  ;;  %2353 = vmatpush.msrb.mxu2 %v488_v17  ;;  %v200_v30 = vld [vmem:[#allocation7 + $0x2b8] sm:$0xff]  ;;  %v439_v17 = vld [vmem:[#allocation7 + $0xa30] sm:$0xff] }
 0x1d2   :  { %2263 = vmatpush.msra.mxu3 %v471_v20  ;;  %2330 = vmatpush.msrb.mxu1 %v360_v52  ;;  %v336_v16 = vld [vmem:[#allocation7 + $0x6f8] sm:$0xff]  ;;  %v1079_v2 = vadd.f32 %v3110_v44, %v1056_v8  ;;  %v407_v8 = vld [vmem:[#allocation7 + $0x930] sm:$0xff] }
 0x1d3   :  { %2308 = vmatpush.msrb.mxu0 %v224_v29  ;;  %2354 = vmatpush.msrb.mxu2 %v480_v27  ;;  %v1817_v4 = vpop.f32.mrf.mxu0  ;;  %v456_v49 = vld [vmem:[#allocation7 + $0xab8] sm:$0xff] }
 0x1d4   :  { %2164 = vmatmul.f32.gmra.mxu3 %v3304_v21  ;;  %2331 = vmatpush.msrb.mxu1 %v352_v36  ;;  %v192_v20 = vld [vmem:[#allocation7 + $0x278] sm:$0xff] }
 0x1d5   :  { %2264 = vmatpush.msra.mxu3 %v463_v55  ;;  %2309 = vmatpush.msrb.mxu0 %v216_v37  ;;  %v1863_v52 = vpop.f32.mrf.mxu1  ;;  %v328_v29 = vld [vmem:[#allocation7 + $0x6b8] sm:$0xff]  ;;  %v1148_v55 = vadd.f32 %v3153_v42, %v3143_v35  ;;  %v415_v42 = vld [vmem:[#allocation7 + $0x970] sm:$0xff] }
 0x1d6   :  { %2355 = vmatpush.msrb.mxu2 %v472_v50  ;;  %2187 = vmatmul.f32.gmra.mxu0 %v3311_v19  ;;  %v1794_v24 = vpop.f32.mrf.mxu3  ;;  %v448_v27 = vld [vmem:[#allocation7 + $0xa78] sm:$0xff] }
 0x1d7   :  { %2265 = vmatpush.msra.mxu3 %v455_v63  ;;  %2233 = vmatmul.f32.gmra.mxu1 %v3263_v33  ;;  %v1795_v51 = vadd.f32 %v1794_v24, %v1772_v62  ;;  %v184_v53 = vld [vmem:[#allocation7 + $0x238] sm:$0xff]  ;;  %v1864_v63 = vadd.f32 %v1863_v52, %v1191_v31  ;;  %v391_v31 = vld [vmem:[#allocation7 + $0x8b0] sm:$0xff] }
 0x1d8   :  { %2256 = vmatmul.f32.gmra.mxu2 %v3304_v21  ;;  %2310 = vmatpush.msrb.mxu0 %v208_v5  ;;  %v320_v37 = vld [vmem:[#allocation7 + $0x678] sm:$0xff] }
 0x1d9   :  { %2332 = vmatpush.msrb.mxu1 %v344_v22  ;;  %2356 = vmatpush.msrb.mxu2 %v464_v47  ;;  %v1818_v36 = vadd.f32 %v1817_v4, %v1795_v51  ;;  %v440_v50 = vld [vmem:[#allocation7 + $0xa38] sm:$0xff]  ;;  %v1102_v47 = vadd.f32 %v3116_v46, %v1079_v2  ;;  %v1171_v4 = vadd.f32 %v3148_v59, %v1148_v55  ;;  %v399_v59 = vld [vmem:[#allocation7 + $0x8f0] sm:$0xff] }
 0x1da   :  { %2266 = vmatpush.msra.mxu3 %v447_v28  ;;  %2311 = vmatpush.msrb.mxu0 %v200_v30  ;;  %v176_v7 = vld [vmem:[#allocation7 + $0x1f8] sm:$0xff] }
 0x1db   :  { %2333 = vmatpush.msrb.mxu1 %v336_v16  ;;  %2357 = vmatpush.msrb.mxu2 %v456_v49  ;;  %v3323_v13 = vadd.f32 %v3285_v3, %v1818_v36  ;;  %v312_v22 = vld [vmem:[#allocation7 + $0x638] sm:$0xff]  ;;  %v1775_v16 = vadd.f32 %v3308_v1, %v1102_v47 }
 0x1dc   :  { %2267 = vmatpush.msra.mxu3 %v439_v17  ;;  %2312 = vmatpush.msrb.mxu0 %v192_v20  ;;  %v1886_v5 = vpop.f32.mrf.mxu2  ;;  %v432_v35 = vld [vmem:[#allocation7 + $0x9f8] sm:$0xff] }
 0x1dd   :  { %2334 = vmatpush.msrb.mxu1 %v328_v29  ;;  %2358 = vmatpush.msrb.mxu2 %v448_v27  ;;  %v3325_v44 = vadd.f32 %v1886_v5, %v1864_v63  ;;  %v168_v3 = vld [vmem:[#allocation7 + $0x1b8] sm:$0xff]  ;;  %v1194_v29 = vadd.f32 %v3146_v39, %v1171_v4 }
 0x1de   :  { %2268 = vmatpush.msra.mxu3 %v431_v45  ;;  %2313 = vmatpush.msrb.mxu0 %v184_v53  ;;  %v304_v62 = vld [vmem:[#allocation7 + $0x5f8] sm:$0xff]  ;;  %v1820_v28 = vpop.f32.mrf.mxu0 }
 0x1df   :  { %2335 = vmatpush.msrb.mxu1 %v320_v37  ;;  %2359 = vmatpush.msrb.mxu2 %v440_v50  ;;  %v424_v30 = vld [vmem:[#allocation7 + $0x9b8] sm:$0xff]  ;;  %v1866_v17 = vpop.f32.mrf.mxu1  ;;  %v383_v50 = vld [vmem:[#allocation7 + $0x870] sm:$0xff] }
 0x1e0   :  { %2269 = vmatpush.msra.mxu3 %v423_v25  ;;  %2681 = vmatmul.msk.f32.vlgmr.msra.gmra.mxu0 %vm913_vm0, %v3271_v40  ;;  %v160_v49 = vld [vmem:[#allocation7 + $0x178] sm:$0xff]  ;;  %v1867_v53 = vadd.f32 %v1866_v17, %v1194_v29 }
 0x1e1   :  { %2314 = vmatpush.msrb.mxu0 %v176_v7  ;;  %2336 = vmatpush.msrb.mxu1 %v312_v22  ;;  %v296_v24 = vld [vmem:[#allocation7 + $0x5b8] sm:$0xff]  ;;  %v375_v22 = vld [vmem:[#allocation7 + $0x830] sm:$0xff] }
 0x1e2   :  { %2360 = vmatpush.msrb.mxu2 %v432_v35  ;;  %2270 = vmatpush.msra.mxu3 %v415_v42  ;;  %v416_v46 = vld [vmem:[#allocation7 + $0x978] sm:$0xff]  ;;  %v1797_v20 = vpop.f32.mrf.mxu3 }
 0x1e3   :  { %2315 = vmatpush.msrb.mxu0 %v168_v3  ;;  %2337 = vmatpush.msrb.mxu1 %v304_v62  ;;  %v152_v52 = vld [vmem:[#allocation7 + $0x138] sm:$0xff]  ;;  %v1798_v27 = vadd.f32 %v1797_v20, %v1775_v16  ;;  %v1237_v16 = vadd.f32 %v3163_v11, %v3161_v48 }
 0x1e4   :  { %2361 = vmatpush.msrb.mxu2 %v424_v30  ;;  %2271 = vmatpush.msra.mxu3 %v407_v8  ;;  %v288_v51 = vld [vmem:[#allocation7 + $0x578] sm:$0xff] }
 0x1e5   :  { %2316 = vmatpush.msrb.mxu0 %v160_v49  ;;  %2338 = vmatpush.msrb.mxu1 %v296_v24  ;;  %v408_v1 = vld [vmem:[#allocation7 + $0x938] sm:$0xff]  ;;  %v1821_v36 = vadd.f32 %v1820_v28, %v1798_v27  ;;  %v1260_v24 = vadd.f32 %v3170_v23, %v1237_v16 }
 0x1e6   :  { %2362 = vmatpush.msrb.mxu2 %v416_v46  ;;  %2272 = vmatpush.msra.mxu3 %v399_v59  ;;  %v280_v45 = vld [vmem:[#allocation7 + $0x538] sm:$0xff]  ;;  %v1889_v37 = vpop.f32.mrf.mxu2  ;;  %v1240_v59 = vadd.f32 %v3181_v12, %v3175_v38 }
 0x1e7   :  { %2317 = vmatpush.msrb.mxu0 %v152_v52  ;;  %2339 = vmatpush.msrb.mxu1 %v288_v51  ;;  %v144_v2 = vld [vmem:[#allocation7 + $0xf8] sm:$0xff]  ;;  %v3334_v39 = vadd.f32 %v3299_v15, %v1821_v36  ;;  %v3336_v25 = vadd.f32 %v1889_v37, %v1867_v53  ;;  %v1283_v46 = vadd.f32 %v3165_v18, %v1260_v24 }
 0x1e8   :  { %v400_v55 = vld [vmem:[#allocation7 + $0x8f8] sm:$0xff]  ;;  %2363 = vmatpush.msrb.mxu2 %v408_v1  ;;  %2273 = vmatpush.msra.mxu3 %v391_v31  ;;  %v1932_v42 = vpop.f32.mrf.mxu0  ;;  %v1263_v18 = vadd.f32 %v3183_v56, %v1240_v59 }
 0x1e9   :  { %v272_v63 = vld [vmem:[#allocation7 + $0x4f8] sm:$0xff]  ;;  %2682 = vmatmul.msk.f32.gmra.mxu0 %vm913_vm0, %v3281_v57  ;;  %2340 = vmatpush.msrb.mxu1 %v280_v45 }
 0x1ea   :  { %v136_v5 = vld [vmem:[#allocation7 + $0xb8] sm:$0xff]  ;;  %2318 = vmatpush.msrb.mxu0 %v144_v2  ;;  %2364 = vmatpush.msrb.mxu2 %v400_v55  ;;  %v1286_v1 = vadd.f32 %v3179_v43, %v1263_v18 }
 0x1eb   :  { %v392_v7 = vld [vmem:[#allocation7 + $0x8b8] sm:$0xff]  ;;  %2274 = vmatpush.msra.mxu3 %v383_v50  ;;  %2341 = vmatpush.msrb.mxu1 %v272_v63 }
 0x1ec   :  { %v264_v35 = vld [vmem:[#allocation7 + $0x4b8] sm:$0xff]  ;;  %2319 = vmatpush.msrb.mxu0 %v136_v5  ;;  %2365 = vmatpush.msrb.mxu2 %v392_v7 }
 0x1ed   :  { %v128_v47 = vld [vmem:[#allocation7 + $0x78] sm:$0xff]  ;;  %2275 = vmatpush.msra.mxu3 %v375_v22  ;;  %2342 = vmatpush.msrb.mxu1 %v264_v35  ;;  %v3371_v22 = vld [vmem:[#allocation10] sm:$0xff] }
 0x1ee   :  { %v384_v15 = vld [vmem:[#allocation7 + $0x878] sm:$0xff]  ;;  %2276 = vmatmul.f32.vlgmr.msra.gmra.mxu3 %v3292_v34  ;;  %2320 = vmatpush.msrb.mxu0 %v128_v47  ;;  %v2400_v59 = vperm.slane %v3371_v22, 0 }
 0x1ef   :  { %v512_v4 = vld [vmem:[#allocation7 + $0xc78] sm:$0xff]  ;;  %2366 = vmatpush.msrb.mxu2 %v384_v15 }
 0x1f0   :  { %v120_v3 = vld [vmem:[#allocation7 + $0x38] sm:$0xff]  ;;  %2389 = vmatpush.msrb.mxu3 %v512_v4 }
 0x1f1   :  { %v256_v62 = vld [vmem:[#allocation7 + $0x478] sm:$0xff]  ;;  %2321 = vmatpush.msrb.mxu0 %v120_v3  ;;  %v1935_v49 = vpop.f32.mrf.mxu0 }
 0x1f2   :  { %v376_v28 = vld [vmem:[#allocation7 + $0x838] sm:$0xff]  ;;  %2343 = vmatpush.msrb.mxu1 %v256_v62  ;;  %2322 = vmatmul.f32.vlgmr.msrb.gmra.mxu0 %v3249_v32 }
 0x1f3   :  { %v248_v30 = vld [vmem:[#allocation7 + $0x438] sm:$0xff]  ;;  %2367 = vmatpush.msrb.mxu2 %v376_v28 }
 0x1f4   :  { %v504_v8 = vld [vmem:[#allocation7 + $0xc38] sm:$0xff]  ;;  %2368 = vmatmul.f32.vlgmr.msrb.gmra.mxu2 %v3292_v34  ;;  %2344 = vmatpush.msrb.mxu1 %v248_v30 }
 0x1f5   :  { %2345 = vmatmul.f32.vlgmr.msrb.gmra.mxu1 %v3289_v14  ;;  %2390 = vmatpush.msrb.mxu3 %v504_v8 }
 0x1f6   :  { %2279 = vmatmul.f32.gmra.mxu3 %v3311_v19 }
 0x1f9   :  { %v1955_v48 = vpop.f32.mrf.mxu0 }
 0x1fa   :  { %2325 = vmatmul.f32.gmra.mxu0 %v3263_v33  ;;  %v1956_v11 = vadd.f32 %v1955_v48, %v1283_v46 }
 0x1fc   :  { %2371 = vmatmul.f32.gmra.mxu2 %v3311_v19  ;;  %v1909_v17 = vpop.f32.mrf.mxu3 }
 0x1fd   :  { %2348 = vmatmul.f32.gmra.mxu1 %v3304_v21  ;;  %v1978_v23 = vpop.f32.mrf.mxu1  ;;  %v1910_v20 = vadd.f32 %v1909_v17, %v3325_v44 }
 0x1fe   :  { %2683 = vmatmul.msk.f32.vlgmr.msrb.gmra.mxu3 %vm913_vm0, %v3271_v40  ;;  %v1979_v52 = vadd.f32 %v1978_v23, %v1956_v11 }
 0x1ff   :  { %v3357_v51 = vadd.f32 %v1932_v42, %v1910_v20  ;;  %v2404_v42 = vperm.slane %v3371_v22, 4  ;;  %v2416_v20 = vadd.f32 %v2400_v59, %v3275_v9 }
 0x201   :  { %v2001_v29 = vpop.f32.mrf.mxu2 }
 0x202   :  { %v2002_v27 = vadd.f32 %v2001_v29, %v1979_v52 }
 0x204   :  { %v1958_v38 = vpop.f32.mrf.mxu0 }
 0x205   :  { %v1959_v12 = vadd.f32 %v1958_v38, %v1286_v1 }
 0x206   :  { %2684 = vmatmul.msk.f32.gmra.mxu3 %vm913_vm0, %v3281_v57 }
 0x208   :  { %v1981_v31 = vpop.f32.mrf.mxu1  ;;  %v1912_v45 = vpop.f32.mrf.mxu3 }
 0x209   :  { %v1982_v40 = vadd.f32 %v1981_v31, %v1959_v12  ;;  %v1913_v53 = vadd.f32 %v1912_v45, %v3336_v25 }
 0x20b   :  { %v3364_v44 = vadd.f32 %v1935_v49, %v1913_v53 }
 0x20c   :  { %v2004_v36 = vpop.f32.mrf.mxu2 }
 0x20d   :  { %v2005_v2 = vadd.f32 %v2004_v36, %v1982_v40 }
 0x212   :  { %v2024_v55 = vpop.f32.mrf.mxu3 }
 0x213   :  { %v3366_v56 = vadd.f32 %v2024_v55, %v2002_v27 }
 0x218   :  { %v2116_v35 = vpop.f32.mrf.mxu2 }
 0x21b   :  { %v2027_v37 = vpop.f32.mrf.mxu3 }
 0x21c   :  { %v3368_v50 = vadd.f32 %v2027_v37, %v2005_v2 }
 0x221   :  { %v2119_v16 = vpop.f32.mrf.mxu2 }
 0x224   :  { %v2093_v5 = vpop.f32.mrf.mxu1 }
 0x226   :  { %v2047_v43 = vpop.f32.mrf.mxu3 }
 0x227   :  { %v2048_v57 = vadd.f32 %v2047_v43, %v3188_v0  ;;  %v2405_v43 = vperm.slane %v3371_v22, 5 }
 0x22c   :  { %v2070_v63 = vpop.f32.mrf.mxu0  ;;  %v2139_v52 = vpop.f32.mrf.mxu2 }
 0x22d   :  { %v2071_v7 = vadd.f32 %v2070_v63, %v2048_v57  ;;  %v2140_v12 = vadd.f32 %v2139_v52, %v3206_v54  ;;  %v2424_v54 = vadd.f32 %v2400_v59, %v3287_v41 }
 0x22e   :  { %v2096_v8 = vpop.f32.mrf.mxu1 }
 0x22f   :  { %v2094_v25 = vadd.f32 %v2093_v5, %v2071_v7 }
 0x230   :  { %v2050_v15 = vpop.f32.mrf.mxu3 }
 0x231   :  { %v2117_v47 = vadd.f32 %v2116_v35, %v2094_v25  ;;  %v2051_v4 = vadd.f32 %v2050_v15, %v3213_v6 }
 0x233   :  { %v2420_v3 = vadd.f32 %v2404_v42, %v2117_v47 }
 0x235   :  { %v2685_v62 = vmul.f32 -1.442695, %v2420_v3  ;;  %v2073_v28 = vpop.f32.mrf.mxu0 }
 0x236   :  { %v2074_v30 = vadd.f32 %v2073_v28, %v2051_v4  ;;  %v2142_v15 = vpop.f32.mrf.mxu2 }
 0x237   :  { %2703 = vpow2.f32 %v2685_v62 }
 0x238   :  { %v2097_v0 = vadd.f32 %v2096_v8, %v2074_v30  ;;  %v2143_v8 = vadd.f32 %v2142_v15, %v3229_v61 }
 0x239   :  { %v2208_v5 = vpop.f32.mrf.mxu1 }
 0x23a   :  { %v2120_v49 = vadd.f32 %v2119_v16, %v2097_v0 }
 0x23c   :  { %v2428_v24 = vadd.f32 %v2404_v42, %v2120_v49 }
 0x23d   :  { %v2704_v46 = vpop.eup %2703 }
 0x23e   :  { %v2464_v48 = vadd.f32 1.0, %v2704_v46  ;;  %v2689_v11 = vmul.f32 -1.442695, %v2428_v24 }
 0x240   :  { %2705 = vrcp.f32 %v2464_v48  ;;  %v2483_v27 = vand.u32 2147483648, %v2464_v48  ;;  %v2481_v38 = vand.u32 2147483647, %v2464_v48  ;;  %vm2477_vm2 = vweird.f32 %v2464_v48 }
 0x241   :  { %2707 = vpow2.f32 %v2689_v11 }
 0x242   :  { %v2484_v36 = vor.u32 1.1754944e-38, %v2483_v27  ;;  %vm2482_vm4 = vcmp.eq.f32.partialorder %v2481_v38, 8.507059e+37 }
 0x246   :  { %v2706_v17 = vpop.eup %2705 }
 0x247   :  { %v2708_v23 = vpop.eup %2707  ;;  %v2473_v6 = vmul.f32 %v2706_v17, %v2464_v48  ;;  %vm2478_vm1 = vweird.f32 %v2706_v17 }
 0x248   :  { %v2468_v18 = vadd.f32 1.0, %v2708_v23  ;;  %vm2479_vm3 = vmor %vm2477_vm2, %vm2478_vm1 }
 0x249   :  { %v2474_v29 = vsub.f32 1.0, %v2473_v6  ;;  %v2185_v40 = vpop.f32.mrf.mxu0 }
 0x24a   :  { %2709 = vrcp.f32 %v2468_v18  ;;  %v2543_v4 = vand.u32 2147483648, %v2468_v18  ;;  %v2541_v30 = vand.u32 2147483647, %v2468_v18  ;;  %vm2537_vm6 = vweird.f32 %v2468_v18 }
 0x24b   :  { %v2475_v1 = vmul.f32 %v2706_v17, %v2474_v29  ;;  %2711 = vtanh.f32 %v2416_v20 }
 0x24c   :  { %v2162_v31 = vpop.f32.mrf.mxu3  ;;  %2713 = vtanh.f32 %v2424_v54  ;;  %vm2542_vm8 = vcmp.eq.f32.partialorder %v2541_v30, 8.507059e+37 }
 0x24d   :  { %v2476_v45 = vadd.f32 %v2706_v17, %v2475_v1  ;;  %v2163_v53 = vadd.f32 %v2162_v31, %v2140_v12  ;;  %v2401_v12 = vperm.slane %v3371_v22, 1 }
 0x24f   :  { %v2480_v2 = vsel %vm2479_vm3, %v2706_v17, %v2476_v45  ;;  %v2186_v9 = vadd.f32 %v2185_v40, %v2163_v53  ;;  %v2211_v17 = vpop.f32.mrf.mxu1 }
 0x250   :  { %v2710_v55 = vpop.eup %2709  ;;  %v2485_v37 = vsel %vm2482_vm4, %v2484_v36, %v2480_v2  ;;  %v2417_v36 = vadd.f32 %v2401_v12, %v3323_v13 }
 0x251   :  { %v2600_v57 = vsub.f32 1.0, %v2485_v37  ;;  %v2533_v63 = vmul.f32 %v2710_v55, %v2468_v18  ;;  %v2712_v7 = vpop.eup %2711  ;;  %v2209_v35 = vadd.f32 %v2208_v5, %v2186_v9  ;;  %v2592_v25 = vmul.f32 %v3249_v32, %v2485_v37  ;;  %v2254_v2 = vpop.f32.mrf.mxu2 }
 0x252   :  { %vm2538_vm5 = vweird.f32 %v2710_v55  ;;  %v2544_v32 = vor.u32 1.1754944e-38, %v2543_v4  ;;  %v2714_v23 = vpop.eup %2713 }
 0x253   :  { %v2608_v42 = vmul.f32 %v2712_v7, %v2600_v57  ;;  %v2534_v47 = vsub.f32 1.0, %v2533_v63  ;;  %v2421_v3 = vadd.f32 %v2405_v43, %v2209_v35  ;;  %v2188_v41 = vpop.f32.mrf.mxu0  ;;  %vm2539_vm7 = vmor %vm2537_vm6, %vm2538_vm5 }
 0x255   :  { %v2616_v62 = vadd.f32 %v2608_v42, %v2592_v25  ;;  %v2535_v28 = vmul.f32 %v2710_v55, %v2534_v47  ;;  %v2686_v0 = vmul.f32 -1.442695, %v2421_v3 }
 0x257   :  { %2624 = vst [vmem:[#allocation11] sm:$0xff] %v2616_v62  ;;  %v2536_v16 = vadd.f32 %v2710_v55, %v2535_v28  ;;  %v2165_v49 = vpop.f32.mrf.mxu3  ;;  %2715 = vpow2.f32 %v2686_v0  ;;  %v2231_v45 = vpop.f32.mrf.mxu1  ;;  %v2425_v62 = vadd.f32 %v2401_v12, %v3334_v39 }
 0x258   :  { %v2166_v24 = vadd.f32 %v2165_v49, %v2143_v8  ;;  %v2232_v5 = vadd.f32 %v2231_v45, %v3236_v60  ;;  %v2406_v8 = vperm.slane %v3371_v22, 6 }
 0x259   :  { %v2540_v46 = vsel %vm2539_vm7, %v2710_v55, %v2536_v16 }
 0x25a   :  { %v2545_v48 = vsel %vm2542_vm8, %v2544_v32, %v2540_v46  ;;  %v2189_v11 = vadd.f32 %v2188_v41, %v2166_v24  ;;  %v2255_v25 = vadd.f32 %v2254_v2, %v2232_v5 }
 0x25b   :  { %v2604_v59 = vsub.f32 1.0, %v2545_v48  ;;  %v2596_v61 = vmul.f32 %v3263_v33, %v2545_v48  ;;  %v2257_v28 = vpop.f32.mrf.mxu2 }
 0x25c   :  { %v2212_v6 = vadd.f32 %v2211_v17, %v2189_v11 }
 0x25d   :  { %v2612_v20 = vmul.f32 %v2714_v23, %v2604_v59  ;;  %v2716_v52 = vpop.eup %2715  ;;  %v2300_v38 = vpop.f32.mrf.mxu0 }
 0x25e   :  { %v2429_v29 = vadd.f32 %v2405_v43, %v2212_v6  ;;  %v2465_v27 = vadd.f32 1.0, %v2716_v52 }
 0x25f   :  { %v2620_v18 = vadd.f32 %v2612_v20, %v2596_v61  ;;  %v2234_v42 = vpop.f32.mrf.mxu1 }
 0x260   :  { %v2690_v1 = vmul.f32 -1.442695, %v2429_v29  ;;  %2717 = vrcp.f32 %v2465_v27  ;;  %v2498_v55 = vand.u32 2147483648, %v2465_v27  ;;  %v2496_v57 = vand.u32 2147483647, %v2465_v27 }
 0x261   :  { %2628 = vst [vmem:[#allocation11 + $0x20] sm:$0xff] %v2620_v18  ;;  %vm2492_vm10 = vweird.f32 %v2465_v27  ;;  %v2235_v41 = vadd.f32 %v2234_v42, %v3243_v58 }
 0x262   :  { %2719 = vpow2.f32 %v2690_v1  ;;  %v2499_v7 = vor.u32 1.1754944e-38, %v2498_v55  ;;  %vm2497_vm12 = vcmp.eq.f32.partialorder %v2496_v57, 8.507059e+37 }
 0x263   :  { %v2258_v17 = vadd.f32 %v2257_v28, %v2235_v41 }
 0x266   :  { %v2718_v31 = vpop.eup %2717  ;;  %v2303_v37 = vpop.f32.mrf.mxu0 }
 0x267   :  { %v2488_v53 = vmul.f32 %v2718_v31, %v2465_v27  ;;  %vm2493_vm9 = vweird.f32 %v2718_v31 }
 0x268   :  { %v2720_v40 = vpop.eup %2719  ;;  %vm2494_vm11 = vmor %vm2492_vm10, %vm2493_vm9 }
 0x269   :  { %v2469_v33 = vadd.f32 1.0, %v2720_v40  ;;  %v2489_v9 = vsub.f32 1.0, %v2488_v53 }
 0x26b   :  { %2721 = vrcp.f32 %v2469_v33  ;;  %v2490_v43 = vmul.f32 %v2718_v31, %v2489_v9  ;;  %v2558_v49 = vand.u32 2147483648, %v2469_v33  ;;  %v2556_v11 = vand.u32 2147483647, %v2469_v33 }
 0x26c   :  { %2723 = vtanh.f32 %v2417_v36  ;;  %vm2552_vm14 = vweird.f32 %v2469_v33 }
 0x26d   :  { %v2491_v63 = vadd.f32 %v2718_v31, %v2490_v43  ;;  %2725 = vtanh.f32 %v2425_v62  ;;  %v2559_v23 = vor.u32 1.1754944e-38, %v2558_v49  ;;  %vm2557_vm1 = vcmp.eq.f32.partialorder %v2556_v11, 8.507059e+37 }
 0x26f   :  { %v2495_v54 = vsel %vm2494_vm11, %v2718_v31, %v2491_v63  ;;  %v2323_v32 = vpop.f32.mrf.mxu0 }
 0x270   :  { %v2500_v13 = vsel %vm2497_vm12, %v2499_v7, %v2495_v54  ;;  %v2324_v58 = vadd.f32 %v2323_v32, %v3245_v10  ;;  %v2407_v10 = vperm.slane %v3371_v22, 7  ;;  %v2402_v54 = vperm.slane %v3371_v22, 2 }
 0x271   :  { %v2722_v35 = vpop.eup %2721  ;;  %v2277_v47 = vpop.f32.mrf.mxu3  ;;  %v2601_v15 = vsub.f32 1.0, %v2500_v13  ;;  %v2593_v60 = vmul.f32 %v3289_v14, %v2500_v13 }
 0x272   :  { %v2548_v4 = vmul.f32 %v2722_v35, %v2469_v33  ;;  %v2724_v3 = vpop.eup %2723  ;;  %v2278_v30 = vadd.f32 %v2277_v47, %v2255_v25  ;;  %vm2553_vm13 = vweird.f32 %v2722_v35  ;;  %v2346_v14 = vpop.f32.mrf.mxu1 }
 0x273   :  { %v2609_v0 = vmul.f32 %v2724_v3, %v2601_v15  ;;  %vm2554_vm15 = vmor %vm2552_vm14, %vm2553_vm13  ;;  %v2347_v45 = vadd.f32 %v2346_v14, %v2324_v58  ;;  %v2418_v3 = vadd.f32 %v2402_v54, %v3357_v51  ;;  %v2426_v51 = vadd.f32 %v2402_v54, %v3364_v44 }
 0x274   :  { %v2549_v16 = vsub.f32 1.0, %v2548_v4  ;;  %v2301_v24 = vadd.f32 %v2300_v38, %v2278_v30  ;;  %v2726_v38 = vpop.eup %2725 }
 0x275   :  { %v2617_v46 = vadd.f32 %v2609_v0, %v2593_v60 }
 0x276   :  { %v2550_v48 = vmul.f32 %v2722_v35, %v2549_v16  ;;  %v2422_v59 = vadd.f32 %v2406_v8, %v2301_v24 }
 0x277   :  { %2625 = vst [vmem:[#allocation11 + $0x8] sm:$0xff] %v2617_v46  ;;  %v2369_v18 = vpop.f32.mrf.mxu2  ;;  %v2326_v53 = vpop.f32.mrf.mxu0 }
 0x278   :  { %v2551_v39 = vadd.f32 %v2722_v35, %v2550_v48  ;;  %v2687_v6 = vmul.f32 -1.442695, %v2422_v59  ;;  %v2370_v2 = vadd.f32 %v2369_v18, %v2347_v45  ;;  %v2327_v57 = vadd.f32 %v2326_v53, %v3279_v26 }
 0x279   :  { %v2280_v61 = vpop.f32.mrf.mxu3 }
 0x27a   :  { %v2555_v20 = vsel %vm2554_vm15, %v2722_v35, %v2551_v39  ;;  %v2281_v52 = vadd.f32 %v2280_v61, %v2258_v17  ;;  %2727 = vpow2.f32 %v2687_v6  ;;  %v2349_v63 = vpop.f32.mrf.mxu1  ;;  %v2403_v6 = vperm.slane %v3371_v22, 3 }
 0x27b   :  { %v2560_v29 = vsel %vm2557_vm1, %v2559_v23, %v2555_v20  ;;  %v2350_v7 = vadd.f32 %v2349_v63, %v2327_v57 }
 0x27c   :  { %v2605_v27 = vsub.f32 1.0, %v2560_v29  ;;  %v2304_v1 = vadd.f32 %v2303_v37, %v2281_v52  ;;  %v2597_v12 = vmul.f32 %v3304_v21, %v2560_v29 }
 0x27e   :  { %v2613_v31 = vmul.f32 %v2726_v38, %v2605_v27  ;;  %v2430_v40 = vadd.f32 %v2406_v8, %v2304_v1 }
 0x27f   :  { %v2372_v21 = vpop.f32.mrf.mxu2 }
 0x280   :  { %v2621_v36 = vadd.f32 %v2613_v31, %v2597_v12  ;;  %v2691_v33 = vmul.f32 -1.442695, %v2430_v40  ;;  %v2728_v9 = vpop.eup %2727  ;;  %v2373_v25 = vadd.f32 %v2372_v21, %v2350_v7  ;;  %v2419_v12 = vadd.f32 %v2403_v6, %v3366_v56 }
 0x281   :  { %v2392_v55 = vpop.f32.mrf.mxu3  ;;  %v2466_v43 = vadd.f32 1.0, %v2728_v9 }
 0x282   :  { %2629 = vst [vmem:[#allocation11 + $0x28] sm:$0xff] %v2621_v36  ;;  %2729 = vpow2.f32 %v2691_v33  ;;  %v2393_v37 = vadd.f32 %v2392_v55, %v2370_v2 }
 0x283   :  { %2731 = vrcp.f32 %v2466_v43  ;;  %v2513_v30 = vand.u32 2147483648, %v2466_v43  ;;  %v2511_v16 = vand.u32 2147483647, %v2466_v43  ;;  %vm2507_vm3 = vweird.f32 %v2466_v43 }
 0x284   :  { %v2423_v5 = vadd.f32 %v2407_v10, %v2393_v37  ;;  %v2427_v37 = vadd.f32 %v2403_v6, %v3368_v50 }
 0x285   :  { %v2514_v24 = vor.u32 1.1754944e-38, %v2513_v30  ;;  %vm2512_vm5 = vcmp.eq.f32.partialorder %v2511_v16, 8.507059e+37  ;;  %v2768_v30 = vld [vmem:[#allocation2 + $0x38] sm:$0xff] }
 0x286   :  { %v2688_v35 = vmul.f32 -1.442695, %v2423_v5 }
 0x288   :  { %v2730_v13 = vpop.eup %2729  ;;  %2733 = vpow2.f32 %v2688_v35 }
 0x289   :  { %v2470_v42 = vadd.f32 1.0, %v2730_v13  ;;  %v2395_v47 = vpop.f32.mrf.mxu3  ;;  %v2732_v15 = vpop.eup %2731 }
 0x28a   :  { %v2396_v4 = vadd.f32 %v2395_v47, %v2373_v25  ;;  %v2503_v26 = vmul.f32 %v2732_v15, %v2466_v43  ;;  %vm2508_vm2 = vweird.f32 %v2732_v15  ;;  %v2767_v25 = vld [vmem:[#allocation2 + $0x18] sm:$0xff] }
 0x28b   :  { %2735 = vrcp.f32 %v2470_v42  ;;  %vm2509_vm4 = vmor %vm2507_vm3, %vm2508_vm2  ;;  %v2573_v23 = vand.u32 2147483648, %v2470_v42  ;;  %v2571_v20 = vand.u32 2147483647, %v2470_v42  ;;  %vm2567_vm7 = vweird.f32 %v2470_v42 }
 0x28c   :  { %v2431_v62 = vadd.f32 %v2407_v10, %v2396_v4  ;;  %v2504_v28 = vsub.f32 1.0, %v2503_v26  ;;  %2737 = vtanh.f32 %v2418_v3 }
 0x28d   :  { %v2574_v1 = vor.u32 1.1754944e-38, %v2573_v23  ;;  %vm2572_vm9 = vcmp.eq.f32.partialorder %v2571_v20, 8.507059e+37 }
 0x28e   :  { %v2692_v8 = vmul.f32 -1.442695, %v2431_v62  ;;  %v2734_v60 = vpop.eup %2733  ;;  %v2505_v0 = vmul.f32 %v2732_v15, %v2504_v28 }
 0x28f   :  { %v2467_v41 = vadd.f32 1.0, %v2734_v60 }
 0x290   :  { %2739 = vpow2.f32 %v2692_v8  ;;  %v2506_v32 = vadd.f32 %v2732_v15, %v2505_v0 }
 0x291   :  { %v2736_v49 = vpop.eup %2735  ;;  %2741 = vrcp.f32 %v2467_v41  ;;  %v2528_v53 = vand.u32 2147483648, %v2467_v41  ;;  %v2526_v2 = vand.u32 2147483647, %v2467_v41  ;;  %vm2522_vm11 = vweird.f32 %v2467_v41 }
 0x292   :  { %v2563_v46 = vmul.f32 %v2736_v49, %v2470_v42  ;;  %v2510_v48 = vsel %vm2509_vm4, %v2732_v15, %v2506_v32  ;;  %v2738_v39 = vpop.eup %2737  ;;  %vm2568_vm6 = vweird.f32 %v2736_v49  ;;  %2743 = vtanh.f32 %v2426_v51 }
 0x293   :  { %v2515_v11 = vsel %vm2512_vm5, %v2514_v24, %v2510_v48  ;;  %vm2569_vm8 = vmor %vm2567_vm7, %vm2568_vm6  ;;  %v2529_v56 = vor.u32 1.1754944e-38, %v2528_v53  ;;  %vm2527_vm13 = vcmp.eq.f32.partialorder %v2526_v2, 8.507059e+37 }
 0x294   :  { %v2564_v59 = vsub.f32 1.0, %v2563_v46  ;;  %v2602_v17 = vsub.f32 1.0, %v2515_v11  ;;  %v2594_v58 = vmul.f32 %v3292_v34, %v2515_v11 }
 0x296   :  { %v2740_v14 = vpop.eup %2739  ;;  %v2565_v61 = vmul.f32 %v2736_v49, %v2564_v59  ;;  %v2610_v52 = vmul.f32 %v2738_v39, %v2602_v17 }
 0x297   :  { %v2471_v29 = vadd.f32 1.0, %v2740_v14  ;;  %v2742_v18 = vpop.eup %2741 }
 0x298   :  { %v2566_v44 = vadd.f32 %v2736_v49, %v2565_v61  ;;  %v2618_v27 = vadd.f32 %v2610_v52, %v2594_v58  ;;  %v2518_v38 = vmul.f32 %v2742_v18, %v2467_v41  ;;  %v2744_v34 = vpop.eup %2743  ;;  %vm2523_vm10 = vweird.f32 %v2742_v18 }
 0x299   :  { %2745 = vrcp.f32 %v2471_v29  ;;  %vm2524_vm12 = vmor %vm2522_vm11, %vm2523_vm10  ;;  %v2588_v54 = vand.u32 2147483648, %v2471_v29  ;;  %vm2582_vm15 = vweird.f32 %v2471_v29 }
 0x29a   :  { %v2570_v31 = vsel %vm2569_vm8, %v2736_v49, %v2566_v44  ;;  %2626 = vst [vmem:[#allocation11 + $0x10] sm:$0xff] %v2618_v27  ;;  %v2519_v45 = vsub.f32 1.0, %v2518_v38  ;;  %2747 = vtanh.f32 %v2419_v12 }
 0x29b   :  { %v2575_v22 = vsel %vm2572_vm9, %v2574_v1, %v2570_v31  ;;  %2749 = vtanh.f32 %v2427_v37  ;;  %v2589_v50 = vor.u32 1.1754944e-38, %v2588_v54 }
 0x29c   :  { %v2606_v40 = vsub.f32 1.0, %v2575_v22  ;;  %v2520_v36 = vmul.f32 %v2742_v18, %v2519_v45  ;;  %v2598_v33 = vmul.f32 %v3311_v19, %v2575_v22  ;;  %v2586_v19 = vand.u32 2147483647, %v2471_v29 }
 0x29e   :  { %v2614_v9 = vmul.f32 %v2744_v34, %v2606_v40  ;;  %v2521_v10 = vadd.f32 %v2742_v18, %v2520_v36  ;;  %vm2587_vm2 = vcmp.eq.f32.partialorder %v2586_v19, 8.507059e+37 }
 0x29f   :  { %v2746_v55 = vpop.eup %2745 }
 0x2a0   :  { %v2622_v43 = vadd.f32 %v2614_v9, %v2598_v33  ;;  %v2578_v57 = vmul.f32 %v2746_v55, %v2471_v29  ;;  %v2525_v63 = vsel %vm2524_vm12, %v2742_v18, %v2521_v10  ;;  %v2748_v35 = vpop.eup %2747  ;;  %vm2583_vm14 = vweird.f32 %v2746_v55 }
 0x2a1   :  { %v2530_v21 = vsel %vm2527_vm13, %v2529_v56, %v2525_v63  ;;  %vm2584_vm1 = vmor %vm2582_vm15, %vm2583_vm14  ;;  %v2750_v28 = vpop.eup %2749 }
 0x2a2   :  { %2630 = vst [vmem:[#allocation11 + $0x30] sm:$0xff] %v2622_v43  ;;  %v2579_v5 = vsub.f32 1.0, %v2578_v57  ;;  %v2603_v7 = vsub.f32 1.0, %v2530_v21  ;;  %v2595_v42 = vmul.f32 %v2767_v25, %v2530_v21 }
 0x2a4   :  { %v2580_v13 = vmul.f32 %v2746_v55, %v2579_v5  ;;  %v2611_v47 = vmul.f32 %v2748_v35, %v2603_v7 }
 0x2a6   :  { %v2581_v15 = vadd.f32 %v2746_v55, %v2580_v13  ;;  %v2619_v4 = vadd.f32 %v2611_v47, %v2595_v42 }
 0x2a8   :  { %v2585_v3 = vsel %vm2584_vm1, %v2746_v55, %v2581_v15  ;;  %2627 = vst.msk [vmem:[#allocation11 + $0x18] sm:$0xff] %vm913_vm0, %v2619_v4 }
 0x2a9   :  { %v2590_v26 = vsel %vm2587_vm2, %v2589_v50, %v2585_v3 }
 0x2aa   :  { %v2607_v62 = vsub.f32 1.0, %v2590_v26  ;;  %v2599_v8 = vmul.f32 %v2768_v30, %v2590_v26 }
 0x2ac   :  { %v2615_v60 = vmul.f32 %v2750_v28, %v2607_v62 }
 0x2ae   :  { %v2623_v0 = vadd.f32 %v2615_v60, %v2599_v8 }
 0x2b0   :  { %2631 = vst.msk [vmem:[#allocation11 + $0x38] sm:$0xff] %vm913_vm0, %v2623_v0 }
 0x2b1   :  { %2644 = dma.vmem_to_hbm [thread:$0]  %s2637_s4, 1024, %s2639_s21, [#allocation4], %s2922_s23, %s2922_s23, %s2923_s24  }
 0x2b2   :  { %2919 = dma.done.wait [#allocation4], 1024  }
 0x2b3   :  { %2920 = vsyncadd [#allocation4], 4294966272 }
 0x2b4   :  { %2649 = vsyncpa [#allocation3], 1 }
 0x2b5   :  { %2650 = vsyncpa [#allocation6], 1 }
 0x2b6   :  { %2651 = vsyncpa [#allocation9], 1 }
 0x2b7   :  { %2652 = vsyncpa [#allocation4], 1 }

</bundles_post_ra>
